<compile_context>
chip_gen: v7x
topology: tpu7x:2x2x1
jax: 0.10.0
libtpu: 0.0.40
codegen_flags: <defaults>
</compile_context>

<pallas_src>
import jax
import jax.numpy as jnp
from jax.experimental import pallas as pl
from jax.experimental.pallas import tpu as pltpu

COMPUTE_DTYPE = jnp.bfloat16   # MXU input / intermediate-activation dtype
NEG_SLOPE = 0.2                # LeakyReLU slope
IN_EPS = 1e-5                  # PyTorch InstanceNorm2d default eps
LANE = 128                     # TPU lane width


def _round_up(x, m):
    return ((x + m - 1) // m) * m


def _mxu_target_m():
    """Target matmul rows per grid step: ~128 on v5e (4x128 MXU), ~256 on v6e/v7x."""
    try:
        kind = jax.devices()[0].device_kind.lower()
    except Exception:
        return 256
    if "v5 lite" in kind or "v5e" in kind or "v5litepod" in kind:
        return 128
    return 256


def _pick_bb(batch, ohw, target_m):
    """Images per grid step: fill the MXU (bb*OHW ~ target_m) but keep >= 2 grid
    steps when possible (so v7x's two TensorCores both get work) and divide batch."""
    bb = max(1, min(target_m // ohw, batch))
    if batch >= 2:
        bb = min(bb, max(1, batch // 2))
    while batch % bb:
        bb -= 1
    return bb


# ---------------------------------------------------------------------------
# Pallas kernels
# ---------------------------------------------------------------------------
def _conv_block_body(p_ref, w_ref, b_ref, g, be, *, apply_instnorm):
    """Shared body for one batch block.

    (bb*OHW, K) @ (K, Npad) + bias, optional per-image InstanceNorm(affine),
    LeakyReLU(0.2).  MXU inputs may be bf16; accumulation and all epilogue math
    are f32.  Returns an (bb, OHW, Npad) f32 array.
    """
    bb, ohw, k = p_ref.shape
    p = p_ref[...].reshape(bb * ohw, k)                    # layout-preserving merge
    acc = jnp.dot(p, w_ref[...], preferred_element_type=jnp.float32)
    acc = acc.reshape(bb, ohw, acc.shape[-1])
    acc = acc + b_ref[...].astype(jnp.float32)             # (1, Npad) broadcasts
    if apply_instnorm:
        inv_n = 1.0 / ohw
        mean = jnp.sum(acc, axis=1, keepdims=True) * inv_n          # (bb, 1, Npad)
        cen = acc - mean
        var = jnp.sum(cen * cen, axis=1, keepdims=True) * inv_n     # centered 2-pass
        acc = cen * jax.lax.rsqrt(var + IN_EPS)                     # biased var (IN)
        acc = acc * g.astype(jnp.float32) + be.astype(jnp.float32)
    return jnp.where(acc >= 0, acc, NEG_SLOPE * acc)        # LeakyReLU(0.2)


def _conv_lrelu_kernel(p_ref, w_ref, b_ref, o_ref):
    """Layer 1: Conv + bias + LeakyReLU for one batch block."""
    y = _conv_block_body(p_ref, w_ref, b_ref, None, None, apply_instnorm=False)
    o_ref[...] = y[:, :, :o_ref.shape[-1]].astype(o_ref.dtype)


def _conv_in_lrelu_kernel(p_ref, w_ref, b_ref, g_ref, be_ref, o_ref):
    """Layers 2-3: Conv + bias + InstanceNorm(affine) + LeakyReLU, one batch block."""
    y = _conv_block_body(p_ref, w_ref, b_ref, g_ref[...], be_ref[...],
                         apply_instnorm=True)
    o_ref[...] = y[:, :, :o_ref.shape[-1]].astype(o_ref.dtype)


def _conv_in_lrelu_head_kernel(p_ref, w_ref, b_ref, g_ref, be_ref,
                               wh_ref, bh_ref, o_ref):
    """Layer-4 block + final Conv2d(8fd,1,4,1,0) fused as a VPU multiply-reduce."""
    y = _conv_block_body(p_ref, w_ref, b_ref, g_ref[...], be_ref[...],
                         apply_instnorm=True)               # (bb, OHW, Npad) f32
    prod = y * wh_ref[...][None]                            # head weight, padded lanes are 0
    t = jnp.sum(prod, axis=1)                               # (bb, Npad)  sublane reduce
    s = jnp.sum(t, axis=1, keepdims=True)                   # (bb, 1)     lane reduce
    o_ref[0] = s + bh_ref[...]                              # (bb, LANE) lane-dense store


# ---------------------------------------------------------------------------
# Plain-JAX glue: im2col + wrappers around pallas_call
# ---------------------------------------------------------------------------
def _im2col(x_nhwc, kh, kw, stride, pad):
    """(B,H,W,C) -> (B, OH*OW, KH*KW*C) patch matrix (XLA-side glue)."""
    if pad:
        x_nhwc = jnp.pad(x_nhwc, ((0, 0), (pad, pad), (pad, pad), (0, 0)))
    B, H, W, C = x_nhwc.shape
    oh = (H - kh) // stride + 1
    ow = (W - kw) // stride + 1
    patches = []
    for i in range(kh):
        for j in range(kw):
            patches.append(
                x_nhwc[:, i:i + stride * oh:stride, j:j + stride * ow:stride, :])
    p = jnp.stack(patches, axis=3)                          # (B, oh, ow, kh*kw, C)
    return p.reshape(B, oh * ow, kh * kw * C), oh, ow


def _prep_conv_weights(w, b, dtype):
    """PyTorch (Cout,Cin,KH,KW) -> im2col (K, Npad) weight + (1, Npad) bias, lane-padded."""
    Cout, Cin, KH, KW = w.shape
    K = KH * KW * Cin
    Npad = _round_up(Cout, LANE)
    W2 = jnp.transpose(w, (2, 3, 1, 0)).reshape(K, Cout)    # matches im2col (i,j,c) order
    W2 = jnp.pad(W2, ((0, 0), (0, Npad - Cout))).astype(dtype)
    b2 = jnp.pad(b.reshape(1, Cout), ((0, 0), (0, Npad - Cout))).astype(jnp.float32)
    return W2, b2, K, Npad, Cout


def _pad_vec(v, cout, npad):
    return jnp.pad(v.reshape(1, cout), ((0, 0), (0, npad - cout))).astype(jnp.float32)


def fused_conv_layer(x_nhwc, w, b, gamma=None, beta=None, *, stride, pad):
    """One discriminator block as a single pallas_call, batch-blocked over the grid.

    Conv2d (via im2col matmul) + bias [+ InstanceNorm2d(affine)] + LeakyReLU.
    Output: (B, OH, OW, Cout) in COMPUTE_DTYPE (only the real Cout lanes hit HBM).
    """
    B = x_nhwc.shape[0]
    P, oh, ow = _im2col(x_nhwc, w.shape[2], w.shape[3], stride, pad)
    OHW = oh * ow
    W2, b2, K, Npad, Cout = _prep_conv_weights(w, b, COMPUTE_DTYPE)

    bb = _pick_bb(B, OHW, _mxu_target_m())
    nb = B // bb

    args = [P.astype(COMPUTE_DTYPE), W2, b2]
    in_specs = [
        pl.BlockSpec((bb, OHW, K), lambda i: (i, 0, 0)),
        pl.BlockSpec((K, Npad), lambda i: (0, 0)),
        pl.BlockSpec((1, Npad), lambda i: (0, 0)),
    ]
    if gamma is not None:
        args += [_pad_vec(gamma, Cout, Npad), _pad_vec(beta, Cout, Npad)]
        in_specs += [pl.BlockSpec((1, Npad), lambda i: (0, 0)),
                     pl.BlockSpec((1, Npad), lambda i: (0, 0))]
        kernel = _conv_in_lrelu_kernel
    else:
        kernel = _conv_lrelu_kernel

    out = pl.pallas_call(
        kernel,
        out_shape=jax.ShapeDtypeStruct((B, OHW, Cout), COMPUTE_DTYPE),
        grid=(nb,),
        in_specs=in_specs,
        out_specs=pl.BlockSpec((bb, OHW, Cout), lambda i: (i, 0, 0)),
        compiler_params=pltpu.CompilerParams(dimension_semantics=("parallel",)),
    )(*args)

    return out.reshape(B, oh, ow, Cout)


def fused_conv_in_head_layer(x_nhwc, w, b, gamma, beta, w_head, b_head, *,
                             stride, pad):
    """Layer-4 block fused with the final Conv2d(8fd, 1, 4, 1, 0) head.

    Returns the (B,) critic scores in f32.
    """
    B = x_nhwc.shape[0]
    P, oh, ow = _im2col(x_nhwc, w.shape[2], w.shape[3], stride, pad)
    OHW = oh * ow
    W2, b2, K, Npad, Cout = _prep_conv_weights(w, b, COMPUTE_DTYPE)
    g2 = _pad_vec(gamma, Cout, Npad)
    be2 = _pad_vec(beta, Cout, Npad)

    # Head must reduce the whole layer-4 feature map to one scalar per image
    # (true for the module's 64x64 input contract: 4x4 map, 4x4 valid conv).
    assert w_head.shape == (1, Cout, oh, ow), (w_head.shape, (1, Cout, oh, ow))
    Wh = jnp.transpose(w_head[0], (1, 2, 0)).reshape(OHW, Cout)   # [h*ow+w, c] order
    Wh = jnp.pad(Wh, ((0, 0), (0, Npad - Cout))).astype(jnp.float32)
    bh = jnp.full((1, LANE), b_head[0], jnp.float32)

    bb = _pick_bb(B, OHW, _mxu_target_m())
    nb = B // bb

    out = pl.pallas_call(
        _conv_in_lrelu_head_kernel,
        out_shape=jax.ShapeDtypeStruct((nb, bb, LANE), jnp.float32),
        grid=(nb,),
        in_specs=[
            pl.BlockSpec((bb, OHW, K), lambda i: (i, 0, 0)),
            pl.BlockSpec((K, Npad), lambda i: (0, 0)),
            pl.BlockSpec((1, Npad), lambda i: (0, 0)),
            pl.BlockSpec((1, Npad), lambda i: (0, 0)),
            pl.BlockSpec((1, Npad), lambda i: (0, 0)),
            pl.BlockSpec((OHW, Npad), lambda i: (0, 0)),
            pl.BlockSpec((1, LANE), lambda i: (0, 0)),
        ],
        out_specs=pl.BlockSpec((1, bb, LANE), lambda i: (i, 0, 0)),
        compiler_params=pltpu.CompilerParams(dimension_semantics=("parallel",)),
    )(P.astype(COMPUTE_DTYPE), W2, b2, g2, be2, Wh, bh)

    return out[:, :, 0].reshape(B)                                # (B,)


# ---------------------------------------------------------------------------
# Discriminator: parameters + forward
# ---------------------------------------------------------------------------
def init_params(key, in_dim=3, feature_dim=8):
    """Deterministic init mirroring weights_init: conv ~ N(0, 0.02); IN gamma=1, beta=0."""
    dims = [(feature_dim, in_dim),
            (feature_dim * 2, feature_dim),
            (feature_dim * 4, feature_dim * 2),
            (feature_dim * 8, feature_dim * 4),
            (1, feature_dim * 8)]
    params = {}
    for idx, (co, ci) in enumerate(dims, start=1):
        key, kw, kb = jax.random.split(key, 3)
        params[f'w{idx}'] = 0.02 * jax.random.normal(kw, (co, ci, 4, 4), jnp.float32)
        bound = 1.0 / float(ci * 16) ** 0.5   # PyTorch default conv-bias range
        params[f'b{idx}'] = jax.random.uniform(kb, (co,), jnp.float32, -bound, bound)
        if idx in (2, 3, 4):
            params[f'g{idx}'] = jnp.ones((co,), jnp.float32)
            params[f'be{idx}'] = jnp.zeros((co,), jnp.float32)
    return params


def discriminator_forward(x_nchw, params):
    # layout: convert NCHW -> NHWC once; all kernels operate on im2col matrices.
    y = jnp.transpose(x_nchw, (0, 2, 3, 1)).astype(COMPUTE_DTYPE)

    # Conv -> LeakyReLU (fused)
    y = fused_conv_layer(y, params['w1'], params['b1'], stride=2, pad=1)

    # 2 x [Conv -> InstanceNorm(affine) -> LeakyReLU -> Dropout(identity)] (fused)
    for i in (2, 3):
        y = fused_conv_layer(y, params[f'w{i}'], params[f'b{i}'],
                             params[f'g{i}'], params[f'be{i}'], stride=2, pad=1)

    # Layer-4 block + final Conv2d(8fd,1,4,1,0) + Dropout(identity) + view(-1), fused.
    return fused_conv_in_head_layer(y, params['w4'], params['b4'],
                                    params['g4'], params['be4'],
                                    params['w5'], params['b5'], stride=2, pad=1)


# ---------------------------------------------------------------------------
if __name__ == "__main__":
    key = jax.random.PRNGKey(0)
    k_params, k_x = jax.random.split(key)

    in_dim, feature_dim, batch = 3, 8, 4          # small feature_dim for the demo;
    params = init_params(k_params, in_dim=in_dim, feature_dim=feature_dim)

    # Module contract: input (batch, 3, 64, 64); 64x64 spatial is required so the
    # final 4x4 valid conv reduces to 1x1.  batch=4 exercises the bb>1 blocked path.
    x = jax.random.normal(k_x, (batch, in_dim, 64, 64), jnp.float32)

    fwd = jax.jit(discriminator_forward)
    out = fwd(x, params)
    out = jax.block_until_ready(out)

    assert out.shape == (batch,), out.shape
    assert out.dtype == jnp.float32
    assert bool(jnp.all(jnp.isfinite(out)))
    print("KERNEL_OK")
</pallas_src>

<mosaic_0001>
module attributes {stable_mosaic.version = 11 : i64} {
  func.func @_conv_lrelu_kernel(%arg0: i32, %arg1: memref<1x1024x48xbf16, #tpu.memory_space<vmem>>, %arg2: memref<48x128xbf16, #tpu.memory_space<vmem>>, %arg3: memref<1x128xf32, #tpu.memory_space<vmem>>, %arg4: memref<1x1024x8xbf16, #tpu.memory_space<vmem>>) attributes {dimension_semantics = [#tpu.dimension_semantics<parallel>], iteration_bounds = array<i64: 4>, scalar_prefetch = 0 : i64, scratch_operands = 0 : i64, tpu.core_type = #tpu.core_type<tc>, window_params = [{transform_indices = @transform_0, window_bounds = array<i64: 1, 1024, 48>}, {pipeline_mode = #tpu.pipeline_mode<synchronous>, transform_indices = @transform_1, window_bounds = array<i64: 48, 128>}, {pipeline_mode = #tpu.pipeline_mode<synchronous>, transform_indices = @transform_2, window_bounds = array<i64: 1, 128>}, {transform_indices = @transform_3, window_bounds = array<i64: 1, 1024, 8>}]} {
    %c0 = arith.constant 0 : index
    %c0_0 = arith.constant 0 : index
    %c0_1 = arith.constant 0 : index
    %0 = vector.load %arg1[%c0, %c0_0, %c0_1] : memref<1x1024x48xbf16, #tpu.memory_space<vmem>>, vector<1x1024x48xbf16>
    %1 = vector.shape_cast %0 : vector<1x1024x48xbf16> to vector<1024x48xbf16>
    %c0_2 = arith.constant 0 : index
    %c0_3 = arith.constant 0 : index
    %2 = vector.load %arg2[%c0_2, %c0_3] : memref<48x128xbf16, #tpu.memory_space<vmem>>, vector<48x128xbf16>
    %cst = arith.constant dense<0.000000e+00> : vector<1024x128xf32>
    %3 = tpu.matmul %1, %2, %cst {dimension_numbers = #tpu.dot_dimension_numbers<[1], [0], [0], [1], [0, 0, 1, 1], [], []>} : vector<1024x48xbf16>, vector<48x128xbf16>, vector<1024x128xf32> -> vector<1024x128xf32>
    %4 = vector.shape_cast %3 : vector<1024x128xf32> to vector<1x1024x128xf32>
    %c0_4 = arith.constant 0 : index
    %c0_5 = arith.constant 0 : index
    %5 = vector.load %arg3[%c0_4, %c0_5] : memref<1x128xf32, #tpu.memory_space<vmem>>, vector<1x128xf32>
    %6 = vector.shape_cast %5 : vector<1x128xf32> to vector<1x1x128xf32>
    %7 = vector.broadcast %6 : vector<1x1x128xf32> to vector<1x1024x128xf32>
    %8 = arith.addf %4, %7 : vector<1x1024x128xf32>
    %cst_6 = arith.constant 0.000000e+00 : f32
    %9 = vector.broadcast %cst_6 : f32 to vector<1x1024x128xf32>
    %10 = arith.cmpf oge, %8, %9 : vector<1x1024x128xf32>
    %cst_7 = arith.constant 2.000000e-01 : f32
    %11 = vector.broadcast %cst_7 : f32 to vector<1x1024x128xf32>
    %12 = arith.mulf %11, %8 : vector<1x1024x128xf32>
    %13 = arith.select %10, %8, %12 : vector<1x1024x128xi1>, vector<1x1024x128xf32>
    %14 = vector.extract_strided_slice %13 {offsets = [0, 0, 0], sizes = [1, 1024, 8], strides = [1, 1, 1]} : vector<1x1024x128xf32> to vector<1x1024x8xf32>
    %15 = arith.truncf %14 : vector<1x1024x8xf32> to vector<1x1024x8xbf16>
    %c0_8 = arith.constant 0 : index
    %c0_9 = arith.constant 0 : index
    %c0_10 = arith.constant 0 : index
    %16 = vector.load %arg4[%c0_8, %c0_9, %c0_10] : memref<1x1024x8xbf16, #tpu.memory_space<vmem>>, vector<1x1024x8xbf16>
    tpu.vector_store %arg4[%c0_8, %c0_9, %c0_10], %15 {strides = array<i32>} : memref<1x1024x8xbf16, #tpu.memory_space<vmem>>, vector<1x1024x8xbf16>,
    return
  }
  func.func @transform_0(%arg0: i32) -> (i32, i32, i32) {
    %c0_i32 = arith.constant 0 : i32
    %c0_i32_0 = arith.constant 0 : i32
    %c0_i32_1 = arith.constant 0 : i32
    return %arg0, %c0_i32, %c0_i32_0 : i32, i32, i32
  }
  func.func @transform_1(%arg0: i32) -> (i32, i32) {
    %c0_i32 = arith.constant 0 : i32
    %c0_i32_0 = arith.constant 0 : i32
    %c0_i32_1 = arith.constant 0 : i32
    return %c0_i32, %c0_i32_0 : i32, i32
  }
  func.func @transform_2(%arg0: i32) -> (i32, i32) {
    %c0_i32 = arith.constant 0 : i32
    %c0_i32_0 = arith.constant 0 : i32
    %c0_i32_1 = arith.constant 0 : i32
    return %c0_i32, %c0_i32_0 : i32, i32
  }
  func.func @transform_3(%arg0: i32) -> (i32, i32, i32) {
    %c0_i32 = arith.constant 0 : i32
    %c0_i32_0 = arith.constant 0 : i32
    %c0_i32_1 = arith.constant 0 : i32
    return %arg0, %c0_i32, %c0_i32_0 : i32, i32, i32
  }
}

module attributes {stable_mosaic.version = 11 : i64} {
  func.func @_conv_in_lrelu_kernel(%arg0: i32, %arg1: memref<1x256x128xbf16, #tpu.memory_space<vmem>>, %arg2: memref<128x128xbf16, #tpu.memory_space<vmem>>, %arg3: memref<1x128xf32, #tpu.memory_space<vmem>>, %arg4: memref<1x128xf32, #tpu.memory_space<vmem>>, %arg5: memref<1x128xf32, #tpu.memory_space<vmem>>, %arg6: memref<1x256x16xbf16, #tpu.memory_space<vmem>>) attributes {dimension_semantics = [#tpu.dimension_semantics<parallel>], iteration_bounds = array<i64: 4>, scalar_prefetch = 0 : i64, scratch_operands = 0 : i64, tpu.core_type = #tpu.core_type<tc>, window_params = [{transform_indices = @transform_0, window_bounds = array<i64: 1, 256, 128>}, {pipeline_mode = #tpu.pipeline_mode<synchronous>, transform_indices = @transform_1, window_bounds = array<i64: 128, 128>}, {pipeline_mode = #tpu.pipeline_mode<synchronous>, transform_indices = @transform_2, window_bounds = array<i64: 1, 128>}, {pipeline_mode = #tpu.pipeline_mode<synchronous>, transform_indices = @transform_3, window_bounds = array<i64: 1, 128>}, {pipeline_mode = #tpu.pipeline_mode<synchronous>, transform_indices = @transform_4, window_bounds = array<i64: 1, 128>}, {transform_indices = @transform_5, window_bounds = array<i64: 1, 256, 16>}]} {
    %c0 = arith.constant 0 : index
    %c0_0 = arith.constant 0 : index
    %0 = vector.load %arg4[%c0, %c0_0] : memref<1x128xf32, #tpu.memory_space<vmem>>, vector<1x128xf32>
    %c0_1 = arith.constant 0 : index
    %c0_2 = arith.constant 0 : index
    %1 = vector.load %arg5[%c0_1, %c0_2] : memref<1x128xf32, #tpu.memory_space<vmem>>, vector<1x128xf32>
    %c0_3 = arith.constant 0 : index
    %c0_4 = arith.constant 0 : index
    %c0_5 = arith.constant 0 : index
    %2 = vector.load %arg1[%c0_3, %c0_4, %c0_5] : memref<1x256x128xbf16, #tpu.memory_space<vmem>>, vector<1x256x128xbf16>
    %3 = vector.shape_cast %2 : vector<1x256x128xbf16> to vector<256x128xbf16>
    %c0_6 = arith.constant 0 : index
    %c0_7 = arith.constant 0 : index
    %4 = vector.load %arg2[%c0_6, %c0_7] : memref<128x128xbf16, #tpu.memory_space<vmem>>, vector<128x128xbf16>
    %cst = arith.constant dense<0.000000e+00> : vector<256x128xf32>
    %5 = tpu.matmul %3, %4, %cst {dimension_numbers = #tpu.dot_dimension_numbers<[1], [0], [0], [1], [0, 0, 1, 1], [], []>} : vector<256x128xbf16>, vector<128x128xbf16>, vector<256x128xf32> -> vector<256x128xf32>
    %6 = vector.shape_cast %5 : vector<256x128xf32> to vector<1x256x128xf32>
    %c0_8 = arith.constant 0 : index
    %c0_9 = arith.constant 0 : index
    %7 = vector.load %arg3[%c0_8, %c0_9] : memref<1x128xf32, #tpu.memory_space<vmem>>, vector<1x128xf32>
    %8 = vector.shape_cast %7 : vector<1x128xf32> to vector<1x1x128xf32>
    %9 = vector.broadcast %8 : vector<1x1x128xf32> to vector<1x256x128xf32>
    %10 = arith.addf %6, %9 : vector<1x256x128xf32>
    %cst_10 = arith.constant dense<0.000000e+00> : vector<1x128xf32>
    %11 = vector.multi_reduction <add>, %10, %cst_10 [1] : vector<1x256x128xf32> to vector<1x128xf32>
    %12 = vector.shape_cast %11 : vector<1x128xf32> to vector<1x1x128xf32>
    %cst_11 = arith.constant 3.906250e-03 : f32
    %13 = vector.broadcast %cst_11 : f32 to vector<1x1x128xf32>
    %14 = arith.mulf %12, %13 : vector<1x1x128xf32>
    %15 = vector.broadcast %14 : vector<1x1x128xf32> to vector<1x256x128xf32>
    %16 = arith.subf %10, %15 : vector<1x256x128xf32>
    %17 = arith.mulf %16, %16 : vector<1x256x128xf32>
    %cst_12 = arith.constant dense<0.000000e+00> : vector<1x128xf32>
    %18 = vector.multi_reduction <add>, %17, %cst_12 [1] : vector<1x256x128xf32> to vector<1x128xf32>
    %19 = vector.shape_cast %18 : vector<1x128xf32> to vector<1x1x128xf32>
    %cst_13 = arith.constant 3.906250e-03 : f32
    %20 = vector.broadcast %cst_13 : f32 to vector<1x1x128xf32>
    %21 = arith.mulf %19, %20 : vector<1x1x128xf32>
    %cst_14 = arith.constant 9.99999974E-6 : f32
    %22 = vector.broadcast %cst_14 : f32 to vector<1x1x128xf32>
    %23 = arith.addf %21, %22 : vector<1x1x128xf32>
    %24 = math.rsqrt %23 : vector<1x1x128xf32>
    %25 = vector.broadcast %24 : vector<1x1x128xf32> to vector<1x256x128xf32>
    %26 = arith.mulf %16, %25 : vector<1x256x128xf32>
    %27 = vector.shape_cast %0 : vector<1x128xf32> to vector<1x1x128xf32>
    %28 = vector.broadcast %27 : vector<1x1x128xf32> to vector<1x256x128xf32>
    %29 = arith.mulf %26, %28 : vector<1x256x128xf32>
    %30 = vector.shape_cast %1 : vector<1x128xf32> to vector<1x1x128xf32>
    %31 = vector.broadcast %30 : vector<1x1x128xf32> to vector<1x256x128xf32>
    %32 = arith.addf %29, %31 : vector<1x256x128xf32>
    %cst_15 = arith.constant 0.000000e+00 : f32
    %33 = vector.broadcast %cst_15 : f32 to vector<1x256x128xf32>
    %34 = arith.cmpf oge, %32, %33 : vector<1x256x128xf32>
    %cst_16 = arith.constant 2.000000e-01 : f32
    %35 = vector.broadcast %cst_16 : f32 to vector<1x256x128xf32>
    %36 = arith.mulf %35, %32 : vector<1x256x128xf32>
    %37 = arith.select %34, %32, %36 : vector<1x256x128xi1>, vector<1x256x128xf32>
    %38 = vector.extract_strided_slice %37 {offsets = [0, 0, 0], sizes = [1, 256, 16], strides = [1, 1, 1]} : vector<1x256x128xf32> to vector<1x256x16xf32>
    %39 = arith.truncf %38 : vector<1x256x16xf32> to vector<1x256x16xbf16>
    %c0_17 = arith.constant 0 : index
    %c0_18 = arith.constant 0 : index
    %c0_19 = arith.constant 0 : index
    %40 = vector.load %arg6[%c0_17, %c0_18, %c0_19] : memref<1x256x16xbf16, #tpu.memory_space<vmem>>, vector<1x256x16xbf16>
    tpu.vector_store %arg6[%c0_17, %c0_18, %c0_19], %39 {strides = array<i32>} : memref<1x256x16xbf16, #tpu.memory_space<vmem>>, vector<1x256x16xbf16>,
    return
  }
  func.func @transform_0(%arg0: i32) -> (i32, i32, i32) {
    %c0_i32 = arith.constant 0 : i32
    %c0_i32_0 = arith.constant 0 : i32
    %c0_i32_1 = arith.constant 0 : i32
    return %arg0, %c0_i32, %c0_i32_0 : i32, i32, i32
  }
  func.func @transform_1(%arg0: i32) -> (i32, i32) {
    %c0_i32 = arith.constant 0 : i32
    %c0_i32_0 = arith.constant 0 : i32
    %c0_i32_1 = arith.constant 0 : i32
    return %c0_i32, %c0_i32_0 : i32, i32
  }
  func.func @transform_2(%arg0: i32) -> (i32, i32) {
    %c0_i32 = arith.constant 0 : i32
    %c0_i32_0 = arith.constant 0 : i32
    %c0_i32_1 = arith.constant 0 : i32
    return %c0_i32, %c0_i32_0 : i32, i32
  }
  func.func @transform_3(%arg0: i32) -> (i32, i32) {
    %c0_i32 = arith.constant 0 : i32
    %c0_i32_0 = arith.constant 0 : i32
    %c0_i32_1 = arith.constant 0 : i32
    return %c0_i32, %c0_i32_0 : i32, i32
  }
  func.func @transform_4(%arg0: i32) -> (i32, i32) {
    %c0_i32 = arith.constant 0 : i32
    %c0_i32_0 = arith.constant 0 : i32
    %c0_i32_1 = arith.constant 0 : i32
    return %c0_i32, %c0_i32_0 : i32, i32
  }
  func.func @transform_5(%arg0: i32) -> (i32, i32, i32) {
    %c0_i32 = arith.constant 0 : i32
    %c0_i32_0 = arith.constant 0 : i32
    %c0_i32_1 = arith.constant 0 : i32
    return %arg0, %c0_i32, %c0_i32_0 : i32, i32, i32
  }
}

module attributes {stable_mosaic.version = 11 : i64} {
  func.func @_conv_in_lrelu_kernel(%arg0: i32, %arg1: memref<2x64x256xbf16, #tpu.memory_space<vmem>>, %arg2: memref<256x128xbf16, #tpu.memory_space<vmem>>, %arg3: memref<1x128xf32, #tpu.memory_space<vmem>>, %arg4: memref<1x128xf32, #tpu.memory_space<vmem>>, %arg5: memref<1x128xf32, #tpu.memory_space<vmem>>, %arg6: memref<2x64x32xbf16, #tpu.memory_space<vmem>>) attributes {dimension_semantics = [#tpu.dimension_semantics<parallel>], iteration_bounds = array<i64: 2>, scalar_prefetch = 0 : i64, scratch_operands = 0 : i64, tpu.core_type = #tpu.core_type<tc>, window_params = [{transform_indices = @transform_0, window_bounds = array<i64: 2, 64, 256>}, {pipeline_mode = #tpu.pipeline_mode<synchronous>, transform_indices = @transform_1, window_bounds = array<i64: 256, 128>}, {pipeline_mode = #tpu.pipeline_mode<synchronous>, transform_indices = @transform_2, window_bounds = array<i64: 1, 128>}, {pipeline_mode = #tpu.pipeline_mode<synchronous>, transform_indices = @transform_3, window_bounds = array<i64: 1, 128>}, {pipeline_mode = #tpu.pipeline_mode<synchronous>, transform_indices = @transform_4, window_bounds = array<i64: 1, 128>}, {transform_indices = @transform_5, window_bounds = array<i64: 2, 64, 32>}]} {
    %c0 = arith.constant 0 : index
    %c0_0 = arith.constant 0 : index
    %0 = vector.load %arg4[%c0, %c0_0] : memref<1x128xf32, #tpu.memory_space<vmem>>, vector<1x128xf32>
    %c0_1 = arith.constant 0 : index
    %c0_2 = arith.constant 0 : index
    %1 = vector.load %arg5[%c0_1, %c0_2] : memref<1x128xf32, #tpu.memory_space<vmem>>, vector<1x128xf32>
    %c0_3 = arith.constant 0 : index
    %c0_4 = arith.constant 0 : index
    %c0_5 = arith.constant 0 : index
    %2 = vector.load %arg1[%c0_3, %c0_4, %c0_5] : memref<2x64x256xbf16, #tpu.memory_space<vmem>>, vector<2x64x256xbf16>
    %3 = vector.shape_cast %2 : vector<2x64x256xbf16> to vector<128x256xbf16>
    %c0_6 = arith.constant 0 : index
    %c0_7 = arith.constant 0 : index
    %4 = vector.load %arg2[%c0_6, %c0_7] : memref<256x128xbf16, #tpu.memory_space<vmem>>, vector<256x128xbf16>
    %cst = arith.constant dense<0.000000e+00> : vector<128x128xf32>
    %5 = tpu.matmul %3, %4, %cst {dimension_numbers = #tpu.dot_dimension_numbers<[1], [0], [0], [1], [0, 0, 1, 1], [], []>} : vector<128x256xbf16>, vector<256x128xbf16>, vector<128x128xf32> -> vector<128x128xf32>
    %6 = vector.shape_cast %5 : vector<128x128xf32> to vector<2x64x128xf32>
    %c0_8 = arith.constant 0 : index
    %c0_9 = arith.constant 0 : index
    %7 = vector.load %arg3[%c0_8, %c0_9] : memref<1x128xf32, #tpu.memory_space<vmem>>, vector<1x128xf32>
    %8 = vector.shape_cast %7 : vector<1x128xf32> to vector<1x1x128xf32>
    %9 = vector.broadcast %8 : vector<1x1x128xf32> to vector<2x64x128xf32>
    %10 = arith.addf %6, %9 : vector<2x64x128xf32>
    %cst_10 = arith.constant dense<0.000000e+00> : vector<2x128xf32>
    %11 = vector.multi_reduction <add>, %10, %cst_10 [1] : vector<2x64x128xf32> to vector<2x128xf32>
    %12 = vector.shape_cast %11 : vector<2x128xf32> to vector<2x1x128xf32>
    %cst_11 = arith.constant 1.562500e-02 : f32
    %13 = vector.broadcast %cst_11 : f32 to vector<2x1x128xf32>
    %14 = arith.mulf %12, %13 : vector<2x1x128xf32>
    %15 = vector.broadcast %14 : vector<2x1x128xf32> to vector<2x64x128xf32>
    %16 = arith.subf %10, %15 : vector<2x64x128xf32>
    %17 = arith.mulf %16, %16 : vector<2x64x128xf32>
    %cst_12 = arith.constant dense<0.000000e+00> : vector<2x128xf32>
    %18 = vector.multi_reduction <add>, %17, %cst_12 [1] : vector<2x64x128xf32> to vector<2x128xf32>
    %19 = vector.shape_cast %18 : vector<2x128xf32> to vector<2x1x128xf32>
    %cst_13 = arith.constant 1.562500e-02 : f32
    %20 = vector.broadcast %cst_13 : f32 to vector<2x1x128xf32>
    %21 = arith.mulf %19, %20 : vector<2x1x128xf32>
    %cst_14 = arith.constant 9.99999974E-6 : f32
    %22 = vector.broadcast %cst_14 : f32 to vector<2x1x128xf32>
    %23 = arith.addf %21, %22 : vector<2x1x128xf32>
    %24 = math.rsqrt %23 : vector<2x1x128xf32>
    %25 = vector.broadcast %24 : vector<2x1x128xf32> to vector<2x64x128xf32>
    %26 = arith.mulf %16, %25 : vector<2x64x128xf32>
    %27 = vector.shape_cast %0 : vector<1x128xf32> to vector<1x1x128xf32>
    %28 = vector.broadcast %27 : vector<1x1x128xf32> to vector<2x64x128xf32>
    %29 = arith.mulf %26, %28 : vector<2x64x128xf32>
    %30 = vector.shape_cast %1 : vector<1x128xf32> to vector<1x1x128xf32>
    %31 = vector.broadcast %30 : vector<1x1x128xf32> to vector<2x64x128xf32>
    %32 = arith.addf %29, %31 : vector<2x64x128xf32>
    %cst_15 = arith.constant 0.000000e+00 : f32
    %33 = vector.broadcast %cst_15 : f32 to vector<2x64x128xf32>
    %34 = arith.cmpf oge, %32, %33 : vector<2x64x128xf32>
    %cst_16 = arith.constant 2.000000e-01 : f32
    %35 = vector.broadcast %cst_16 : f32 to vector<2x64x128xf32>
    %36 = arith.mulf %35, %32 : vector<2x64x128xf32>
    %37 = arith.select %34, %32, %36 : vector<2x64x128xi1>, vector<2x64x128xf32>
    %38 = vector.extract_strided_slice %37 {offsets = [0, 0, 0], sizes = [2, 64, 32], strides = [1, 1, 1]} : vector<2x64x128xf32> to vector<2x64x32xf32>
    %39 = arith.truncf %38 : vector<2x64x32xf32> to vector<2x64x32xbf16>
    %c0_17 = arith.constant 0 : index
    %c0_18 = arith.constant 0 : index
    %c0_19 = arith.constant 0 : index
    %40 = vector.load %arg6[%c0_17, %c0_18, %c0_19] : memref<2x64x32xbf16, #tpu.memory_space<vmem>>, vector<2x64x32xbf16>
    tpu.vector_store %arg6[%c0_17, %c0_18, %c0_19], %39 {strides = array<i32>} : memref<2x64x32xbf16, #tpu.memory_space<vmem>>, vector<2x64x32xbf16>,
    return
  }
  func.func @transform_0(%arg0: i32) -> (i32, i32, i32) {
    %c0_i32 = arith.constant 0 : i32
    %c0_i32_0 = arith.constant 0 : i32
    %c0_i32_1 = arith.constant 0 : i32
    return %arg0, %c0_i32, %c0_i32_0 : i32, i32, i32
  }
  func.func @transform_1(%arg0: i32) -> (i32, i32) {
    %c0_i32 = arith.constant 0 : i32
    %c0_i32_0 = arith.constant 0 : i32
    %c0_i32_1 = arith.constant 0 : i32
    return %c0_i32, %c0_i32_0 : i32, i32
  }
  func.func @transform_2(%arg0: i32) -> (i32, i32) {
    %c0_i32 = arith.constant 0 : i32
    %c0_i32_0 = arith.constant 0 : i32
    %c0_i32_1 = arith.constant 0 : i32
    return %c0_i32, %c0_i32_0 : i32, i32
  }
  func.func @transform_3(%arg0: i32) -> (i32, i32) {
    %c0_i32 = arith.constant 0 : i32
    %c0_i32_0 = arith.constant 0 : i32
    %c0_i32_1 = arith.constant 0 : i32
    return %c0_i32, %c0_i32_0 : i32, i32
  }
  func.func @transform_4(%arg0: i32) -> (i32, i32) {
    %c0_i32 = arith.constant 0 : i32
    %c0_i32_0 = arith.constant 0 : i32
    %c0_i32_1 = arith.constant 0 : i32
    return %c0_i32, %c0_i32_0 : i32, i32
  }
  func.func @transform_5(%arg0: i32) -> (i32, i32, i32) {
    %c0_i32 = arith.constant 0 : i32
    %c0_i32_0 = arith.constant 0 : i32
    %c0_i32_1 = arith.constant 0 : i32
    return %arg0, %c0_i32, %c0_i32_0 : i32, i32, i32
  }
}

module attributes {stable_mosaic.version = 11 : i64} {
  func.func @_conv_in_lrelu_head_kernel(%arg0: i32, %arg1: memref<2x16x512xbf16, #tpu.memory_space<vmem>>, %arg2: memref<512x128xbf16, #tpu.memory_space<vmem>>, %arg3: memref<1x128xf32, #tpu.memory_space<vmem>>, %arg4: memref<1x128xf32, #tpu.memory_space<vmem>>, %arg5: memref<1x128xf32, #tpu.memory_space<vmem>>, %arg6: memref<16x128xf32, #tpu.memory_space<vmem>>, %arg7: memref<1x128xf32, #tpu.memory_space<vmem>>, %arg8: memref<1x2x128xf32, #tpu.memory_space<vmem>>) attributes {dimension_semantics = [#tpu.dimension_semantics<parallel>], iteration_bounds = array<i64: 2>, scalar_prefetch = 0 : i64, scratch_operands = 0 : i64, tpu.core_type = #tpu.core_type<tc>, window_params = [{transform_indices = @transform_0, window_bounds = array<i64: 2, 16, 512>}, {pipeline_mode = #tpu.pipeline_mode<synchronous>, transform_indices = @transform_1, window_bounds = array<i64: 512, 128>}, {pipeline_mode = #tpu.pipeline_mode<synchronous>, transform_indices = @transform_2, window_bounds = array<i64: 1, 128>}, {pipeline_mode = #tpu.pipeline_mode<synchronous>, transform_indices = @transform_3, window_bounds = array<i64: 1, 128>}, {pipeline_mode = #tpu.pipeline_mode<synchronous>, transform_indices = @transform_4, window_bounds = array<i64: 1, 128>}, {pipeline_mode = #tpu.pipeline_mode<synchronous>, transform_indices = @transform_5, window_bounds = array<i64: 16, 128>}, {pipeline_mode = #tpu.pipeline_mode<synchronous>, transform_indices = @transform_6, window_bounds = array<i64: 1, 128>}, {transform_indices = @transform_7, window_bounds = array<i64: 1, 2, 128>}]} {
    %c0 = arith.constant 0 : index
    %c0_0 = arith.constant 0 : index
    %0 = vector.load %arg4[%c0, %c0_0] : memref<1x128xf32, #tpu.memory_space<vmem>>, vector<1x128xf32>
    %c0_1 = arith.constant 0 : index
    %c0_2 = arith.constant 0 : index
    %1 = vector.load %arg5[%c0_1, %c0_2] : memref<1x128xf32, #tpu.memory_space<vmem>>, vector<1x128xf32>
    %c0_3 = arith.constant 0 : index
    %c0_4 = arith.constant 0 : index
    %c0_5 = arith.constant 0 : index
    %2 = vector.load %arg1[%c0_3, %c0_4, %c0_5] : memref<2x16x512xbf16, #tpu.memory_space<vmem>>, vector<2x16x512xbf16>
    %3 = vector.shape_cast %2 : vector<2x16x512xbf16> to vector<32x512xbf16>
    %c0_6 = arith.constant 0 : index
    %c0_7 = arith.constant 0 : index
    %4 = vector.load %arg2[%c0_6, %c0_7] : memref<512x128xbf16, #tpu.memory_space<vmem>>, vector<512x128xbf16>
    %cst = arith.constant dense<0.000000e+00> : vector<32x128xf32>
    %5 = tpu.matmul %3, %4, %cst {dimension_numbers = #tpu.dot_dimension_numbers<[1], [0], [0], [1], [0, 0, 1, 1], [], []>} : vector<32x512xbf16>, vector<512x128xbf16>, vector<32x128xf32> -> vector<32x128xf32>
    %6 = vector.shape_cast %5 : vector<32x128xf32> to vector<2x16x128xf32>
    %c0_8 = arith.constant 0 : index
    %c0_9 = arith.constant 0 : index
    %7 = vector.load %arg3[%c0_8, %c0_9] : memref<1x128xf32, #tpu.memory_space<vmem>>, vector<1x128xf32>
    %8 = vector.shape_cast %7 : vector<1x128xf32> to vector<1x1x128xf32>
    %9 = vector.broadcast %8 : vector<1x1x128xf32> to vector<2x16x128xf32>
    %10 = arith.addf %6, %9 : vector<2x16x128xf32>
    %cst_10 = arith.constant dense<0.000000e+00> : vector<2x128xf32>
    %11 = vector.multi_reduction <add>, %10, %cst_10 [1] : vector<2x16x128xf32> to vector<2x128xf32>
    %12 = vector.shape_cast %11 : vector<2x128xf32> to vector<2x1x128xf32>
    %cst_11 = arith.constant 6.250000e-02 : f32
    %13 = vector.broadcast %cst_11 : f32 to vector<2x1x128xf32>
    %14 = arith.mulf %12, %13 : vector<2x1x128xf32>
    %15 = vector.broadcast %14 : vector<2x1x128xf32> to vector<2x16x128xf32>
    %16 = arith.subf %10, %15 : vector<2x16x128xf32>
    %17 = arith.mulf %16, %16 : vector<2x16x128xf32>
    %cst_12 = arith.constant dense<0.000000e+00> : vector<2x128xf32>
    %18 = vector.multi_reduction <add>, %17, %cst_12 [1] : vector<2x16x128xf32> to vector<2x128xf32>
    %19 = vector.shape_cast %18 : vector<2x128xf32> to vector<2x1x128xf32>
    %cst_13 = arith.constant 6.250000e-02 : f32
    %20 = vector.broadcast %cst_13 : f32 to vector<2x1x128xf32>
    %21 = arith.mulf %19, %20 : vector<2x1x128xf32>
    %cst_14 = arith.constant 9.99999974E-6 : f32
    %22 = vector.broadcast %cst_14 : f32 to vector<2x1x128xf32>
    %23 = arith.addf %21, %22 : vector<2x1x128xf32>
    %24 = math.rsqrt %23 : vector<2x1x128xf32>
    %25 = vector.broadcast %24 : vector<2x1x128xf32> to vector<2x16x128xf32>
    %26 = arith.mulf %16, %25 : vector<2x16x128xf32>
    %27 = vector.shape_cast %0 : vector<1x128xf32> to vector<1x1x128xf32>
    %28 = vector.broadcast %27 : vector<1x1x128xf32> to vector<2x16x128xf32>
    %29 = arith.mulf %26, %28 : vector<2x16x128xf32>
    %30 = vector.shape_cast %1 : vector<1x128xf32> to vector<1x1x128xf32>
    %31 = vector.broadcast %30 : vector<1x1x128xf32> to vector<2x16x128xf32>
    %32 = arith.addf %29, %31 : vector<2x16x128xf32>
    %cst_15 = arith.constant 0.000000e+00 : f32
    %33 = vector.broadcast %cst_15 : f32 to vector<2x16x128xf32>
    %34 = arith.cmpf oge, %32, %33 : vector<2x16x128xf32>
    %cst_16 = arith.constant 2.000000e-01 : f32
    %35 = vector.broadcast %cst_16 : f32 to vector<2x16x128xf32>
    %36 = arith.mulf %35, %32 : vector<2x16x128xf32>
    %37 = arith.select %34, %32, %36 : vector<2x16x128xi1>, vector<2x16x128xf32>
    %c0_17 = arith.constant 0 : index
    %c0_18 = arith.constant 0 : index
    %38 = vector.load %arg6[%c0_17, %c0_18] : memref<16x128xf32, #tpu.memory_space<vmem>>, vector<16x128xf32>
    %39 = vector.shape_cast %38 : vector<16x128xf32> to vector<1x16x128xf32>
    %40 = vector.broadcast %39 : vector<1x16x128xf32> to vector<2x16x128xf32>
    %41 = arith.mulf %37, %40 : vector<2x16x128xf32>
    %cst_19 = arith.constant dense<0.000000e+00> : vector<2x128xf32>
    %42 = vector.multi_reduction <add>, %41, %cst_19 [1] : vector<2x16x128xf32> to vector<2x128xf32>
    %cst_20 = arith.constant dense<0.000000e+00> : vector<2xf32>
    %43 = vector.multi_reduction <add>, %42, %cst_20 [1] : vector<2x128xf32> to vector<2xf32>
    %44 = vector.shape_cast %43 : vector<2xf32> to vector<2x1xf32>
    %c0_21 = arith.constant 0 : index
    %c0_22 = arith.constant 0 : index
    %45 = vector.load %arg7[%c0_21, %c0_22] : memref<1x128xf32, #tpu.memory_space<vmem>>, vector<1x128xf32>
    %46 = vector.broadcast %44 : vector<2x1xf32> to vector<2x128xf32>
    %47 = vector.broadcast %45 : vector<1x128xf32> to vector<2x128xf32>
    %48 = arith.addf %46, %47 : vector<2x128xf32>
    %c0_23 = arith.constant 0 : index
    %c0_24 = arith.constant 0 : index
    %c0_25 = arith.constant 0 : index
    %49 = vector.load %arg8[%c0_23, %c0_24, %c0_25] : memref<1x2x128xf32, #tpu.memory_space<vmem>>, vector<1x2x128xf32>
    %50 = vector.shape_cast %49 : vector<1x2x128xf32> to vector<2x128xf32>
    %51 = vector.shape_cast %48 : vector<2x128xf32> to vector<1x2x128xf32>
    tpu.vector_store %arg8[%c0_23, %c0_24, %c0_25], %51 {strides = array<i32>} : memref<1x2x128xf32, #tpu.memory_space<vmem>>, vector<1x2x128xf32>,
    return
  }
  func.func @transform_0(%arg0: i32) -> (i32, i32, i32) {
    %c0_i32 = arith.constant 0 : i32
    %c0_i32_0 = arith.constant 0 : i32
    %c0_i32_1 = arith.constant 0 : i32
    return %arg0, %c0_i32, %c0_i32_0 : i32, i32, i32
  }
  func.func @transform_1(%arg0: i32) -> (i32, i32) {
    %c0_i32 = arith.constant 0 : i32
    %c0_i32_0 = arith.constant 0 : i32
    %c0_i32_1 = arith.constant 0 : i32
    return %c0_i32, %c0_i32_0 : i32, i32
  }
  func.func @transform_2(%arg0: i32) -> (i32, i32) {
    %c0_i32 = arith.constant 0 : i32
    %c0_i32_0 = arith.constant 0 : i32
    %c0_i32_1 = arith.constant 0 : i32
    return %c0_i32, %c0_i32_0 : i32, i32
  }
  func.func @transform_3(%arg0: i32) -> (i32, i32) {
    %c0_i32 = arith.constant 0 : i32
    %c0_i32_0 = arith.constant 0 : i32
    %c0_i32_1 = arith.constant 0 : i32
    return %c0_i32, %c0_i32_0 : i32, i32
  }
  func.func @transform_4(%arg0: i32) -> (i32, i32) {
    %c0_i32 = arith.constant 0 : i32
    %c0_i32_0 = arith.constant 0 : i32
    %c0_i32_1 = arith.constant 0 : i32
    return %c0_i32, %c0_i32_0 : i32, i32
  }
  func.func @transform_5(%arg0: i32) -> (i32, i32) {
    %c0_i32 = arith.constant 0 : i32
    %c0_i32_0 = arith.constant 0 : i32
    %c0_i32_1 = arith.constant 0 : i32
    return %c0_i32, %c0_i32_0 : i32, i32
  }
  func.func @transform_6(%arg0: i32) -> (i32, i32) {
    %c0_i32 = arith.constant 0 : i32
    %c0_i32_0 = arith.constant 0 : i32
    %c0_i32_1 = arith.constant 0 : i32
    return %c0_i32, %c0_i32_0 : i32, i32
  }
  func.func @transform_7(%arg0: i32) -> (i32, i32, i32) {
    %c0_i32 = arith.constant 0 : i32
    %c0_i32_0 = arith.constant 0 : i32
    %c0_i32_1 = arith.constant 0 : i32
    return %arg0, %c0_i32, %c0_i32_0 : i32, i32, i32
  }
}

</mosaic_0001>

<bundles_post_ra>
// kernel: discriminator_forward.4
= control target key start
LH: loop header
LB: loop body
LE: loop exit
PB: predicated region body
PF: predicated region fallthrough
CT: control target
= control target key end

     0   :  { %s3309_s12 = smov 0   ;;  %s4143_s0 = inlined_call_operand.vmem [shape: bf16[4,1024,48], index: 0, kind: input, shape index: {}]   ;;  %s4144_s1 = inlined_call_operand.vmem [shape: bf16[48,128], index: 1, kind: input, shape index: {}]   ;;  %s4145_s2 = inlined_call_operand.vmem [shape: f32[1,128], index: 2, kind: input, shape index: {}]   ;;  %s4146_s3 = inlined_call_operand.vmem [shape: bf16[4,1024,8], index: 3, kind: output, shape index: {}]  }
   0x1 LB: > { %s2597_s13 = sadd.s32 4294967295, %s3287_s12   ;;  %p2601_p0 = scmp.ge.s32.totalorder %s3287_s12, 1  ;;  %s3287_s12 = sphi %s3309_s12, %s13_s12  }
   0x2   : > { %p137_p1 = scmp.lt.s32.totalorder %s3287_s12, 5 }
   0x4   : > { %p138_p2 = pnand %p2601_p0, %p137_p1 }
   0x5   : > { %v3213_v0 = vld [vmem:[%s4144_s1] sm:$0xff] (!%p138_p2)   ;;  %p161_p3 = scmp.lt.s32.totalorder (!%p138_p2), %s2597_s13, 3  ;;  %v3214_v1 = vld [vmem:[%s4144_s1 + $0x8] sm:$0xff] (!%p138_p2)   ;;  %v3215_v2 = vld [vmem:[%s4144_s1 + $0x10] sm:$0xff] (!%p138_p2)   ;;  %vm644_vm0 = vcmask (!%p138_p2), 392192   ;;  %vm2413_vm1 = vcmask (!%p138_p2), 60416  }
   0x6   : > { %141 = sbr.rel (%p138_p2) target bundleno = 398 (0x18e), region = 32  ;;  %3065 = vmatprep.subr.bf16.mxu0 (!%p138_p2), %v3213_v0  ;;  %3199 = vmatprep.subr.bf16.mxu1 (!%p138_p2), %v3213_v0 }
   0x7   : > { %3066 = vmatpush3.bf16.msra.mxu0 (!%p138_p2), %v3213_v0  ;;  %3202 = vmatpush3.bf16.msra.mxu1 (!%p138_p2), %v3213_v0 }
   0x8   : > { %3067 = vmatprep.subr.bf16.mxu0 (!%p138_p2), %v3214_v1  ;;  %3200 = vmatprep.subr.bf16.mxu1 (!%p138_p2), %v3214_v1 }
   0xb   : > { %3068 = vmatpush3.bf16.msra.mxu0 (!%p138_p2), %v3214_v1  ;;  %3203 = vmatpush3.bf16.msra.mxu1 (!%p138_p2), %v3214_v1 }
   0xc   : > { %3069 = vmatprep.subr.bf16.mxu0 (!%p138_p2), %v3215_v2  ;;  %3201 = vmatprep.subr.bf16.mxu1 (!%p138_p2), %v3215_v2 }
   0xd   : > { %s4148_s13 = smov (!%p161_p3, %s2597_s13), 3 }
   0xe   : > { %s2868_s20 = sshll.u32 %s4148_s13, 9 }
   0xf   : > { %s3334_s23 = scalar_lea.vmem %s4143_s0, %s2868_s20  ;;  %3070 = vmatpush3.bf16.msra.mxu0 %v3215_v2  ;;  %3204 = vmatpush3.bf16.msra.mxu1 %v3215_v2  ;;  %s3478_s28 = scalar_lea.vmem %s4146_s3, %s2868_s20 }
  0x10   : > { %v3216_v3 = vld [vmem:[%s3334_s23] sm:$0xff]   ;;  %v3218_v5 = vld [vmem:[%s3334_s23 + $0x8] sm:$0xff]   ;;  %v3220_v7 = vld [vmem:[%s3334_s23 + $0x10] sm:$0xff]  }
  0x11   : > { %v3217_v4 = vld [vmem:[%s3334_s23 + $0x100] sm:$0xff]   ;;  %3071 = vmatprep.mubr.msk.bf16.mxu0 %vm644_vm0, %v3216_v3  ;;  %v3219_v6 = vld [vmem:[%s3334_s23 + $0x108] sm:$0xff]   ;;  %v3221_v8 = vld [vmem:[%s3334_s23 + $0x110] sm:$0xff]  }
  0x12   : > { %3135 = vmatprep.mubr.msk.bf16.mxu1 %vm644_vm0, %v3217_v4  ;;  %3072 = vmatmul.mubr.msk.bf16.vlgmr.msra.gmra.mrb[0].mxu0 %vm644_vm0, %v3218_v5  ;;  %v3222_v9 = vld [vmem:[%s3334_s23 + $0x18] sm:$0xff]   ;;  %v3224_v11 = vld [vmem:[%s3334_s23 + $0x20] sm:$0xff]   ;;  %v3226_v13 = vld [vmem:[%s3334_s23 + $0x28] sm:$0xff]  }
  0x13   : > { %3136 = vmatmul.mubr.msk.bf16.vlgmr.msra.gmra.mrb[0].mxu1 %vm644_vm0, %v3219_v6  ;;  %3075 = vmatprep.mubr.msk.bf16.mxu0 %vm644_vm0, %v3220_v7  ;;  %v3223_v10 = vld [vmem:[%s3334_s23 + $0x118] sm:$0xff]   ;;  %v3225_v12 = vld [vmem:[%s3334_s23 + $0x120] sm:$0xff]   ;;  %v3227_v14 = vld [vmem:[%s3334_s23 + $0x128] sm:$0xff]  }
  0x14   : > { %3139 = vmatprep.mubr.msk.bf16.mxu1 %vm644_vm0, %v3221_v8  ;;  %v3228_v15 = vld [vmem:[%s3334_s23 + $0x30] sm:$0xff]   ;;  %v3230_v17 = vld [vmem:[%s3334_s23 + $0x38] sm:$0xff]   ;;  %v3232_v19 = vld [vmem:[%s3334_s23 + $0x40] sm:$0xff]  }
  0x15   : > { %v3229_v16 = vld [vmem:[%s3334_s23 + $0x130] sm:$0xff]   ;;  %v3231_v18 = vld [vmem:[%s3334_s23 + $0x138] sm:$0xff]   ;;  %v3233_v20 = vld [vmem:[%s3334_s23 + $0x140] sm:$0xff]  }
  0x16   : > { %v3234_v21 = vld [vmem:[%s3334_s23 + $0x48] sm:$0xff]   ;;  %v3236_v23 = vld [vmem:[%s3334_s23 + $0x50] sm:$0xff]   ;;  %v3238_v25 = vld [vmem:[%s3334_s23 + $0x58] sm:$0xff]  }
  0x17   : > { %v3235_v22 = vld [vmem:[%s3334_s23 + $0x148] sm:$0xff]   ;;  %v3237_v24 = vld [vmem:[%s3334_s23 + $0x150] sm:$0xff]   ;;  %v3239_v26 = vld [vmem:[%s3334_s23 + $0x158] sm:$0xff]  }
  0x18   : > { %v3240_v27 = vld [vmem:[%s3334_s23 + $0x60] sm:$0xff]   ;;  %v3242_v29 = vld [vmem:[%s3334_s23 + $0x68] sm:$0xff]   ;;  %v3244_v31 = vld [vmem:[%s3334_s23 + $0x70] sm:$0xff]  }
  0x19   : > { %v3241_v28 = vld [vmem:[%s3334_s23 + $0x160] sm:$0xff]   ;;  %v3243_v30 = vld [vmem:[%s3334_s23 + $0x168] sm:$0xff]   ;;  %v3245_v32 = vld [vmem:[%s3334_s23 + $0x170] sm:$0xff]  }
  0x1a   : > { %3076 = vmatmul.mubr.msk.bf16.gmra.mrb[4].mxu0 %vm644_vm0, %v3222_v9  ;;  %v3246_v33 = vld [vmem:[%s3334_s23 + $0x78] sm:$0xff]   ;;  %v3248_v35 = vld [vmem:[%s3334_s23 + $0x80] sm:$0xff]   ;;  %v3250_v37 = vld [vmem:[%s3334_s23 + $0x88] sm:$0xff]  }
  0x1b   : > { %3140 = vmatmul.mubr.msk.bf16.gmra.mrb[4].mxu1 %vm644_vm0, %v3223_v10  ;;  %3079 = vmatprep.mubr.msk.bf16.mxu0 %vm644_vm0, %v3224_v11  ;;  %v3247_v34 = vld [vmem:[%s3334_s23 + $0x178] sm:$0xff]   ;;  %v3249_v36 = vld [vmem:[%s3334_s23 + $0x180] sm:$0xff]   ;;  %v3251_v38 = vld [vmem:[%s3334_s23 + $0x188] sm:$0xff]  }
  0x1c   : > { %3143 = vmatprep.mubr.msk.bf16.mxu1 %vm644_vm0, %v3225_v12  ;;  %v3252_v39 = vld [vmem:[%s3334_s23 + $0x90] sm:$0xff]   ;;  %v3254_v41 = vld [vmem:[%s3334_s23 + $0x98] sm:$0xff]   ;;  %v3256_v43 = vld [vmem:[%s3334_s23 + $0xa0] sm:$0xff]  }
  0x1d   : > { %v3253_v40 = vld [vmem:[%s3334_s23 + $0x190] sm:$0xff]   ;;  %v3255_v42 = vld [vmem:[%s3334_s23 + $0x198] sm:$0xff]   ;;  %v3257_v44 = vld [vmem:[%s3334_s23 + $0x1a0] sm:$0xff]  }
  0x1e   : > { %v3258_v45 = vld [vmem:[%s3334_s23 + $0xa8] sm:$0xff]   ;;  %v3260_v47 = vld [vmem:[%s3334_s23 + $0xb0] sm:$0xff]   ;;  %v3262_v49 = vld [vmem:[%s3334_s23 + $0xb8] sm:$0xff]  }
  0x1f   : > { %v3259_v46 = vld [vmem:[%s3334_s23 + $0x1a8] sm:$0xff]   ;;  %v3261_v48 = vld [vmem:[%s3334_s23 + $0x1b0] sm:$0xff]   ;;  %v3263_v50 = vld [vmem:[%s3334_s23 + $0x1b8] sm:$0xff]  }
  0x20   : > { %v3264_v51 = vld [vmem:[%s3334_s23 + $0xc0] sm:$0xff]   ;;  %v3266_v53 = vld [vmem:[%s3334_s23 + $0xc8] sm:$0xff]   ;;  %v3268_v55 = vld [vmem:[%s3334_s23 + $0xd0] sm:$0xff]  }
  0x21   : > { %v3265_v52 = vld [vmem:[%s3334_s23 + $0x1c0] sm:$0xff]   ;;  %v3267_v54 = vld [vmem:[%s3334_s23 + $0x1c8] sm:$0xff]   ;;  %v3269_v56 = vld [vmem:[%s3334_s23 + $0x1d0] sm:$0xff]  }
  0x22   : > { %3080 = vmatmul.mubr.msk.bf16.gmra.mrb[8].mxu0 %vm644_vm0, %v3226_v13  ;;  %v3270_v57 = vld [vmem:[%s3334_s23 + $0xd8] sm:$0xff]   ;;  %v3272_v59 = vld [vmem:[%s3334_s23 + $0xe0] sm:$0xff]   ;;  %v3274_v61 = vld [vmem:[%s3334_s23 + $0xe8] sm:$0xff]  }
  0x23   : > { %3144 = vmatmul.mubr.msk.bf16.gmra.mrb[8].mxu1 %vm644_vm0, %v3227_v14  ;;  %3083 = vmatprep.mubr.msk.bf16.mxu0 %vm644_vm0, %v3228_v15  ;;  %v3271_v58 = vld [vmem:[%s3334_s23 + $0x1d8] sm:$0xff]   ;;  %v3273_v60 = vld [vmem:[%s3334_s23 + $0x1e0] sm:$0xff]   ;;  %v3275_v62 = vld [vmem:[%s3334_s23 + $0x1e8] sm:$0xff]  }
  0x24   : > { %3147 = vmatprep.mubr.msk.bf16.mxu1 %vm644_vm0, %v3229_v16  ;;  %v3276_v63 = vld [vmem:[%s3334_s23 + $0xf0] sm:$0xff]   ;;  %v3278_v1 = vld [vmem:[%s3334_s23 + $0xf8] sm:$0xff]   ;;  %v3467_v3 = vld [vmem:[%s4145_s2] ss:$0 sm:$0xff] }
  0x25   : > { %v3277_v0 = vld [vmem:[%s3334_s23 + $0x1f0] sm:$0xff]   ;;  %v3279_v2 = vld [vmem:[%s3334_s23 + $0x1f8] sm:$0xff]  }
  0x2a   : > { %3084 = vmatmul.mubr.msk.bf16.gmra.mrb[12].mxu0 %vm644_vm0, %v3230_v17 }
  0x2b   : > { %3148 = vmatmul.mubr.msk.bf16.gmra.mrb[12].mxu1 %vm644_vm0, %v3231_v18  ;;  %3087 = vmatprep.mubr.msk.bf16.mxu0 %vm644_vm0, %v3232_v19 }
  0x2c   : > { %3151 = vmatprep.mubr.msk.bf16.mxu1 %vm644_vm0, %v3233_v20 }
  0x32   : > { %3088 = vmatmul.mubr.msk.bf16.gmra.mrb[16].mxu0 %vm644_vm0, %v3234_v21 }
  0x33   : > { %3152 = vmatmul.mubr.msk.bf16.gmra.mrb[16].mxu1 %vm644_vm0, %v3235_v22  ;;  %3091 = vmatprep.mubr.msk.bf16.mxu0 %vm644_vm0, %v3236_v23 }
  0x34   : > { %3155 = vmatprep.mubr.msk.bf16.mxu1 %vm644_vm0, %v3237_v24 }
  0x3a   : > { %3092 = vmatmul.mubr.msk.bf16.gmra.mrb[20].mxu0 %vm644_vm0, %v3238_v25 }
  0x3b   : > { %3156 = vmatmul.mubr.msk.bf16.gmra.mrb[20].mxu1 %vm644_vm0, %v3239_v26  ;;  %3095 = vmatprep.mubr.msk.bf16.mxu0 %vm644_vm0, %v3240_v27 }
  0x3c   : > { %3159 = vmatprep.mubr.msk.bf16.mxu1 %vm644_vm0, %v3241_v28 }
  0x42   : > { %3096 = vmatmul.mubr.msk.bf16.gmra.mrb[24].mxu0 %vm644_vm0, %v3242_v29 }
  0x43   : > { %3160 = vmatmul.mubr.msk.bf16.gmra.mrb[24].mxu1 %vm644_vm0, %v3243_v30  ;;  %3099 = vmatprep.mubr.msk.bf16.mxu0 %vm644_vm0, %v3244_v31 }
  0x44   : > { %3163 = vmatprep.mubr.msk.bf16.mxu1 %vm644_vm0, %v3245_v32 }
  0x4a   : > { %3100 = vmatmul.mubr.msk.bf16.gmra.mrb[28].mxu0 %vm644_vm0, %v3246_v33 }
  0x4b   : > { %3164 = vmatmul.mubr.msk.bf16.gmra.mrb[28].mxu1 %vm644_vm0, %v3247_v34  ;;  %3103 = vmatprep.mubr.msk.bf16.mxu0 %vm644_vm0, %v3248_v35 }
  0x4c   : > { %3167 = vmatprep.mubr.msk.bf16.mxu1 %vm644_vm0, %v3249_v36 }
  0x52   : > { %3104 = vmatmul.mubr.msk.bf16.gmra.mrb[32].mxu0 %vm644_vm0, %v3250_v37 }
  0x53   : > { %3168 = vmatmul.mubr.msk.bf16.gmra.mrb[32].mxu1 %vm644_vm0, %v3251_v38  ;;  %3107 = vmatprep.mubr.msk.bf16.mxu0 %vm644_vm0, %v3252_v39 }
  0x54   : > { %3171 = vmatprep.mubr.msk.bf16.mxu1 %vm644_vm0, %v3253_v40 }
  0x5a   : > { %3108 = vmatmul.mubr.msk.bf16.gmra.mrb[36].mxu0 %vm644_vm0, %v3254_v41 }
  0x5b   : > { %3172 = vmatmul.mubr.msk.bf16.gmra.mrb[36].mxu1 %vm644_vm0, %v3255_v42  ;;  %3111 = vmatprep.mubr.msk.bf16.mxu0 %vm644_vm0, %v3256_v43 }
  0x5c   : > { %3175 = vmatprep.mubr.msk.bf16.mxu1 %vm644_vm0, %v3257_v44 }
  0x62   : > { %3112 = vmatmul.mubr.msk.bf16.gmra.mrb[40].mxu0 %vm644_vm0, %v3258_v45 }
  0x63   : > { %3176 = vmatmul.mubr.msk.bf16.gmra.mrb[40].mxu1 %vm644_vm0, %v3259_v46  ;;  %3115 = vmatprep.mubr.msk.bf16.mxu0 %vm644_vm0, %v3260_v47 }
  0x64   : > { %3179 = vmatprep.mubr.msk.bf16.mxu1 %vm644_vm0, %v3261_v48 }
  0x6a   : > { %3116 = vmatmul.mubr.msk.bf16.gmra.mrb[44].mxu0 %vm644_vm0, %v3262_v49 }
  0x6b   : > { %3180 = vmatmul.mubr.msk.bf16.gmra.mrb[44].mxu1 %vm644_vm0, %v3263_v50  ;;  %3119 = vmatprep.mubr.msk.bf16.mxu0 %vm644_vm0, %v3264_v51 }
  0x6c   : > { %3183 = vmatprep.mubr.msk.bf16.mxu1 %vm644_vm0, %v3265_v52 }
  0x72   : > { %3120 = vmatmul.mubr.msk.bf16.gmra.mrb[48].mxu0 %vm644_vm0, %v3266_v53 }
  0x73   : > { %3184 = vmatmul.mubr.msk.bf16.gmra.mrb[48].mxu1 %vm644_vm0, %v3267_v54  ;;  %3123 = vmatprep.mubr.msk.bf16.mxu0 %vm644_vm0, %v3268_v55 }
  0x74   : > { %3187 = vmatprep.mubr.msk.bf16.mxu1 %vm644_vm0, %v3269_v56 }
  0x7a   : > { %3124 = vmatmul.mubr.msk.bf16.gmra.mrb[52].mxu0 %vm644_vm0, %v3270_v57 }
  0x7b   : > { %3188 = vmatmul.mubr.msk.bf16.gmra.mrb[52].mxu1 %vm644_vm0, %v3271_v58  ;;  %3127 = vmatprep.mubr.msk.bf16.mxu0 %vm644_vm0, %v3272_v59 }
  0x7c   : > { %3191 = vmatprep.mubr.msk.bf16.mxu1 %vm644_vm0, %v3273_v60 }
  0x82   : > { %3128 = vmatmul.mubr.msk.bf16.gmra.mrb[56].mxu0 %vm644_vm0, %v3274_v61 }
  0x83   : > { %3192 = vmatmul.mubr.msk.bf16.gmra.mrb[56].mxu1 %vm644_vm0, %v3275_v62  ;;  %3131 = vmatprep.mubr.msk.bf16.mxu0 %vm644_vm0, %v3276_v63 }
  0x84   : > { %3195 = vmatprep.mubr.msk.bf16.mxu1 %vm644_vm0, %v3277_v0 }
  0x8a   : > { %3132 = vmatmul.mubr.msk.bf16.gmra.mrb[60].mxu0 %vm644_vm0, %v3278_v1 }
  0x8b   : > { %3196 = vmatmul.mubr.msk.bf16.gmra.mrb[60].mxu1 %vm644_vm0, %v3279_v2 }
  0xe5   : > { %v3073_v4 = vpop.f32.mrb[0].mxu0 }
  0xe6   : > { %v3137_v5 = vpop.f32.mrb[0].mxu1  ;;  %v1391_v6 = vadd.f32 %v3073_v4, %v3467_v3  ;;  %v871_v8 = vpop.f32.mrb[1].mxu0 }
  0xe7   : > { %v1455_v7 = vadd.f32 %v3137_v5, %v3467_v3  ;;  %v1127_v9 = vpop.f32.mrb[1].mxu1  ;;  %v1389_v10 = vadd.f32 %v3467_v3, %v871_v8  ;;  %v3074_v12 = vpop.f32.mrb[2].mxu0 }
  0xe8   : > { %v1453_v11 = vadd.f32 %v3467_v3, %v1127_v9  ;;  %v3138_v13 = vpop.f32.mrb[2].mxu1  ;;  %vm1519_vm2 = vcmp.ge.f32.partialorder %v1391_v6, 0.0  ;;  %v1647_v14 = vmul.f32 0.2, %v1391_v6  ;;  %v1392_v20 = vadd.f32 %v3074_v12, %v3467_v3  ;;  %v874_v22 = vpop.f32.mrb[3].mxu0 }
  0xe9   : > { %vm1583_vm3 = vcmp.ge.f32.partialorder %v1455_v7, 0.0  ;;  %v1711_v15 = vmul.f32 0.2, %v1455_v7  ;;  %vm1517_vm4 = vcmp.ge.f32.partialorder %v1389_v10, 0.0  ;;  %v1645_v16 = vmul.f32 0.2, %v1389_v10 }
  0xea   : > { %vm1581_vm5 = vcmp.ge.f32.partialorder %v1453_v11, 0.0  ;;  %v1709_v17 = vmul.f32 0.2, %v1453_v11  ;;  %v1775_v18 = vsel %vm1519_vm2, %v1391_v6, %v1647_v14  ;;  %v1456_v21 = vadd.f32 %v3138_v13, %v3467_v3  ;;  %v1130_v23 = vpop.f32.mrb[3].mxu1 }
  0xeb   : > { %v1839_v19 = vsel %vm1583_vm3, %v1455_v7, %v1711_v15  ;;  %v2872_v24 = vpack.c.bf16 %v1775_v18, %v1775_v18  ;;  %v1773_v26 = vsel %vm1517_vm4, %v1389_v10, %v1645_v16  ;;  %vm1520_vm6 = vcmp.ge.f32.partialorder %v1392_v20, 0.0 }
  0xec   : > { %v2936_v25 = vpack.c.bf16 %v1839_v19, %v1839_v19  ;;  %v1837_v27 = vsel %vm1581_vm5, %v1453_v11, %v1709_v17  ;;  %v2870_v28 = vpack.c.bf16 %v1773_v26, %v1773_v26  ;;  %v1648_v30 = vmul.f32 0.2, %v1392_v20 }
  0xed   : > { %v2934_v29 = vpack.c.bf16 %v1837_v27, %v1837_v27  ;;  %2416 = vst.msk [vmem:[%s3478_s28 + $0x8] sm:$0xf] %vm2413_vm1, %v2872_v24  ;;  %vm1584_vm7 = vcmp.ge.f32.partialorder %v1456_v21, 0.0  ;;  %v1712_v31 = vmul.f32 0.2, %v1456_v21  ;;  %v1390_v32 = vadd.f32 %v3467_v3, %v874_v22  ;;  %v3077_v34 = vpop.f32.mrb[4].mxu0 }
  0xee   : > { %2480 = vst.msk [vmem:[%s3478_s28 + $0x108] sm:$0xf] %vm2413_vm1, %v2936_v25  ;;  %v1454_v33 = vadd.f32 %v3467_v3, %v1130_v23  ;;  %v3141_v35 = vpop.f32.mrb[4].mxu1  ;;  %2414 = vst.msk [vmem:[%s3478_s28] sm:$0xf] %vm2413_vm1, %v2870_v28  ;;  %v1776_v36 = vsel %vm1520_vm6, %v1392_v20, %v1648_v30  ;;  %v1395_v37 = vadd.f32 %v3077_v34, %v3467_v3  ;;  %v887_v39 = vpop.f32.mrb[5].mxu0 }
  0xef   : > { %2478 = vst.msk [vmem:[%s3478_s28 + $0x100] sm:$0xf] %vm2413_vm1, %v2934_v29  ;;  %v1459_v38 = vadd.f32 %v3141_v35, %v3467_v3  ;;  %v1143_v40 = vpop.f32.mrb[5].mxu1  ;;  %v2873_v41 = vpack.c.bf16 %v1776_v36, %v1776_v36  ;;  %v1840_v42 = vsel %vm1584_vm7, %v1456_v21, %v1712_v31  ;;  %vm1518_vm8 = vcmp.ge.f32.partialorder %v1390_v32, 0.0  ;;  %v3078_v44 = vpop.f32.mrb[6].mxu0 }
  0xf0   : > { %v1646_v43 = vmul.f32 0.2, %v1390_v32  ;;  %v3142_v45 = vpop.f32.mrb[6].mxu1  ;;  %v2937_v46 = vpack.c.bf16 %v1840_v42, %v1840_v42  ;;  %vm1582_vm9 = vcmp.ge.f32.partialorder %v1454_v33, 0.0  ;;  %v1710_v47 = vmul.f32 0.2, %v1454_v33 }
  0xf1   : > { %vm1523_vm10 = vcmp.ge.f32.partialorder %v1395_v37, 0.0  ;;  %v890_v48 = vpop.f32.mrb[7].mxu0  ;;  %v1146_v49 = vpop.f32.mrb[7].mxu1  ;;  %2417 = vst.msk [vmem:[%s3478_s28 + $0xc] sm:$0xf] %vm2413_vm1, %v2873_v41  ;;  %vm1587_vm11 = vcmp.ge.f32.partialorder %v1459_v38, 0.0  ;;  %v1393_v55 = vadd.f32 %v3467_v3, %v887_v39  ;;  %v1457_v56 = vadd.f32 %v3467_v3, %v1143_v40 }
  0xf2   : > { %v1774_v50 = vsel %vm1518_vm8, %v1390_v32, %v1646_v43  ;;  %v1651_v51 = vmul.f32 0.2, %v1395_v37  ;;  %v1715_v52 = vmul.f32 0.2, %v1459_v38  ;;  %2481 = vst.msk [vmem:[%s3478_s28 + $0x10c] sm:$0xf] %vm2413_vm1, %v2937_v46  ;;  %v1838_v54 = vsel %vm1582_vm9, %v1454_v33, %v1710_v47 }
  0xf3   : > { %v2871_v53 = vpack.c.bf16 %v1774_v50, %v1774_v50  ;;  %v2935_v57 = vpack.c.bf16 %v1838_v54, %v1838_v54  ;;  %v1396_v60 = vadd.f32 %v3078_v44, %v3467_v3  ;;  %vm1521_vm12 = vcmp.ge.f32.partialorder %v1393_v55, 0.0 }
  0xf4   : > { %v1779_v58 = vsel %vm1523_vm10, %v1395_v37, %v1651_v51  ;;  %v1843_v59 = vsel %vm1587_vm11, %v1459_v38, %v1715_v52  ;;  %v1649_v63 = vmul.f32 0.2, %v1393_v55  ;;  %vm1585_vm13 = vcmp.ge.f32.partialorder %v1457_v56, 0.0 }
  0xf5   : > { %2415 = vst.msk [vmem:[%s3478_s28 + $0x4] sm:$0xf] %vm2413_vm1, %v2871_v53  ;;  %v2876_v61 = vpack.c.bf16 %v1779_v58, %v1779_v58  ;;  %v2940_v62 = vpack.c.bf16 %v1843_v59, %v1843_v59  ;;  %2479 = vst.msk [vmem:[%s3478_s28 + $0x104] sm:$0xf] %vm2413_vm1, %v2935_v57  ;;  %v1713_v0 = vmul.f32 0.2, %v1457_v56  ;;  %v1460_v4 = vadd.f32 %v3142_v45, %v3467_v3 }
  0xf6   : > { %vm1524_vm14 = vcmp.ge.f32.partialorder %v1396_v60, 0.0  ;;  %v1652_v1 = vmul.f32 0.2, %v1396_v60  ;;  %v1777_v2 = vsel %vm1521_vm12, %v1393_v55, %v1649_v63  ;;  %v1394_v5 = vadd.f32 %v3467_v3, %v890_v48  ;;  %v3081_v7 = vpop.f32.mrb[8].mxu0  ;;  %v3145_v8 = vpop.f32.mrb[8].mxu1 }
  0xf7   : > { %2420 = vst.msk [vmem:[%s3478_s28 + $0x18] sm:$0xf] %vm2413_vm1, %v2876_v61  ;;  %2484 = vst.msk [vmem:[%s3478_s28 + $0x118] sm:$0xf] %vm2413_vm1, %v2940_v62  ;;  %v1458_v6 = vadd.f32 %v3467_v3, %v1146_v49  ;;  %v2874_v9 = vpack.c.bf16 %v1777_v2, %v1777_v2  ;;  %v1841_v10 = vsel %vm1585_vm13, %v1457_v56, %v1713_v0  ;;  %v903_v13 = vpop.f32.mrb[9].mxu0  ;;  %v1159_v14 = vpop.f32.mrb[9].mxu1 }
  0xf8   : > { %v1780_v11 = vsel %vm1524_vm14, %v1396_v60, %v1652_v1  ;;  %v1399_v12 = vadd.f32 %v3081_v7, %v3467_v3  ;;  %v2938_v15 = vpack.c.bf16 %v1841_v10, %v1841_v10  ;;  %vm1588_vm15 = vcmp.ge.f32.partialorder %v1460_v4, 0.0  ;;  %v3082_v18 = vpop.f32.mrb[10].mxu0  ;;  %v3146_v19 = vpop.f32.mrb[10].mxu1 }
  0xf9   : > { %v2877_v16 = vpack.c.bf16 %v1780_v11, %v1780_v11  ;;  %v1716_v17 = vmul.f32 0.2, %v1460_v4  ;;  %2418 = vst.msk [vmem:[%s3478_s28 + $0x10] sm:$0xf] %vm2413_vm1, %v2874_v9  ;;  %vm1522_vm0 = vcmp.ge.f32.partialorder %v1394_v5, 0.0  ;;  %vm1586_vm2 = vcmp.ge.f32.partialorder %v1458_v6, 0.0 }
  0xfa   : > { %v1650_v20 = vmul.f32 0.2, %v1394_v5  ;;  %v1714_v21 = vmul.f32 0.2, %v1458_v6  ;;  %2482 = vst.msk [vmem:[%s3478_s28 + $0x110] sm:$0xf] %vm2413_vm1, %v2938_v15  ;;  %v1463_v24 = vadd.f32 %v3145_v8, %v3467_v3  ;;  %v1397_v30 = vadd.f32 %v3467_v3, %v903_v13 }
  0xfb   : > { %2421 = vst.msk [vmem:[%s3478_s28 + $0x1c] sm:$0xf] %vm2413_vm1, %v2877_v16  ;;  %v1844_v22 = vsel %vm1588_vm15, %v1460_v4, %v1716_v17  ;;  %vm1527_vm3 = vcmp.ge.f32.partialorder %v1399_v12, 0.0  ;;  %v1655_v23 = vmul.f32 0.2, %v1399_v12  ;;  %v906_v25 = vpop.f32.mrb[11].mxu0  ;;  %v1461_v38 = vadd.f32 %v3467_v3, %v1159_v14 }
  0xfc   : > { %v1162_v26 = vpop.f32.mrb[11].mxu1  ;;  %v2941_v27 = vpack.c.bf16 %v1844_v22, %v1844_v22  ;;  %v1778_v28 = vsel %vm1522_vm0, %v1394_v5, %v1650_v20  ;;  %v1842_v29 = vsel %vm1586_vm2, %v1458_v6, %v1714_v21  ;;  %vm1591_vm4 = vcmp.ge.f32.partialorder %v1463_v24, 0.0 }
  0xfd   : > { %v2875_v31 = vpack.c.bf16 %v1778_v28, %v1778_v28  ;;  %v2939_v32 = vpack.c.bf16 %v1842_v29, %v1842_v29  ;;  %v1783_v33 = vsel %vm1527_vm3, %v1399_v12, %v1655_v23  ;;  %v1719_v35 = vmul.f32 0.2, %v1463_v24  ;;  %v3085_v37 = vpop.f32.mrb[12].mxu0 }
  0xfe   : > { %2485 = vst.msk [vmem:[%s3478_s28 + $0x11c] sm:$0xf] %vm2413_vm1, %v2941_v27  ;;  %v2880_v34 = vpack.c.bf16 %v1783_v33, %v1783_v33  ;;  %vm1525_vm5 = vcmp.ge.f32.partialorder %v1397_v30, 0.0  ;;  %v1653_v36 = vmul.f32 0.2, %v1397_v30  ;;  %v1400_v39 = vadd.f32 %v3082_v18, %v3467_v3  ;;  %v3149_v42 = vpop.f32.mrb[12].mxu1 }
  0xff   : > { %2419 = vst.msk [vmem:[%s3478_s28 + $0x14] sm:$0xf] %vm2413_vm1, %v2875_v31  ;;  %2483 = vst.msk [vmem:[%s3478_s28 + $0x114] sm:$0xf] %vm2413_vm1, %v2939_v32  ;;  %v1464_v40 = vadd.f32 %v3146_v19, %v3467_v3  ;;  %v1398_v41 = vadd.f32 %v3467_v3, %v906_v25  ;;  %v919_v43 = vpop.f32.mrb[13].mxu0  ;;  %v1847_v44 = vsel %vm1591_vm4, %v1463_v24, %v1719_v35  ;;  %v1175_v48 = vpop.f32.mrb[13].mxu1 }
 0x100   : > { %2424 = vst.msk [vmem:[%s3478_s28 + $0x28] sm:$0xf] %vm2413_vm1, %v2880_v34  ;;  %v1781_v45 = vsel %vm1525_vm5, %v1397_v30, %v1653_v36  ;;  %v1462_v46 = vadd.f32 %v3467_v3, %v1162_v26  ;;  %v1403_v47 = vadd.f32 %v3085_v37, %v3467_v3  ;;  %v3086_v49 = vpop.f32.mrb[14].mxu0  ;;  %v2944_v50 = vpack.c.bf16 %v1847_v44, %v1847_v44  ;;  %v3150_v53 = vpop.f32.mrb[14].mxu1 }
 0x101   : > { %v2878_v51 = vpack.c.bf16 %v1781_v45, %v1781_v45  ;;  %vm1589_vm6 = vcmp.ge.f32.partialorder %v1461_v38, 0.0  ;;  %v1717_v52 = vmul.f32 0.2, %v1461_v38  ;;  %v922_v54 = vpop.f32.mrb[15].mxu0  ;;  %vm1528_vm7 = vcmp.ge.f32.partialorder %v1400_v39, 0.0  ;;  %v1178_v59 = vpop.f32.mrb[15].mxu1 }
 0x102   : > { %v1656_v55 = vmul.f32 0.2, %v1400_v39  ;;  %vm1592_vm8 = vcmp.ge.f32.partialorder %v1464_v40, 0.0  ;;  %v1720_v56 = vmul.f32 0.2, %v1464_v40  ;;  %vm1526_vm9 = vcmp.ge.f32.partialorder %v1398_v41, 0.0 }
 0x103   : > { %2488 = vst.msk [vmem:[%s3478_s28 + $0x128] sm:$0xf] %vm2413_vm1, %v2944_v50  ;;  %2422 = vst.msk [vmem:[%s3478_s28 + $0x20] sm:$0xf] %vm2413_vm1, %v2878_v51  ;;  %v1845_v57 = vsel %vm1589_vm6, %v1461_v38, %v1717_v52  ;;  %v1654_v58 = vmul.f32 0.2, %v1398_v41  ;;  %v1467_v7 = vadd.f32 %v3149_v42, %v3467_v3  ;;  %v1401_v11 = vadd.f32 %v3467_v3, %v919_v43 }
 0x104   : > { %vm1590_vm10 = vcmp.ge.f32.partialorder %v1462_v46, 0.0  ;;  %v2942_v60 = vpack.c.bf16 %v1845_v57, %v1845_v57  ;;  %v1784_v61 = vsel %vm1528_vm7, %v1400_v39, %v1656_v55  ;;  %v1848_v62 = vsel %vm1592_vm8, %v1464_v40, %v1720_v56 }
 0x105   : > { %v1718_v63 = vmul.f32 0.2, %v1462_v46  ;;  %v2881_v0 = vpack.c.bf16 %v1784_v61, %v1784_v61  ;;  %v2945_v1 = vpack.c.bf16 %v1848_v62, %v1848_v62  ;;  %v1782_v2 = vsel %vm1526_vm9, %v1398_v41, %v1654_v58  ;;  %v3089_v8 = vpop.f32.mrb[16].mxu0 }
 0x106   : > { %vm1531_vm11 = vcmp.ge.f32.partialorder %v1403_v47, 0.0  ;;  %2486 = vst.msk [vmem:[%s3478_s28 + $0x120] sm:$0xf] %vm2413_vm1, %v2942_v60  ;;  %v2879_v4 = vpack.c.bf16 %v1782_v2, %v1782_v2  ;;  %v1659_v6 = vmul.f32 0.2, %v1403_v47  ;;  %v3153_v9 = vpop.f32.mrb[16].mxu1  ;;  %v1465_v12 = vadd.f32 %v3467_v3, %v1175_v48 }
 0x107   : > { %v1846_v5 = vsel %vm1590_vm10, %v1462_v46, %v1718_v63  ;;  %2425 = vst.msk [vmem:[%s3478_s28 + $0x2c] sm:$0xf] %vm2413_vm1, %v2881_v0  ;;  %2489 = vst.msk [vmem:[%s3478_s28 + $0x12c] sm:$0xf] %vm2413_vm1, %v2945_v1  ;;  %v1404_v13 = vadd.f32 %v3086_v49, %v3467_v3  ;;  %v935_v14 = vpop.f32.mrb[17].mxu0  ;;  %v1191_v15 = vpop.f32.mrb[17].mxu1  ;;  %v1468_v18 = vadd.f32 %v3150_v53, %v3467_v3 }
 0x108   : > { %v2943_v10 = vpack.c.bf16 %v1846_v5, %v1846_v5  ;;  %2423 = vst.msk [vmem:[%s3478_s28 + $0x24] sm:$0xf] %vm2413_vm1, %v2879_v4  ;;  %v1787_v16 = vsel %vm1531_vm11, %v1403_v47, %v1659_v6  ;;  %vm1595_vm12 = vcmp.ge.f32.partialorder %v1467_v7, 0.0  ;;  %v1723_v17 = vmul.f32 0.2, %v1467_v7  ;;  %v3554_v19 = vpop.f32.mrb[18].mxu0 }
 0x109   : > { %v3556_v20 = vpop.f32.mrb[18].mxu1  ;;  %v2884_v21 = vpack.c.bf16 %v1787_v16, %v1787_v16  ;;  %vm1529_vm13 = vcmp.ge.f32.partialorder %v1401_v11, 0.0  ;;  %v1657_v22 = vmul.f32 0.2, %v1401_v11  ;;  %vm1593_vm14 = vcmp.ge.f32.partialorder %v1465_v12, 0.0  ;;  %v3560_v23 = vpop.f32.mrb[19].mxu0 }
 0x10a   : > { %2487 = vst.msk [vmem:[%s3478_s28 + $0x124] sm:$0xf] %vm2413_vm1, %v2943_v10  ;;  %v3562_v24 = vpop.f32.mrb[19].mxu1  ;;  %v1851_v25 = vsel %vm1595_vm12, %v1467_v7, %v1723_v17  ;;  %v1721_v26 = vmul.f32 0.2, %v1465_v12  ;;  %vm1532_vm15 = vcmp.ge.f32.partialorder %v1404_v13, 0.0  ;;  %v1402_v34 = vadd.f32 %v3467_v3, %v922_v54 }
 0x10b   : > { %v1660_v27 = vmul.f32 0.2, %v1404_v13  ;;  %2428 = vst.msk [vmem:[%s3478_s28 + $0x38] sm:$0xf] %vm2413_vm1, %v2884_v21  ;;  %v2948_v28 = vpack.c.bf16 %v1851_v25, %v1851_v25  ;;  %v1785_v29 = vsel %vm1529_vm13, %v1401_v11, %v1657_v22  ;;  %vm1596_vm0 = vcmp.ge.f32.partialorder %v1468_v18, 0.0 }
 0x10c   : > { %v1724_v30 = vmul.f32 0.2, %v1468_v18  ;;  %v2882_v31 = vpack.c.bf16 %v1785_v29, %v1785_v29  ;;  %v1849_v32 = vsel %vm1593_vm14, %v1465_v12, %v1721_v26  ;;  %v1466_v38 = vadd.f32 %v3467_v3, %v1178_v59 }
 0x10d   : > { %v1788_v33 = vsel %vm1532_vm15, %v1404_v13, %v1660_v27  ;;  %2492 = vst.msk [vmem:[%s3478_s28 + $0x138] sm:$0xf] %vm2413_vm1, %v2948_v28  ;;  %v2946_v35 = vpack.c.bf16 %v1849_v32, %v1849_v32  ;;  %vm1530_vm2 = vcmp.ge.f32.partialorder %v1402_v34, 0.0  ;;  %v1658_v40 = vmul.f32 0.2, %v1402_v34  ;;  %v3093_v42 = vpop.f32.mrb[20].mxu0 }
 0x10e   : > { %v2885_v36 = vpack.c.bf16 %v1788_v33, %v1788_v33  ;;  %v1852_v37 = vsel %vm1596_vm0, %v1468_v18, %v1724_v30  ;;  %2426 = vst.msk [vmem:[%s3478_s28 + $0x30] sm:$0xf] %vm2413_vm1, %v2882_v31  ;;  %v1407_v41 = vadd.f32 %v3089_v8, %v3467_v3  ;;  %v3157_v43 = vpop.f32.mrb[20].mxu1  ;;  %vm1594_vm3 = vcmp.ge.f32.partialorder %v1466_v38, 0.0  ;;  %v951_v47 = vpop.f32.mrb[21].mxu0 }
 0x10f   : > { %v2949_v39 = vpack.c.bf16 %v1852_v37, %v1852_v37  ;;  %2490 = vst.msk [vmem:[%s3478_s28 + $0x130] sm:$0xf] %vm2413_vm1, %v2946_v35  ;;  %v1722_v44 = vmul.f32 0.2, %v1466_v38  ;;  %v1471_v45 = vadd.f32 %v3153_v9, %v3467_v3  ;;  %v1405_v46 = vadd.f32 %v3467_v3, %v935_v14  ;;  %v3579_v48 = vpop.f32.mrb[21].mxu1  ;;  %v3584_v52 = vpop.f32.mrb[22].mxu0 }
 0x110   : > { %2429 = vst.msk [vmem:[%s3478_s28 + $0x3c] sm:$0xf] %vm2413_vm1, %v2885_v36  ;;  %v1786_v49 = vsel %vm1530_vm2, %v1402_v34, %v1658_v40  ;;  %vm1535_vm4 = vcmp.ge.f32.partialorder %v1407_v41, 0.0  ;;  %v1663_v50 = vmul.f32 0.2, %v1407_v41  ;;  %v1469_v51 = vadd.f32 %v3467_v3, %v1191_v15  ;;  %v3586_v53 = vpop.f32.mrb[22].mxu1 }
 0x111   : > { %2493 = vst.msk [vmem:[%s3478_s28 + $0x13c] sm:$0xf] %vm2413_vm1, %v2949_v39  ;;  %v2883_v54 = vpack.c.bf16 %v1786_v49, %v1786_v49  ;;  %v1850_v55 = vsel %vm1594_vm3, %v1466_v38, %v1722_v44  ;;  %vm1599_vm5 = vcmp.ge.f32.partialorder %v1471_v45, 0.0  ;;  %v1727_v56 = vmul.f32 0.2, %v1471_v45  ;;  %v3588_v57 = vpop.f32.mrb[23].mxu0 }
 0x112   : > { %v3590_v58 = vpop.f32.mrb[23].mxu1  ;;  %v2947_v59 = vpack.c.bf16 %v1850_v55, %v1850_v55  ;;  %v1791_v60 = vsel %vm1535_vm4, %v1407_v41, %v1663_v50  ;;  %vm1533_vm6 = vcmp.ge.f32.partialorder %v1405_v46, 0.0  ;;  %v1661_v61 = vmul.f32 0.2, %v1405_v46 }
 0x113   : > { %2427 = vst.msk [vmem:[%s3478_s28 + $0x34] sm:$0xf] %vm2413_vm1, %v2883_v54  ;;  %v2888_v62 = vpack.c.bf16 %v1791_v60, %v1791_v60  ;;  %v1855_v63 = vsel %vm1599_vm5, %v1471_v45, %v1727_v56  ;;  %vm1597_vm7 = vcmp.ge.f32.partialorder %v1469_v51, 0.0  ;;  %v1725_v0 = vmul.f32 0.2, %v1469_v51 }
 0x114   : > { %2491 = vst.msk [vmem:[%s3478_s28 + $0x134] sm:$0xf] %vm2413_vm1, %v2947_v59  ;;  %v2952_v1 = vpack.c.bf16 %v1855_v63, %v1855_v63  ;;  %v1789_v2 = vsel %vm1533_vm6, %v1405_v46, %v1661_v61  ;;  %v1408_v4 = vadd.f32 %v3554_v19, %v3467_v3  ;;  %v1472_v5 = vadd.f32 %v3556_v20, %v3467_v3 }
 0x115   : > { %2432 = vst.msk [vmem:[%s3478_s28 + $0x48] sm:$0xf] %vm2413_vm1, %v2888_v62  ;;  %v2886_v6 = vpack.c.bf16 %v1789_v2, %v1789_v2  ;;  %v1853_v7 = vsel %vm1597_vm7, %v1469_v51, %v1725_v0  ;;  %v1406_v8 = vadd.f32 %v3467_v3, %v3560_v23  ;;  %v1470_v9 = vadd.f32 %v3467_v3, %v3562_v24  ;;  %v3608_v12 = vpop.f32.mrb[24].mxu0 }
 0x116   : > { %2496 = vst.msk [vmem:[%s3478_s28 + $0x148] sm:$0xf] %vm2413_vm1, %v2952_v1  ;;  %v2950_v10 = vpack.c.bf16 %v1853_v7, %v1853_v7  ;;  %vm1536_vm8 = vcmp.ge.f32.partialorder %v1408_v4, 0.0  ;;  %v1664_v11 = vmul.f32 0.2, %v1408_v4  ;;  %vm1600_vm9 = vcmp.ge.f32.partialorder %v1472_v5, 0.0 }
 0x117   : > { %v3610_v13 = vpop.f32.mrb[24].mxu1  ;;  %2430 = vst.msk [vmem:[%s3478_s28 + $0x40] sm:$0xf] %vm2413_vm1, %v2886_v6  ;;  %v1728_v14 = vmul.f32 0.2, %v1472_v5  ;;  %vm1534_vm10 = vcmp.ge.f32.partialorder %v1406_v8, 0.0  ;;  %v1411_v18 = vadd.f32 %v3093_v42, %v3467_v3  ;;  %v1475_v19 = vadd.f32 %v3157_v43, %v3467_v3 }
 0x118   : > { %v1662_v15 = vmul.f32 0.2, %v1406_v8  ;;  %vm1598_vm11 = vcmp.ge.f32.partialorder %v1470_v9, 0.0  ;;  %2494 = vst.msk [vmem:[%s3478_s28 + $0x140] sm:$0xf] %vm2413_vm1, %v2950_v10  ;;  %v1792_v16 = vsel %vm1536_vm8, %v1408_v4, %v1664_v11  ;;  %v3618_v20 = vpop.f32.mrb[25].mxu0  ;;  %v1409_v25 = vadd.f32 %v3467_v3, %v951_v47 }
 0x119   : > { %v1726_v17 = vmul.f32 0.2, %v1470_v9  ;;  %v3620_v21 = vpop.f32.mrb[25].mxu1  ;;  %v2889_v22 = vpack.c.bf16 %v1792_v16, %v1792_v16  ;;  %v1856_v23 = vsel %vm1600_vm9, %v1472_v5, %v1728_v14  ;;  %v3624_v26 = vpop.f32.mrb[26].mxu0  ;;  %vm1539_vm12 = vcmp.ge.f32.partialorder %v1411_v18, 0.0 }
 0x11a   : > { %v1790_v24 = vsel %vm1534_vm10, %v1406_v8, %v1662_v15  ;;  %v3626_v27 = vpop.f32.mrb[26].mxu1  ;;  %v2953_v28 = vpack.c.bf16 %v1856_v23, %v1856_v23  ;;  %v3629_v31 = vpop.f32.mrb[27].mxu0  ;;  %v1667_v34 = vmul.f32 0.2, %v1411_v18  ;;  %vm1603_vm13 = vcmp.ge.f32.partialorder %v1475_v19, 0.0 }
 0x11b   : > { %v2887_v29 = vpack.c.bf16 %v1790_v24, %v1790_v24  ;;  %v1854_v30 = vsel %vm1598_vm11, %v1470_v9, %v1726_v17  ;;  %v3631_v32 = vpop.f32.mrb[27].mxu1  ;;  %2433 = vst.msk [vmem:[%s3478_s28 + $0x4c] sm:$0xf] %vm2413_vm1, %v2889_v22  ;;  %v1731_v35 = vmul.f32 0.2, %v1475_v19  ;;  %vm1537_vm14 = vcmp.ge.f32.partialorder %v1409_v25, 0.0 }
 0x11c   : > { %v2951_v33 = vpack.c.bf16 %v1854_v30, %v1854_v30  ;;  %2497 = vst.msk [vmem:[%s3478_s28 + $0x14c] sm:$0xf] %vm2413_vm1, %v2953_v28  ;;  %v1665_v36 = vmul.f32 0.2, %v1409_v25  ;;  %v1473_v37 = vadd.f32 %v3467_v3, %v3579_v48  ;;  %v1412_v38 = vadd.f32 %v3584_v52, %v3467_v3 }
 0x11d   : > { %2431 = vst.msk [vmem:[%s3478_s28 + $0x44] sm:$0xf] %vm2413_vm1, %v2887_v29  ;;  %v1795_v39 = vsel %vm1539_vm12, %v1411_v18, %v1667_v34  ;;  %v1859_v40 = vsel %vm1603_vm13, %v1475_v19, %v1731_v35  ;;  %v1476_v41 = vadd.f32 %v3586_v53, %v3467_v3  ;;  %v1410_v42 = vadd.f32 %v3467_v3, %v3588_v57  ;;  %v3649_v46 = vpop.f32.mrb[28].mxu0 }
 0x11e   : > { %2495 = vst.msk [vmem:[%s3478_s28 + $0x144] sm:$0xf] %vm2413_vm1, %v2951_v33  ;;  %v2892_v43 = vpack.c.bf16 %v1795_v39, %v1795_v39  ;;  %v2956_v44 = vpack.c.bf16 %v1859_v40, %v1859_v40  ;;  %v1793_v45 = vsel %vm1537_vm14, %v1409_v25, %v1665_v36  ;;  %vm1601_vm15 = vcmp.ge.f32.partialorder %v1473_v37, 0.0  ;;  %v3651_v47 = vpop.f32.mrb[28].mxu1  ;;  %v3653_v51 = vpop.f32.mrb[29].mxu0 }
 0x11f   : > { %v2890_v48 = vpack.c.bf16 %v1793_v45, %v1793_v45  ;;  %v1729_v49 = vmul.f32 0.2, %v1473_v37  ;;  %vm1540_vm0 = vcmp.ge.f32.partialorder %v1412_v38, 0.0  ;;  %v1668_v50 = vmul.f32 0.2, %v1412_v38  ;;  %v3665_v59 = vpop.f32.mrb[29].mxu1 }
 0x120   : > { %2436 = vst.msk [vmem:[%s3478_s28 + $0x58] sm:$0xf] %vm2413_vm1, %v2892_v43  ;;  %2500 = vst.msk [vmem:[%s3478_s28 + $0x158] sm:$0xf] %vm2413_vm1, %v2956_v44  ;;  %vm1604_vm2 = vcmp.ge.f32.partialorder %v1476_v41, 0.0  ;;  %vm1538_vm3 = vcmp.ge.f32.partialorder %v1410_v42, 0.0  ;;  %v1474_v56 = vadd.f32 %v3467_v3, %v3590_v58  ;;  %v1415_v57 = vadd.f32 %v3608_v12, %v3467_v3 }
 0x121   : > { %v1732_v52 = vmul.f32 0.2, %v1476_v41  ;;  %v1666_v53 = vmul.f32 0.2, %v1410_v42  ;;  %2434 = vst.msk [vmem:[%s3478_s28 + $0x50] sm:$0xf] %vm2413_vm1, %v2890_v48  ;;  %v1857_v54 = vsel %vm1601_vm15, %v1473_v37, %v1729_v49  ;;  %v1796_v55 = vsel %vm1540_vm0, %v1412_v38, %v1668_v50 }
 0x122   : > { %v3667_v60 = vpop.f32.mrb[30].mxu0  ;;  %v2954_v61 = vpack.c.bf16 %v1857_v54, %v1857_v54  ;;  %v2893_v62 = vpack.c.bf16 %v1796_v55, %v1796_v55  ;;  %v3669_v1 = vpop.f32.mrb[30].mxu1  ;;  %vm1602_vm4 = vcmp.ge.f32.partialorder %v1474_v56, 0.0  ;;  %v1730_v5 = vmul.f32 0.2, %v1474_v56 }
 0x123   : > { %v1860_v63 = vsel %vm1604_vm2, %v1476_v41, %v1732_v52  ;;  %v1794_v0 = vsel %vm1538_vm3, %v1410_v42, %v1666_v53  ;;  %v3671_v2 = vpop.f32.mrb[31].mxu0  ;;  %v3673_v6 = vpop.f32.mrb[31].mxu1  ;;  %vm1543_vm5 = vcmp.ge.f32.partialorder %v1415_v57, 0.0  ;;  %v1671_v7 = vmul.f32 0.2, %v1415_v57 }
 0x124   : > { %v2957_v4 = vpack.c.bf16 %v1860_v63, %v1860_v63  ;;  %v2891_v58 = vpack.c.bf16 %v1794_v0, %v1794_v0  ;;  %2498 = vst.msk [vmem:[%s3478_s28 + $0x150] sm:$0xf] %vm2413_vm1, %v2954_v61  ;;  %2437 = vst.msk [vmem:[%s3478_s28 + $0x5c] sm:$0xf] %vm2413_vm1, %v2893_v62  ;;  %v1479_v8 = vadd.f32 %v3610_v13, %v3467_v3 }
 0x125   : > { %v1413_v9 = vadd.f32 %v3467_v3, %v3618_v20  ;;  %v1858_v10 = vsel %vm1602_vm4, %v1474_v56, %v1730_v5  ;;  %v1477_v11 = vadd.f32 %v3467_v3, %v3620_v21  ;;  %v1416_v12 = vadd.f32 %v3624_v26, %v3467_v3  ;;  %v3693_v17 = vpop.f32.mrb[32].mxu0 }
 0x126   : > { %2501 = vst.msk [vmem:[%s3478_s28 + $0x15c] sm:$0xf] %vm2413_vm1, %v2957_v4  ;;  %2435 = vst.msk [vmem:[%s3478_s28 + $0x54] sm:$0xf] %vm2413_vm1, %v2891_v58  ;;  %v1480_v14 = vadd.f32 %v3626_v27, %v3467_v3  ;;  %v2955_v15 = vpack.c.bf16 %v1858_v10, %v1858_v10  ;;  %v1799_v13 = vsel %vm1543_vm5, %v1415_v57, %v1671_v7  ;;  %vm1607_vm6 = vcmp.ge.f32.partialorder %v1479_v8, 0.0  ;;  %v3695_v18 = vpop.f32.mrb[32].mxu1 }
 0x127   : > { %v1735_v16 = vmul.f32 0.2, %v1479_v8  ;;  %v2896_v19 = vpack.c.bf16 %v1799_v13, %v1799_v13  ;;  %vm1541_vm7 = vcmp.ge.f32.partialorder %v1413_v9, 0.0  ;;  %v1669_v20 = vmul.f32 0.2, %v1413_v9  ;;  %v3697_v21 = vpop.f32.mrb[33].mxu0 }
 0x128   : > { %vm1605_vm8 = vcmp.ge.f32.partialorder %v1477_v11, 0.0  ;;  %v3699_v22 = vpop.f32.mrb[33].mxu1  ;;  %2499 = vst.msk [vmem:[%s3478_s28 + $0x154] sm:$0xf] %vm2413_vm1, %v2955_v15  ;;  %v1733_v24 = vmul.f32 0.2, %v1477_v11  ;;  %v1414_v37 = vadd.f32 %v3467_v3, %v3629_v31  ;;  %v1478_v42 = vadd.f32 %v3467_v3, %v3631_v32 }
 0x129   : > { %v1863_v23 = vsel %vm1607_vm6, %v1479_v8, %v1735_v16  ;;  %vm1544_vm9 = vcmp.ge.f32.partialorder %v1416_v12, 0.0  ;;  %v1672_v25 = vmul.f32 0.2, %v1416_v12  ;;  %v3703_v26 = vpop.f32.mrb[34].mxu0  ;;  %2440 = vst.msk [vmem:[%s3478_s28 + $0x68] sm:$0xf] %vm2413_vm1, %v2896_v19  ;;  %v1797_v28 = vsel %vm1541_vm7, %v1413_v9, %v1669_v20 }
 0x12a   : > { %v2960_v27 = vpack.c.bf16 %v1863_v23, %v1863_v23  ;;  %vm1608_vm10 = vcmp.ge.f32.partialorder %v1480_v14, 0.0  ;;  %v1736_v29 = vmul.f32 0.2, %v1480_v14  ;;  %v3707_v30 = vpop.f32.mrb[34].mxu1  ;;  %v3709_v33 = vpop.f32.mrb[35].mxu0  ;;  %v2894_v34 = vpack.c.bf16 %v1797_v28, %v1797_v28 }
 0x12b   : > { %v1861_v35 = vsel %vm1605_vm8, %v1477_v11, %v1733_v24  ;;  %v1800_v36 = vsel %vm1544_vm9, %v1416_v12, %v1672_v25  ;;  %v3714_v38 = vpop.f32.mrb[35].mxu1  ;;  %vm1542_vm11 = vcmp.ge.f32.partialorder %v1414_v37, 0.0  ;;  %v1670_v44 = vmul.f32 0.2, %v1414_v37 }
 0x12c   : > { %2504 = vst.msk [vmem:[%s3478_s28 + $0x168] sm:$0xf] %vm2413_vm1, %v2960_v27  ;;  %v2958_v39 = vpack.c.bf16 %v1861_v35, %v1861_v35  ;;  %v2897_v40 = vpack.c.bf16 %v1800_v36, %v1800_v36  ;;  %v1864_v41 = vsel %vm1608_vm10, %v1480_v14, %v1736_v29  ;;  %2438 = vst.msk [vmem:[%s3478_s28 + $0x60] sm:$0xf] %vm2413_vm1, %v2894_v34  ;;  %vm1606_vm12 = vcmp.ge.f32.partialorder %v1478_v42, 0.0 }
 0x12d   : > { %v2961_v43 = vpack.c.bf16 %v1864_v41, %v1864_v41  ;;  %v1419_v45 = vadd.f32 %v3649_v46, %v3467_v3  ;;  %v1734_v31 = vmul.f32 0.2, %v1478_v42  ;;  %v1483_v48 = vadd.f32 %v3651_v47, %v3467_v3  ;;  %v3736_v52 = vpop.f32.mrb[36].mxu0 }
 0x12e   : > { %2502 = vst.msk [vmem:[%s3478_s28 + $0x160] sm:$0xf] %vm2413_vm1, %v2958_v39  ;;  %2441 = vst.msk [vmem:[%s3478_s28 + $0x6c] sm:$0xf] %vm2413_vm1, %v2897_v40  ;;  %v1417_v32 = vadd.f32 %v3467_v3, %v3653_v51  ;;  %v1798_v49 = vsel %vm1542_vm11, %v1414_v37, %v1670_v44  ;;  %v1481_v46 = vadd.f32 %v3467_v3, %v3665_v59  ;;  %v3738_v53 = vpop.f32.mrb[36].mxu1  ;;  %v3740_v56 = vpop.f32.mrb[37].mxu0 }
 0x12f   : > { %2505 = vst.msk [vmem:[%s3478_s28 + $0x16c] sm:$0xf] %vm2413_vm1, %v2961_v43  ;;  %vm1547_vm13 = vcmp.ge.f32.partialorder %v1419_v45, 0.0  ;;  %v1675_v50 = vmul.f32 0.2, %v1419_v45  ;;  %v2895_v54 = vpack.c.bf16 %v1798_v49, %v1798_v49  ;;  %v1862_v55 = vsel %vm1606_vm12, %v1478_v42, %v1734_v31  ;;  %v3742_v51 = vpop.f32.mrb[37].mxu1 }
 0x130   : > { %vm1611_vm14 = vcmp.ge.f32.partialorder %v1483_v48, 0.0  ;;  %v1739_v47 = vmul.f32 0.2, %v1483_v48  ;;  %v2959_v57 = vpack.c.bf16 %v1862_v55, %v1862_v55  ;;  %vm1545_vm15 = vcmp.ge.f32.partialorder %v1417_v32, 0.0  ;;  %v3744_v63 = vpop.f32.mrb[38].mxu0  ;;  %v3746_v59 = vpop.f32.mrb[38].mxu1 }
 0x131   : > { %v1803_v61 = vsel %vm1547_vm13, %v1419_v45, %v1675_v50  ;;  %v1673_v62 = vmul.f32 0.2, %v1417_v32  ;;  %2439 = vst.msk [vmem:[%s3478_s28 + $0x64] sm:$0xf] %vm2413_vm1, %v2895_v54  ;;  %vm1609_vm0 = vcmp.ge.f32.partialorder %v1481_v46, 0.0  ;;  %v3750_v5 = vpop.f32.mrb[39].mxu0  ;;  %v1420_v10 = vadd.f32 %v3667_v60, %v3467_v3 }
 0x132   : > { %v2900_v0 = vpack.c.bf16 %v1803_v61, %v1803_v61  ;;  %v1867_v4 = vsel %vm1611_vm14, %v1483_v48, %v1739_v47  ;;  %v1737_v58 = vmul.f32 0.2, %v1481_v46  ;;  %v3752_v7 = vpop.f32.mrb[39].mxu1  ;;  %2503 = vst.msk [vmem:[%s3478_s28 + $0x164] sm:$0xf] %vm2413_vm1, %v2959_v57  ;;  %v1484_v11 = vadd.f32 %v3669_v1, %v3467_v3 }
 0x133   : > { %v2964_v8 = vpack.c.bf16 %v1867_v4, %v1867_v4  ;;  %v1801_v9 = vsel %vm1545_vm15, %v1417_v32, %v1673_v62  ;;  %v1418_v15 = vadd.f32 %v3467_v3, %v3671_v2  ;;  %v1482_v13 = vadd.f32 %v3467_v3, %v3673_v6 }
 0x134   : > { %2444 = vst.msk [vmem:[%s3478_s28 + $0x78] sm:$0xf] %vm2413_vm1, %v2900_v0  ;;  %v2898_v12 = vpack.c.bf16 %v1801_v9, %v1801_v9  ;;  %v1865_v14 = vsel %vm1609_vm0, %v1481_v46, %v1737_v58  ;;  %vm1548_vm2 = vcmp.ge.f32.partialorder %v1420_v10, 0.0  ;;  %v1676_v19 = vmul.f32 0.2, %v1420_v10 }
 0x135   : > { %2508 = vst.msk [vmem:[%s3478_s28 + $0x178] sm:$0xf] %vm2413_vm1, %v2964_v8  ;;  %v2962_v16 = vpack.c.bf16 %v1865_v14, %v1865_v14  ;;  %vm1612_vm3 = vcmp.ge.f32.partialorder %v1484_v11, 0.0  ;;  %v1740_v60 = vmul.f32 0.2, %v1484_v11  ;;  %vm1546_vm4 = vcmp.ge.f32.partialorder %v1418_v15, 0.0 }
 0x136   : > { %2442 = vst.msk [vmem:[%s3478_s28 + $0x70] sm:$0xf] %vm2413_vm1, %v2898_v12  ;;  %v1674_v1 = vmul.f32 0.2, %v1418_v15  ;;  %vm1610_vm5 = vcmp.ge.f32.partialorder %v1482_v13, 0.0  ;;  %v1804_v20 = vsel %vm1548_vm2, %v1420_v10, %v1676_v19  ;;  %v1423_v2 = vadd.f32 %v3693_v17, %v3467_v3  ;;  %v3776_v24 = vpop.f32.mrb[40].mxu0 }
 0x137   : > { %2506 = vst.msk [vmem:[%s3478_s28 + $0x170] sm:$0xf] %vm2413_vm1, %v2962_v16  ;;  %v1738_v23 = vmul.f32 0.2, %v1482_v13  ;;  %v1487_v6 = vadd.f32 %v3695_v18, %v3467_v3  ;;  %v3778_v25 = vpop.f32.mrb[40].mxu1  ;;  %v2901_v27 = vpack.c.bf16 %v1804_v20, %v1804_v20  ;;  %v1868_v28 = vsel %vm1612_vm3, %v1484_v11, %v1740_v60  ;;  %v3782_v35 = vpop.f32.mrb[41].mxu0 }
 0x138   : > { %v1802_v29 = vsel %vm1546_vm4, %v1418_v15, %v1674_v1  ;;  %v1421_v34 = vadd.f32 %v3467_v3, %v3697_v21  ;;  %v3784_v36 = vpop.f32.mrb[41].mxu1  ;;  %v2965_v17 = vpack.c.bf16 %v1868_v28, %v1868_v28  ;;  %vm1551_vm6 = vcmp.ge.f32.partialorder %v1423_v2, 0.0  ;;  %v3787_v39 = vpop.f32.mrb[42].mxu0  ;;  %v3841_v60 = vld [vmem:[%s4145_s2] ss:$0 sm:$0xff] }
 0x139   : > { %v2899_v37 = vpack.c.bf16 %v1802_v29, %v1802_v29  ;;  %v1866_v18 = vsel %vm1610_vm5, %v1482_v13, %v1738_v23  ;;  %v3789_v40 = vpop.f32.mrb[42].mxu1  ;;  %2445 = vst.msk [vmem:[%s3478_s28 + $0x7c] sm:$0xf] %vm2413_vm1, %v2901_v27  ;;  %v1679_v42 = vmul.f32 0.2, %v1423_v2  ;;  %vm1615_vm7 = vcmp.ge.f32.partialorder %v1487_v6, 0.0 }
 0x13a   : > { %v2963_v41 = vpack.c.bf16 %v1866_v18, %v1866_v18  ;;  %v1743_v21 = vmul.f32 0.2, %v1487_v6  ;;  %v3793_v43 = vpop.f32.mrb[43].mxu0  ;;  %2509 = vst.msk [vmem:[%s3478_s28 + $0x17c] sm:$0xf] %vm2413_vm1, %v2965_v17  ;;  %vm1549_vm8 = vcmp.ge.f32.partialorder %v1421_v34, 0.0  ;;  %v1485_v45 = vadd.f32 %v3467_v3, %v3699_v22 }
 0x13b   : > { %2443 = vst.msk [vmem:[%s3478_s28 + $0x74] sm:$0xf] %vm2413_vm1, %v2899_v37  ;;  %v1677_v44 = vmul.f32 0.2, %v1421_v34  ;;  %v1424_v31 = vadd.f32 %v3703_v26, %v3467_v3  ;;  %v3803_v48 = vpop.f32.mrb[43].mxu1  ;;  %v1807_v32 = vsel %vm1551_vm6, %v1423_v2, %v1679_v42  ;;  %v1488_v50 = vadd.f32 %v3707_v30, %v3467_v3 }
 0x13c   : > { %2507 = vst.msk [vmem:[%s3478_s28 + $0x174] sm:$0xf] %vm2413_vm1, %v2963_v41  ;;  %v1871_v49 = vsel %vm1615_vm7, %v1487_v6, %v1743_v21  ;;  %v1422_v46 = vadd.f32 %v3467_v3, %v3709_v33  ;;  %v2904_v22 = vpack.c.bf16 %v1807_v32, %v1807_v32  ;;  %vm1613_vm9 = vcmp.ge.f32.partialorder %v1485_v45, 0.0 }
 0x13d   : > { %v2968_v54 = vpack.c.bf16 %v1871_v49, %v1871_v49  ;;  %v1805_v55 = vsel %vm1549_vm8, %v1421_v34, %v1677_v44  ;;  %v1741_v47 = vmul.f32 0.2, %v1485_v45  ;;  %vm1552_vm10 = vcmp.ge.f32.partialorder %v1424_v31, 0.0  ;;  %v3822_v58 = vpop.f32.mrb[44].mxu0 }
 0x13e   : > { %v2902_v26 = vpack.c.bf16 %v1805_v55, %v1805_v55  ;;  %v1680_v57 = vmul.f32 0.2, %v1424_v31  ;;  %2448 = vst.msk [vmem:[%s3478_s28 + $0x88] sm:$0xf] %vm2413_vm1, %v2904_v22  ;;  %vm1616_vm11 = vcmp.ge.f32.partialorder %v1488_v50, 0.0  ;;  %vm1550_vm12 = vcmp.ge.f32.partialorder %v1422_v46, 0.0 }
 0x13f   : > { %2512 = vst.msk [vmem:[%s3478_s28 + $0x188] sm:$0xf] %vm2413_vm1, %v2968_v54  ;;  %v1744_v61 = vmul.f32 0.2, %v1488_v50  ;;  %v1678_v30 = vmul.f32 0.2, %v1422_v46  ;;  %v1869_v62 = vsel %vm1613_vm9, %v1485_v45, %v1741_v47  ;;  %v1486_v0 = vadd.f32 %v3467_v3, %v3714_v38 }
 0x140   : > { %2446 = vst.msk [vmem:[%s3478_s28 + $0x80] sm:$0xf] %vm2413_vm1, %v2902_v26  ;;  %v1808_v33 = vsel %vm1552_vm10, %v1424_v31, %v1680_v57  ;;  %v1427_v4 = vadd.f32 %v3736_v52, %v3467_v3  ;;  %v3824_v8 = vpop.f32.mrb[44].mxu1  ;;  %v2966_v9 = vpack.c.bf16 %v1869_v62, %v1869_v62  ;;  %v3826_v14 = vpop.f32.mrb[45].mxu0  ;;  %v1491_v1 = vadd.f32 %v3841_v60, %v3738_v53 }
 0x141   : > { %v2905_v10 = vpack.c.bf16 %v1808_v33, %v1808_v33  ;;  %v1872_v11 = vsel %vm1616_vm11, %v1488_v50, %v1744_v61  ;;  %v1806_v12 = vsel %vm1550_vm12, %v1422_v46, %v1678_v30  ;;  %v3828_v15 = vpop.f32.mrb[45].mxu1  ;;  %vm1614_vm13 = vcmp.ge.f32.partialorder %v1486_v0, 0.0  ;;  %v3830_v3 = vpop.f32.mrb[46].mxu0 }
 0x142   : > { %v2969_v13 = vpack.c.bf16 %v1872_v11, %v1872_v11  ;;  %v2903_v38 = vpack.c.bf16 %v1806_v12, %v1806_v12  ;;  %v1742_v16 = vmul.f32 0.2, %v1486_v0  ;;  %v3832_v52 = vpop.f32.mrb[46].mxu1  ;;  %2510 = vst.msk [vmem:[%s3478_s28 + $0x180] sm:$0xf] %vm2413_vm1, %v2966_v9  ;;  %vm1555_vm14 = vcmp.ge.f32.partialorder %v1427_v4, 0.0 }
 0x143   : > { %2449 = vst.msk [vmem:[%s3478_s28 + $0x8c] sm:$0xf] %vm2413_vm1, %v2905_v10  ;;  %v1683_v19 = vmul.f32 0.2, %v1427_v4  ;;  %v1425_v20 = vadd.f32 %v3841_v60, %v3740_v56  ;;  %v3847_v23 = vpop.f32.mrb[47].mxu0  ;;  %v3849_v2 = vpop.f32.mrb[47].mxu1  ;;  %v1489_v27 = vadd.f32 %v3841_v60, %v3742_v51  ;;  %v1428_v28 = vadd.f32 %v3841_v60, %v3744_v63 }
 0x144   : > { %2513 = vst.msk [vmem:[%s3478_s28 + $0x18c] sm:$0xf] %vm2413_vm1, %v2969_v13  ;;  %2447 = vst.msk [vmem:[%s3478_s28 + $0x84] sm:$0xf] %vm2413_vm1, %v2903_v38  ;;  %v1870_v6 = vsel %vm1614_vm13, %v1486_v0, %v1742_v16  ;;  %v1492_v53 = vadd.f32 %v3841_v60, %v3746_v59  ;;  %vm1619_vm15 = vcmp.ge.f32.partialorder %v1491_v1, 0.0  ;;  %v1426_v50 = vadd.f32 %v3841_v60, %v3750_v5 }
 0x145   : > { %v2967_v56 = vpack.c.bf16 %v1870_v6, %v1870_v6  ;;  %v1811_v29 = vsel %vm1555_vm14, %v1427_v4, %v1683_v19  ;;  %v1747_v34 = vmul.f32 0.2, %v1491_v1  ;;  %vm1553_vm0 = vcmp.ge.f32.partialorder %v1425_v20, 0.0  ;;  %v3863_v63 = vpop.f32.mrb[48].mxu0 }
 0x146   : > { %v2908_v17 = vpack.c.bf16 %v1811_v29, %v1811_v29  ;;  %v1681_v37 = vmul.f32 0.2, %v1425_v20  ;;  %vm1617_vm2 = vcmp.ge.f32.partialorder %v1489_v27, 0.0  ;;  %v1745_v41 = vmul.f32 0.2, %v1489_v27  ;;  %v3867_v44 = vpop.f32.mrb[48].mxu1 }
 0x147   : > { %2511 = vst.msk [vmem:[%s3478_s28 + $0x184] sm:$0xf] %vm2413_vm1, %v2967_v56  ;;  %v1875_v18 = vsel %vm1619_vm15, %v1491_v1, %v1747_v34  ;;  %vm1556_vm3 = vcmp.ge.f32.partialorder %v1428_v28, 0.0  ;;  %v1684_v51 = vmul.f32 0.2, %v1428_v28  ;;  %vm1620_vm4 = vcmp.ge.f32.partialorder %v1492_v53, 0.0 }
 0x148   : > { %2452 = vst.msk [vmem:[%s3478_s28 + $0x98] sm:$0xf] %vm2413_vm1, %v2908_v17  ;;  %v2972_v59 = vpack.c.bf16 %v1875_v18, %v1875_v18  ;;  %v1809_v42 = vsel %vm1553_vm0, %v1425_v20, %v1681_v37  ;;  %v1748_v21 = vmul.f32 0.2, %v1492_v53  ;;  %v3869_v45 = vpop.f32.mrb[49].mxu0  ;;  %v1873_v32 = vsel %vm1617_vm2, %v1489_v27, %v1745_v41  ;;  %v3873_v46 = vpop.f32.mrb[49].mxu1 }
 0x149   : > { %v2906_v31 = vpack.c.bf16 %v1809_v42, %v1809_v42  ;;  %v1812_v49 = vsel %vm1556_vm3, %v1428_v28, %v1684_v51  ;;  %v3875_v22 = vpop.f32.mrb[50].mxu0  ;;  %v2970_v54 = vpack.c.bf16 %v1873_v32, %v1873_v32  ;;  %v1490_v47 = vadd.f32 %v3841_v60, %v3752_v7  ;;  %v3881_v57 = vpop.f32.mrb[50].mxu1 }
 0x14a   : > { %2516 = vst.msk [vmem:[%s3478_s28 + $0x198] sm:$0xf] %vm2413_vm1, %v2972_v59  ;;  %v2909_v55 = vpack.c.bf16 %v1812_v49, %v1812_v49  ;;  %v1876_v26 = vsel %vm1620_vm4, %v1492_v53, %v1748_v21  ;;  %v3883_v61 = vpop.f32.mrb[51].mxu0  ;;  %vm1554_vm5 = vcmp.ge.f32.partialorder %v1426_v50, 0.0  ;;  %v1682_v30 = vmul.f32 0.2, %v1426_v50 }
 0x14b   : > { %2450 = vst.msk [vmem:[%s3478_s28 + $0x90] sm:$0xf] %vm2413_vm1, %v2906_v31  ;;  %v2973_v5 = vpack.c.bf16 %v1876_v26, %v1876_v26  ;;  %v1431_v62 = vadd.f32 %v3841_v60, %v3776_v24  ;;  %v3889_v33 = vpop.f32.mrb[51].mxu1  ;;  %2514 = vst.msk [vmem:[%s3478_s28 + $0x190] sm:$0xf] %vm2413_vm1, %v2970_v54  ;;  %vm1618_vm6 = vcmp.ge.f32.partialorder %v1490_v47, 0.0  ;;  %v1495_v0 = vadd.f32 %v3841_v60, %v3778_v25 }
 0x14c   : > { %2453 = vst.msk [vmem:[%s3478_s28 + $0x9c] sm:$0xf] %vm2413_vm1, %v2909_v55  ;;  %v1746_v7 = vmul.f32 0.2, %v1490_v47  ;;  %v1429_v4 = vadd.f32 %v3841_v60, %v3782_v35  ;;  %v1810_v9 = vsel %vm1554_vm5, %v1426_v50, %v1682_v30  ;;  %v1493_v10 = vadd.f32 %v3841_v60, %v3784_v36 }
 0x14d   : > { %2517 = vst.msk [vmem:[%s3478_s28 + $0x19c] sm:$0xf] %vm2413_vm1, %v2973_v5  ;;  %vm1559_vm7 = vcmp.ge.f32.partialorder %v1431_v62, 0.0  ;;  %v1687_v24 = vmul.f32 0.2, %v1431_v62  ;;  %v2907_v11 = vpack.c.bf16 %v1810_v9, %v1810_v9  ;;  %vm1623_vm8 = vcmp.ge.f32.partialorder %v1495_v0, 0.0 }
 0x14e   : > { %v1874_v12 = vsel %vm1618_vm6, %v1490_v47, %v1746_v7  ;;  %v1751_v13 = vmul.f32 0.2, %v1495_v0  ;;  %vm1557_vm9 = vcmp.ge.f32.partialorder %v1429_v4, 0.0  ;;  %v1685_v25 = vmul.f32 0.2, %v1429_v4  ;;  %v3903_v19 = vpop.f32.mrb[52].mxu0 }
 0x14f   : > { %v2971_v38 = vpack.c.bf16 %v1874_v12, %v1874_v12  ;;  %v1815_v16 = vsel %vm1559_vm7, %v1431_v62, %v1687_v24  ;;  %v3905_v35 = vpop.f32.mrb[52].mxu1  ;;  %2451 = vst.msk [vmem:[%s3478_s28 + $0x94] sm:$0xf] %vm2413_vm1, %v2907_v11  ;;  %vm1621_vm10 = vcmp.ge.f32.partialorder %v1493_v10, 0.0  ;;  %v1749_v36 = vmul.f32 0.2, %v1493_v10 }
 0x150   : > { %v2912_v1 = vpack.c.bf16 %v1815_v16, %v1815_v16  ;;  %v1879_v20 = vsel %vm1623_vm8, %v1495_v0, %v1751_v13  ;;  %v3909_v6 = vpop.f32.mrb[53].mxu0  ;;  %v3911_v27 = vpop.f32.mrb[53].mxu1  ;;  %v1813_v53 = vsel %vm1557_vm9, %v1429_v4, %v1685_v25  ;;  %v1432_v56 = vadd.f32 %v3841_v60, %v3787_v39 }
 0x151   : > { %2515 = vst.msk [vmem:[%s3478_s28 + $0x194] sm:$0xf] %vm2413_vm1, %v2971_v38  ;;  %v2976_v28 = vpack.c.bf16 %v1879_v20, %v1879_v20  ;;  %v1496_v29 = vadd.f32 %v3841_v60, %v3789_v40  ;;  %v3919_v34 = vpop.f32.mrb[54].mxu0  ;;  %v3921_v17 = vpop.f32.mrb[54].mxu1  ;;  %v2910_v37 = vpack.c.bf16 %v1813_v53, %v1813_v53  ;;  %v1877_v18 = vsel %vm1621_vm10, %v1493_v10, %v1749_v36 }
 0x152   : > { %2456 = vst.msk [vmem:[%s3478_s28 + $0xa8] sm:$0xf] %vm2413_vm1, %v2912_v1  ;;  %v1430_v41 = vadd.f32 %v3841_v60, %v3793_v43  ;;  %v1494_v51 = vadd.f32 %v3841_v60, %v3803_v48  ;;  %v3929_v39 = vpop.f32.mrb[55].mxu0  ;;  %v3931_v59 = vpop.f32.mrb[55].mxu1  ;;  %v2974_v40 = vpack.c.bf16 %v1877_v18, %v1877_v18  ;;  %vm1560_vm11 = vcmp.ge.f32.partialorder %v1432_v56, 0.0 }
 0x153   : > { %2520 = vst.msk [vmem:[%s3478_s28 + $0x1a8] sm:$0xf] %vm2413_vm1, %v2976_v28  ;;  %v1688_v42 = vmul.f32 0.2, %v1432_v56  ;;  %vm1624_vm12 = vcmp.ge.f32.partialorder %v1496_v29, 0.0  ;;  %v1435_v32 = vadd.f32 %v3841_v60, %v3822_v58  ;;  %v1499_v49 = vadd.f32 %v3841_v60, %v3824_v8 }
 0x154   : > { %2454 = vst.msk [vmem:[%s3478_s28 + $0xa0] sm:$0xf] %vm2413_vm1, %v2910_v37  ;;  %v1752_v21 = vmul.f32 0.2, %v1496_v29  ;;  %vm1558_vm13 = vcmp.ge.f32.partialorder %v1430_v41, 0.0  ;;  %vm1622_vm14 = vcmp.ge.f32.partialorder %v1494_v51, 0.0  ;;  %v1433_v26 = vadd.f32 %v3841_v60, %v3826_v14 }
 0x155   : > { %v1686_v31 = vmul.f32 0.2, %v1430_v41  ;;  %2518 = vst.msk [vmem:[%s3478_s28 + $0x1a0] sm:$0xf] %vm2413_vm1, %v2974_v40  ;;  %v1816_v43 = vsel %vm1560_vm11, %v1432_v56, %v1688_v42  ;;  %v1750_v48 = vmul.f32 0.2, %v1494_v51  ;;  %v1497_v9 = vadd.f32 %v3841_v60, %v3828_v15 }
 0x156   : > { %v2913_v50 = vpack.c.bf16 %v1816_v43, %v1816_v43  ;;  %v1880_v54 = vsel %vm1624_vm12, %v1496_v29, %v1752_v21  ;;  %vm1563_vm15 = vcmp.ge.f32.partialorder %v1435_v32, 0.0  ;;  %v3945_v62 = vpop.f32.mrb[56].mxu0  ;;  %v3947_v7 = vpop.f32.mrb[56].mxu1  ;;  %v1691_v8 = vmul.f32 0.2, %v1435_v32 }
 0x157   : > { %v1814_v55 = vsel %vm1558_vm13, %v1430_v41, %v1686_v31  ;;  %v2977_v47 = vpack.c.bf16 %v1880_v54, %v1880_v54  ;;  %v1878_v30 = vsel %vm1622_vm14, %v1494_v51, %v1750_v48  ;;  %vm1627_vm0 = vcmp.ge.f32.partialorder %v1499_v49, 0.0  ;;  %v3951_v4 = vpop.f32.mrb[57].mxu0  ;;  %v3961_v10 = vpop.f32.mrb[57].mxu1 }
 0x158   : > { %v2911_v5 = vpack.c.bf16 %v1814_v55, %v1814_v55  ;;  %2457 = vst.msk [vmem:[%s3478_s28 + $0xac] sm:$0xf] %vm2413_vm1, %v2913_v50  ;;  %v2975_v58 = vpack.c.bf16 %v1878_v30, %v1878_v30  ;;  %v1755_v0 = vmul.f32 0.2, %v1499_v49  ;;  %vm1561_vm2 = vcmp.ge.f32.partialorder %v1433_v26, 0.0  ;;  %v3963_v11 = vpop.f32.mrb[58].mxu0 }
 0x159   : > { %2521 = vst.msk [vmem:[%s3478_s28 + $0x1ac] sm:$0xf] %vm2413_vm1, %v2977_v47  ;;  %v1689_v14 = vmul.f32 0.2, %v1433_v26  ;;  %v1436_v24 = vadd.f32 %v3841_v60, %v3830_v3  ;;  %v1819_v12 = vsel %vm1563_vm15, %v1435_v32, %v1691_v8  ;;  %v1500_v38 = vadd.f32 %v3841_v60, %v3832_v52  ;;  %v3972_v16 = vpop.f32.mrb[58].mxu1  ;;  %v3974_v3 = vpop.f32.mrb[59].mxu0 }
 0x15a   : > { %2455 = vst.msk [vmem:[%s3478_s28 + $0xa4] sm:$0xf] %vm2413_vm1, %v2911_v5  ;;  %2519 = vst.msk [vmem:[%s3478_s28 + $0x1a4] sm:$0xf] %vm2413_vm1, %v2975_v58  ;;  %v1883_v13 = vsel %vm1627_vm0, %v1499_v49, %v1755_v0  ;;  %v1434_v15 = vadd.f32 %v3841_v60, %v3847_v23  ;;  %v2916_v25 = vpack.c.bf16 %v1819_v12, %v1819_v12  ;;  %vm1625_vm3 = vcmp.ge.f32.partialorder %v1497_v9, 0.0  ;;  %v3976_v36 = vpop.f32.mrb[59].mxu1 }
 0x15b   : > { %v2980_v1 = vpack.c.bf16 %v1883_v13, %v1883_v13  ;;  %v1817_v20 = vsel %vm1561_vm2, %v1433_v26, %v1689_v14  ;;  %v1753_v53 = vmul.f32 0.2, %v1497_v9  ;;  %vm1564_vm4 = vcmp.ge.f32.partialorder %v1436_v24, 0.0 }
 0x15c   : > { %v2914_v28 = vpack.c.bf16 %v1817_v20, %v1817_v20  ;;  %v1692_v56 = vmul.f32 0.2, %v1436_v24  ;;  %2460 = vst.msk [vmem:[%s3478_s28 + $0xb8] sm:$0xf] %vm2413_vm1, %v2916_v25  ;;  %vm1628_vm5 = vcmp.ge.f32.partialorder %v1500_v38, 0.0  ;;  %vm1562_vm6 = vcmp.ge.f32.partialorder %v1434_v15, 0.0 }
 0x15d   : > { %2524 = vst.msk [vmem:[%s3478_s28 + $0x1b8] sm:$0xf] %vm2413_vm1, %v2980_v1  ;;  %v1756_v52 = vmul.f32 0.2, %v1500_v38  ;;  %v1690_v23 = vmul.f32 0.2, %v1434_v15  ;;  %v1881_v29 = vsel %vm1625_vm3, %v1497_v9, %v1753_v53  ;;  %v1498_v18 = vadd.f32 %v3841_v60, %v3849_v2 }
 0x15e   : > { %2458 = vst.msk [vmem:[%s3478_s28 + $0xb0] sm:$0xf] %vm2413_vm1, %v2914_v28  ;;  %v1820_v37 = vsel %vm1564_vm4, %v1436_v24, %v1692_v56  ;;  %v1439_v41 = vadd.f32 %v3841_v60, %v3863_v63  ;;  %v2978_v51 = vpack.c.bf16 %v1881_v29, %v1881_v29  ;;  %v3988_v31 = vpop.f32.mrb[60].mxu0  ;;  %v3990_v43 = vpop.f32.mrb[60].mxu1  ;;  %v1503_v54 = vadd.f32 %v3841_v60, %v3867_v44 }
 0x15f   : > { %v2917_v40 = vpack.c.bf16 %v1820_v37, %v1820_v37  ;;  %v1884_v42 = vsel %vm1628_vm5, %v1500_v38, %v1756_v52  ;;  %v1818_v21 = vsel %vm1562_vm6, %v1434_v15, %v1690_v23  ;;  %vm1626_vm7 = vcmp.ge.f32.partialorder %v1498_v18, 0.0  ;;  %v3992_v50 = vpop.f32.mrb[61].mxu0  ;;  %v3994_v2 = vpop.f32.mrb[61].mxu1 }
 0x160   : > { %v2981_v48 = vpack.c.bf16 %v1884_v42, %v1884_v42  ;;  %v2915_v32 = vpack.c.bf16 %v1818_v21, %v1818_v21  ;;  %v1754_v49 = vmul.f32 0.2, %v1498_v18  ;;  %2522 = vst.msk [vmem:[%s3478_s28 + $0x1b0] sm:$0xf] %vm2413_vm1, %v2978_v51  ;;  %vm1567_vm8 = vcmp.ge.f32.partialorder %v1439_v41, 0.0  ;;  %v4004_v26 = vpop.f32.mrb[62].mxu0 }
 0x161   : > { %2461 = vst.msk [vmem:[%s3478_s28 + $0xbc] sm:$0xf] %vm2413_vm1, %v2917_v40  ;;  %v1695_v63 = vmul.f32 0.2, %v1439_v41  ;;  %v1437_v55 = vadd.f32 %v3841_v60, %v3869_v45  ;;  %v4006_v47 = vpop.f32.mrb[62].mxu1  ;;  %v1501_v30 = vadd.f32 %v3841_v60, %v3873_v46  ;;  %v1440_v58 = vadd.f32 %v3841_v60, %v3875_v22  ;;  %v4018_v45 = vpop.f32.mrb[63].mxu0 }
 0x162   : > { %2525 = vst.msk [vmem:[%s3478_s28 + $0x1bc] sm:$0xf] %vm2413_vm1, %v2981_v48  ;;  %2459 = vst.msk [vmem:[%s3478_s28 + $0xb4] sm:$0xf] %vm2413_vm1, %v2915_v32  ;;  %v1882_v5 = vsel %vm1626_vm7, %v1498_v18, %v1754_v49  ;;  %v1504_v44 = vadd.f32 %v3841_v60, %v3881_v57  ;;  %v4020_v8 = vpop.f32.mrb[63].mxu1  ;;  %vm1631_vm9 = vcmp.ge.f32.partialorder %v1503_v54, 0.0  ;;  %v1438_v28 = vadd.f32 %v3841_v60, %v3883_v61 }
 0x163   : > { %v2979_v0 = vpack.c.bf16 %v1882_v5, %v1882_v5  ;;  %v1823_v14 = vsel %vm1567_vm8, %v1439_v41, %v1695_v63  ;;  %v1759_v9 = vmul.f32 0.2, %v1503_v54  ;;  %vm1565_vm10 = vcmp.ge.f32.partialorder %v1437_v55, 0.0 }
 0x164   : > { %v2920_v24 = vpack.c.bf16 %v1823_v14, %v1823_v14  ;;  %v1693_v12 = vmul.f32 0.2, %v1437_v55  ;;  %vm1629_vm11 = vcmp.ge.f32.partialorder %v1501_v30, 0.0  ;;  %v1757_v22 = vmul.f32 0.2, %v1501_v30 }
 0x165   : > { %2523 = vst.msk [vmem:[%s3478_s28 + $0x1b4] sm:$0xf] %vm2413_vm1, %v2979_v0  ;;  %v1887_v46 = vsel %vm1631_vm9, %v1503_v54, %v1759_v9  ;;  %vm1568_vm12 = vcmp.ge.f32.partialorder %v1440_v58, 0.0  ;;  %v1696_v57 = vmul.f32 0.2, %v1440_v58  ;;  %vm1632_vm13 = vcmp.ge.f32.partialorder %v1504_v44, 0.0 }
 0x166   : > { %2464 = vst.msk [vmem:[%s3478_s28 + $0xc8] sm:$0xf] %vm2413_vm1, %v2920_v24  ;;  %v2984_v13 = vpack.c.bf16 %v1887_v46, %v1887_v46  ;;  %v1821_v38 = vsel %vm1565_vm10, %v1437_v55, %v1693_v12  ;;  %v1760_v15 = vmul.f32 0.2, %v1504_v44  ;;  %v1885_v1 = vsel %vm1629_vm11, %v1501_v30, %v1757_v22 }
 0x167   : > { %v2918_v25 = vpack.c.bf16 %v1821_v38, %v1821_v38  ;;  %v1824_v20 = vsel %vm1568_vm12, %v1440_v58, %v1696_v57  ;;  %v2982_v53 = vpack.c.bf16 %v1885_v1, %v1885_v1  ;;  %v1502_v23 = vadd.f32 %v3841_v60, %v3889_v33 }
 0x168   : > { %2528 = vst.msk [vmem:[%s3478_s28 + $0x1c8] sm:$0xf] %vm2413_vm1, %v2984_v13  ;;  %v2921_v56 = vpack.c.bf16 %v1824_v20, %v1824_v20  ;;  %v1888_v52 = vsel %vm1632_vm13, %v1504_v44, %v1760_v15  ;;  %vm1566_vm14 = vcmp.ge.f32.partialorder %v1438_v28, 0.0  ;;  %v1694_v37 = vmul.f32 0.2, %v1438_v28 }
 0x169   : > { %2462 = vst.msk [vmem:[%s3478_s28 + $0xc0] sm:$0xf] %vm2413_vm1, %v2918_v25  ;;  %v2985_v29 = vpack.c.bf16 %v1888_v52, %v1888_v52  ;;  %v1443_v18 = vadd.f32 %v3841_v60, %v3903_v19  ;;  %2526 = vst.msk [vmem:[%s3478_s28 + $0x1c0] sm:$0xf] %vm2413_vm1, %v2982_v53  ;;  %vm1630_vm15 = vcmp.ge.f32.partialorder %v1502_v23, 0.0  ;;  %v1507_v41 = vadd.f32 %v3841_v60, %v3905_v35 }
 0x16a   : > { %2465 = vst.msk [vmem:[%s3478_s28 + $0xcc] sm:$0xf] %vm2413_vm1, %v2921_v56  ;;  %v1758_v61 = vmul.f32 0.2, %v1502_v23  ;;  %v1441_v33 = vadd.f32 %v3841_v60, %v3909_v6  ;;  %v1822_v51 = vsel %vm1566_vm14, %v1438_v28, %v1694_v37  ;;  %v1505_v19 = vadd.f32 %v3841_v60, %v3911_v27 }
 0x16b   : > { %2529 = vst.msk [vmem:[%s3478_s28 + $0x1cc] sm:$0xf] %vm2413_vm1, %v2985_v29  ;;  %vm1571_vm0 = vcmp.ge.f32.partialorder %v1443_v18, 0.0  ;;  %v1699_v40 = vmul.f32 0.2, %v1443_v18  ;;  %v2919_v42 = vpack.c.bf16 %v1822_v51, %v1822_v51  ;;  %vm1635_vm2 = vcmp.ge.f32.partialorder %v1507_v41, 0.0 }
 0x16c   : > { %v1886_v21 = vsel %vm1630_vm15, %v1502_v23, %v1758_v61  ;;  %v1763_v48 = vmul.f32 0.2, %v1507_v41  ;;  %vm1569_vm3 = vcmp.ge.f32.partialorder %v1441_v33, 0.0  ;;  %v1697_v35 = vmul.f32 0.2, %v1441_v33 }
 0x16d   : > { %v2983_v32 = vpack.c.bf16 %v1886_v21, %v1886_v21  ;;  %v1827_v49 = vsel %vm1571_vm0, %v1443_v18, %v1699_v40  ;;  %2463 = vst.msk [vmem:[%s3478_s28 + $0xc4] sm:$0xf] %vm2413_vm1, %v2919_v42  ;;  %vm1633_vm4 = vcmp.ge.f32.partialorder %v1505_v19, 0.0  ;;  %v1761_v54 = vmul.f32 0.2, %v1505_v19 }
 0x16e   : > { %v2924_v6 = vpack.c.bf16 %v1827_v49, %v1827_v49  ;;  %v1891_v63 = vsel %vm1635_vm2, %v1507_v41, %v1763_v48  ;;  %v1825_v55 = vsel %vm1569_vm3, %v1441_v33, %v1697_v35  ;;  %v1444_v5 = vadd.f32 %v3841_v60, %v3919_v34 }
 0x16f   : > { %2527 = vst.msk [vmem:[%s3478_s28 + $0x1c4] sm:$0xf] %vm2413_vm1, %v2983_v32  ;;  %v2988_v27 = vpack.c.bf16 %v1891_v63, %v1891_v63  ;;  %v1508_v30 = vadd.f32 %v3841_v60, %v3921_v17  ;;  %v2922_v58 = vpack.c.bf16 %v1825_v55, %v1825_v55  ;;  %v1889_v44 = vsel %vm1633_vm4, %v1505_v19, %v1761_v54 }
 0x170   : > { %2468 = vst.msk [vmem:[%s3478_s28 + $0xd8] sm:$0xf] %vm2413_vm1, %v2924_v6  ;;  %v1442_v0 = vadd.f32 %v3841_v60, %v3929_v39  ;;  %v1506_v14 = vadd.f32 %v3841_v60, %v3931_v59  ;;  %v2986_v9 = vpack.c.bf16 %v1889_v44, %v1889_v44  ;;  %vm1572_vm5 = vcmp.ge.f32.partialorder %v1444_v5, 0.0 }
 0x171   : > { %2532 = vst.msk [vmem:[%s3478_s28 + $0x1d8] sm:$0xf] %vm2413_vm1, %v2988_v27  ;;  %v1700_v24 = vmul.f32 0.2, %v1444_v5  ;;  %vm1636_vm6 = vcmp.ge.f32.partialorder %v1508_v30, 0.0  ;;  %v1447_v59 = vadd.f32 %v3841_v60, %v3945_v62  ;;  %v1511_v46 = vadd.f32 %v3841_v60, %v3947_v7 }
 0x172   : > { %2466 = vst.msk [vmem:[%s3478_s28 + $0xd0] sm:$0xf] %vm2413_vm1, %v2922_v58  ;;  %v1764_v34 = vmul.f32 0.2, %v1508_v30  ;;  %vm1570_vm7 = vcmp.ge.f32.partialorder %v1442_v0, 0.0  ;;  %vm1634_vm8 = vcmp.ge.f32.partialorder %v1506_v14, 0.0  ;;  %v1445_v38 = vadd.f32 %v3841_v60, %v3951_v4 }
 0x173   : > { %v1698_v17 = vmul.f32 0.2, %v1442_v0  ;;  %2530 = vst.msk [vmem:[%s3478_s28 + $0x1d0] sm:$0xf] %vm2413_vm1, %v2986_v9  ;;  %v1828_v12 = vsel %vm1572_vm5, %v1444_v5, %v1700_v24  ;;  %v1762_v39 = vmul.f32 0.2, %v1506_v14  ;;  %v1509_v4 = vadd.f32 %v3841_v60, %v3961_v10 }
 0x174   : > { %v2925_v22 = vpack.c.bf16 %v1828_v12, %v1828_v12  ;;  %v1892_v57 = vsel %vm1636_vm6, %v1508_v30, %v1764_v34  ;;  %vm1575_vm9 = vcmp.ge.f32.partialorder %v1447_v59, 0.0  ;;  %v1703_v28 = vmul.f32 0.2, %v1447_v59 }
 0x175   : > { %v1826_v13 = vsel %vm1570_vm7, %v1442_v0, %v1698_v17  ;;  %v2989_v15 = vpack.c.bf16 %v1892_v57, %v1892_v57  ;;  %v1890_v1 = vsel %vm1634_vm8, %v1506_v14, %v1762_v39  ;;  %vm1639_vm10 = vcmp.ge.f32.partialorder %v1511_v46, 0.0 }
 0x176   : > { %v2923_v25 = vpack.c.bf16 %v1826_v13, %v1826_v13  ;;  %2469 = vst.msk [vmem:[%s3478_s28 + $0xdc] sm:$0xf] %vm2413_vm1, %v2925_v22  ;;  %v2987_v20 = vpack.c.bf16 %v1890_v1, %v1890_v1  ;;  %v1767_v62 = vmul.f32 0.2, %v1511_v46  ;;  %vm1573_vm11 = vcmp.ge.f32.partialorder %v1445_v38, 0.0 }
 0x177   : > { %2533 = vst.msk [vmem:[%s3478_s28 + $0x1dc] sm:$0xf] %vm2413_vm1, %v2989_v15  ;;  %v1701_v7 = vmul.f32 0.2, %v1445_v38  ;;  %v1448_v53 = vadd.f32 %v3841_v60, %v3963_v11  ;;  %v1831_v56 = vsel %vm1575_vm9, %v1447_v59, %v1703_v28  ;;  %v1512_v23 = vadd.f32 %v3841_v60, %v3972_v16 }
 0x178   : > { %2467 = vst.msk [vmem:[%s3478_s28 + $0xd4] sm:$0xf] %vm2413_vm1, %v2923_v25  ;;  %2531 = vst.msk [vmem:[%s3478_s28 + $0x1d4] sm:$0xf] %vm2413_vm1, %v2987_v20  ;;  %v1895_v52 = vsel %vm1639_vm10, %v1511_v46, %v1767_v62  ;;  %v1446_v29 = vadd.f32 %v3841_v60, %v3974_v3  ;;  %v2928_v37 = vpack.c.bf16 %v1831_v56, %v1831_v56  ;;  %vm1637_vm12 = vcmp.ge.f32.partialorder %v1509_v4, 0.0 }
 0x179   : > { %v2992_v18 = vpack.c.bf16 %v1895_v52, %v1895_v52  ;;  %v1829_v61 = vsel %vm1573_vm11, %v1445_v38, %v1701_v7  ;;  %v1765_v41 = vmul.f32 0.2, %v1509_v4  ;;  %vm1576_vm13 = vcmp.ge.f32.partialorder %v1448_v53, 0.0 }
 0x17a   : > { %v2926_v10 = vpack.c.bf16 %v1829_v61, %v1829_v61  ;;  %v1704_v33 = vmul.f32 0.2, %v1448_v53  ;;  %2472 = vst.msk [vmem:[%s3478_s28 + $0xe8] sm:$0xf] %vm2413_vm1, %v2928_v37  ;;  %vm1640_vm14 = vcmp.ge.f32.partialorder %v1512_v23, 0.0  ;;  %vm1574_vm15 = vcmp.ge.f32.partialorder %v1446_v29, 0.0 }
 0x17b   : > { %2536 = vst.msk [vmem:[%s3478_s28 + $0x1e8] sm:$0xf] %vm2413_vm1, %v2992_v18  ;;  %v1768_v11 = vmul.f32 0.2, %v1512_v23  ;;  %v1702_v16 = vmul.f32 0.2, %v1446_v29  ;;  %v1893_v3 = vsel %vm1637_vm12, %v1509_v4, %v1765_v41  ;;  %v1510_v40 = vadd.f32 %v3841_v60, %v3976_v36 }
 0x17c   : > { %2470 = vst.msk [vmem:[%s3478_s28 + $0xe0] sm:$0xf] %vm2413_vm1, %v2926_v10  ;;  %v1832_v51 = vsel %vm1576_vm13, %v1448_v53, %v1704_v33  ;;  %v1451_v19 = vadd.f32 %v3841_v60, %v3988_v31  ;;  %v2990_v42 = vpack.c.bf16 %v1893_v3, %v1893_v3  ;;  %v1515_v36 = vadd.f32 %v3841_v60, %v3990_v43 }
 0x17d   : > { %v2929_v21 = vpack.c.bf16 %v1832_v51, %v1832_v51  ;;  %v1896_v48 = vsel %vm1640_vm14, %v1512_v23, %v1768_v11  ;;  %v1830_v32 = vsel %vm1574_vm15, %v1446_v29, %v1702_v16  ;;  %vm1638_vm0 = vcmp.ge.f32.partialorder %v1510_v40, 0.0 }
 0x17e   : > { %v2993_v49 = vpack.c.bf16 %v1896_v48, %v1896_v48  ;;  %v2927_v35 = vpack.c.bf16 %v1830_v32, %v1830_v32  ;;  %v1766_v6 = vmul.f32 0.2, %v1510_v40  ;;  %2534 = vst.msk [vmem:[%s3478_s28 + $0x1e0] sm:$0xf] %vm2413_vm1, %v2990_v42  ;;  %vm1579_vm2 = vcmp.ge.f32.partialorder %v1451_v19, 0.0 }
 0x17f   : > { %2473 = vst.msk [vmem:[%s3478_s28 + $0xec] sm:$0xf] %vm2413_vm1, %v2929_v21  ;;  %v1707_v63 = vmul.f32 0.2, %v1451_v19  ;;  %v1449_v31 = vadd.f32 %v3841_v60, %v3992_v50  ;;  %v1513_v27 = vadd.f32 %v3841_v60, %v3994_v2  ;;  %v1452_v55 = vadd.f32 %v3841_v60, %v4004_v26 }
 0x180   : > { %2537 = vst.msk [vmem:[%s3478_s28 + $0x1ec] sm:$0xf] %vm2413_vm1, %v2993_v49  ;;  %2471 = vst.msk [vmem:[%s3478_s28 + $0xe4] sm:$0xf] %vm2413_vm1, %v2927_v35  ;;  %v1894_v54 = vsel %vm1638_vm0, %v1510_v40, %v1766_v6  ;;  %v1516_v5 = vadd.f32 %v3841_v60, %v4006_v47  ;;  %vm1643_vm3 = vcmp.ge.f32.partialorder %v1515_v36, 0.0  ;;  %v1450_v12 = vadd.f32 %v3841_v60, %v4018_v45 }
 0x181   : > { %v2991_v43 = vpack.c.bf16 %v1894_v54, %v1894_v54  ;;  %v1835_v30 = vsel %vm1579_vm2, %v1451_v19, %v1707_v63  ;;  %v1771_v58 = vmul.f32 0.2, %v1515_v36  ;;  %vm1577_vm4 = vcmp.ge.f32.partialorder %v1449_v31, 0.0 }
 0x182   : > { %v2932_v50 = vpack.c.bf16 %v1835_v30, %v1835_v30  ;;  %v1705_v44 = vmul.f32 0.2, %v1449_v31  ;;  %vm1641_vm5 = vcmp.ge.f32.partialorder %v1513_v27, 0.0  ;;  %v1769_v2 = vmul.f32 0.2, %v1513_v27 }
 0x183   : > { %2535 = vst.msk [vmem:[%s3478_s28 + $0x1e4] sm:$0xf] %vm2413_vm1, %v2991_v43  ;;  %v1899_v0 = vsel %vm1643_vm3, %v1515_v36, %v1771_v58  ;;  %vm1580_vm6 = vcmp.ge.f32.partialorder %v1452_v55, 0.0  ;;  %v1708_v14 = vmul.f32 0.2, %v1452_v55  ;;  %vm1644_vm7 = vcmp.ge.f32.partialorder %v1516_v5, 0.0 }
 0x184   : > { %2476 = vst.msk [vmem:[%s3478_s28 + $0xf8] sm:$0xf] %vm2413_vm1, %v2932_v50  ;;  %v2996_v26 = vpack.c.bf16 %v1899_v0, %v1899_v0  ;;  %v1833_v47 = vsel %vm1577_vm4, %v1449_v31, %v1705_v44  ;;  %v1772_v9 = vmul.f32 0.2, %v1516_v5  ;;  %v1897_v34 = vsel %vm1641_vm5, %v1513_v27, %v1769_v2 }
 0x185   : > { %v2930_v24 = vpack.c.bf16 %v1833_v47, %v1833_v47  ;;  %v1836_v17 = vsel %vm1580_vm6, %v1452_v55, %v1708_v14  ;;  %v2994_v39 = vpack.c.bf16 %v1897_v34, %v1897_v34  ;;  %v1514_v22 = vadd.f32 %v3841_v60, %v4020_v8 }
 0x186   : > { %2540 = vst.msk [vmem:[%s3478_s28 + $0x1f8] sm:$0xf] %vm2413_vm1, %v2996_v26  ;;  %v2933_v59 = vpack.c.bf16 %v1836_v17, %v1836_v17  ;;  %v1900_v46 = vsel %vm1644_vm7, %v1516_v5, %v1772_v9  ;;  %vm1578_vm8 = vcmp.ge.f32.partialorder %v1450_v12, 0.0  ;;  %v1706_v13 = vmul.f32 0.2, %v1450_v12 }
 0x187   : > { %2474 = vst.msk [vmem:[%s3478_s28 + $0xf0] sm:$0xf] %vm2413_vm1, %v2930_v24  ;;  %v2997_v57 = vpack.c.bf16 %v1900_v46, %v1900_v46  ;;  %2538 = vst.msk [vmem:[%s3478_s28 + $0x1f0] sm:$0xf] %vm2413_vm1, %v2994_v39  ;;  %vm1642_vm9 = vcmp.ge.f32.partialorder %v1514_v22, 0.0 }
 0x188   : > { %2477 = vst.msk [vmem:[%s3478_s28 + $0xfc] sm:$0xf] %vm2413_vm1, %v2933_v59  ;;  %v1770_v45 = vmul.f32 0.2, %v1514_v22  ;;  %v1834_v38 = vsel %vm1578_vm8, %v1450_v12, %v1706_v13 }
 0x189   : > { %2541 = vst.msk [vmem:[%s3478_s28 + $0x1fc] sm:$0xf] %vm2413_vm1, %v2997_v57  ;;  %v2931_v15 = vpack.c.bf16 %v1834_v38, %v1834_v38 }
 0x18a   : > { %v1898_v25 = vsel %vm1642_vm9, %v1514_v22, %v1770_v45 }
 0x18b   : > { %v2995_v1 = vpack.c.bf16 %v1898_v25, %v1898_v25  ;;  %2475 = vst.msk [vmem:[%s3478_s28 + $0xf4] sm:$0xf] %vm2413_vm1, %v2931_v15 }
 0x18d   : > { %2539 = vst.msk [vmem:[%s3478_s28 + $0x1f4] sm:$0xf] %vm2413_vm1, %v2995_v1 }
 0x18e PF: > { %s13_s12 = sadd.s32 1, %s3287_s12  }
 0x18f   : > { %p10_p4 = scmp.ge.s32.totalorder %s13_s12, 6  }
 0x191   :  { %12 = sbr.rel (!%p10_p4) target bundleno = 1 (0x1), region = 62 }

// kernel: discriminator_forward.5
= control target key start
LH: loop header
LB: loop body
LE: loop exit
PB: predicated region body
PF: predicated region fallthrough
CT: control target
= control target key end

     0   :  { %s1446_s18 = smov 0   ;;  %s2119_s0 = inlined_call_operand.vmem [shape: bf16[4,256,128], index: 0, kind: input, shape index: {}]   ;;  %s2120_s1 = inlined_call_operand.vmem [shape: bf16[128,128], index: 1, kind: input, shape index: {}]   ;;  %s2121_s2 = inlined_call_operand.vmem [shape: f32[1,128], index: 2, kind: input, shape index: {}]   ;;  %s2122_s3 = inlined_call_operand.vmem [shape: f32[1,128], index: 3, kind: input, shape index: {}]   ;;  %s2123_s4 = inlined_call_operand.vmem [shape: f32[1,128], index: 4, kind: input, shape index: {}]   ;;  %s2124_s5 = inlined_call_operand.vmem [shape: bf16[4,256,16], index: 5, kind: output, shape index: {}]  }
   0x1 LB: > { %s1182_s19 = sadd.s32 4294967295, %s1414_s18   ;;  %p1186_p0 = scmp.ge.s32.totalorder %s1414_s18, 1  ;;  %s1414_s18 = sphi %s1446_s18, %s15_s18  }
   0x2   : > { %p187_p1 = scmp.lt.s32.totalorder %s1414_s18, 5 }
   0x4   : > { %p188_p2 = pnand %p1186_p0, %p187_p1 }
   0x5   : > { %v1382_v0 = vld [vmem:[%s2120_s1] sm:$0xff] (!%p188_p2)   ;;  %p215_p3 = scmp.lt.s32.totalorder (!%p188_p2), %s1182_s19, 3  ;;  %v1383_v1 = vld [vmem:[%s2120_s1 + $0x8] sm:$0xff] (!%p188_p2)   ;;  %v1384_v2 = vld [vmem:[%s2120_s1 + $0x10] sm:$0xff] (!%p188_p2)  }
   0x6   : > { %191 = sbr.rel (%p188_p2) target bundleno = 497 (0x1f1), region = 40  ;;  %1310 = vmatprep.subr.bf16.mxu0 (!%p188_p2), %v1382_v0  ;;  %1358 = vmatprep.subr.bf16.mxu1 (!%p188_p2), %v1382_v0  ;;  %v1385_v3 = vld [vmem:[%s2120_s1 + $0x18] sm:$0xff] (!%p188_p2)   ;;  %v1386_v5 = vld [vmem:[%s2120_s1 + $0x20] sm:$0xff] (!%p188_p2)   ;;  %v1387_v6 = vld [vmem:[%s2120_s1 + $0x28] sm:$0xff] (!%p188_p2)  }
   0x7   : > { %1311 = vmatpush3.bf16.msra.mxu0 (!%p188_p2), %v1382_v0  ;;  %1366 = vmatpush3.bf16.msra.mxu1 (!%p188_p2), %v1382_v0  ;;  %v1388_v8 = vld [vmem:[%s2120_s1 + $0x30] sm:$0xff] (!%p188_p2)   ;;  %v1389_v9 = vld [vmem:[%s2120_s1 + $0x38] sm:$0xff] (!%p188_p2)   ;;  %v1509_v26 = vld [vmem:[%s2121_s2] ss:$0 sm:$0xff] (!%p188_p2) }
   0x8   : > { %1312 = vmatprep.subr.bf16.mxu0 (!%p188_p2), %v1383_v1  ;;  %1359 = vmatprep.subr.bf16.mxu1 (!%p188_p2), %v1383_v1 }
   0xb   : > { %1313 = vmatpush3.bf16.msra.mxu0 (!%p188_p2), %v1383_v1  ;;  %1367 = vmatpush3.bf16.msra.mxu1 (!%p188_p2), %v1383_v1 }
   0xc   : > { %1314 = vmatprep.subr.bf16.mxu0 (!%p188_p2), %v1384_v2  ;;  %1360 = vmatprep.subr.bf16.mxu1 (!%p188_p2), %v1384_v2 }
   0xd   : > { %s2140_s19 = smov (!%p215_p3, %s1182_s19), 3 }
   0xe   : > { %s1252_s26 = sshll.u32 %s2140_s19, 7 }
   0xf   : > { %s1471_s29 = scalar_lea.vmem %s2119_s0, %s1252_s26  ;;  %1315 = vmatpush3.bf16.msra.mxu0 %v1384_v2  ;;  %1368 = vmatpush3.bf16.msra.mxu1 %v1384_v2  ;;  %s1984_s25 = scalar_lea.vmem %s2124_s5, %s1252_s26 }
  0x10   : > { %v1390_v4 = vld [vmem:[%s1471_s29] sm:$0xff]   ;;  %1316 = vmatprep.subr.bf16.mxu0 %v1385_v3  ;;  %1361 = vmatprep.subr.bf16.mxu1 %v1385_v3  ;;  %v1391_v10 = vld [vmem:[%s1471_s29 + $0x8] sm:$0xff]   ;;  %v1392_v12 = vld [vmem:[%s1471_s29 + $0x10] sm:$0xff]  }
  0x11   : > { %1326 = vmatprep.mubr.bf16.mxu0 %v1390_v4  ;;  %v1398_v7 = vld [vmem:[%s1471_s29 + $0x40] sm:$0xff]   ;;  %v1399_v11 = vld [vmem:[%s1471_s29 + $0x48] sm:$0xff]   ;;  %v1400_v13 = vld [vmem:[%s1471_s29 + $0x50] sm:$0xff]  }
  0x12   : > { %1342 = vmatprep.mubr.bf16.mxu1 %v1398_v7  ;;  %v1393_v14 = vld [vmem:[%s1471_s29 + $0x18] sm:$0xff]   ;;  %v1394_v16 = vld [vmem:[%s1471_s29 + $0x20] sm:$0xff]   ;;  %v1395_v18 = vld [vmem:[%s1471_s29 + $0x28] sm:$0xff]  }
  0x13   : > { %1317 = vmatpush3.bf16.msra.mxu0 %v1385_v3  ;;  %1369 = vmatpush3.bf16.msra.mxu1 %v1385_v3  ;;  %v1401_v15 = vld [vmem:[%s1471_s29 + $0x58] sm:$0xff]   ;;  %v1402_v17 = vld [vmem:[%s1471_s29 + $0x60] sm:$0xff]   ;;  %v1403_v19 = vld [vmem:[%s1471_s29 + $0x68] sm:$0xff]  }
  0x14   : > { %1318 = vmatprep.subr.bf16.mxu0 %v1386_v5  ;;  %1362 = vmatprep.subr.bf16.mxu1 %v1386_v5  ;;  %v1396_v20 = vld [vmem:[%s1471_s29 + $0x30] sm:$0xff]   ;;  %v1397_v22 = vld [vmem:[%s1471_s29 + $0x38] sm:$0xff]  }
  0x15   : > { %v1404_v21 = vld [vmem:[%s1471_s29 + $0x70] sm:$0xff]   ;;  %v1405_v23 = vld [vmem:[%s1471_s29 + $0x78] sm:$0xff]  }
  0x17   : > { %1319 = vmatpush3.bf16.msra.mxu0 %v1386_v5  ;;  %1370 = vmatpush3.bf16.msra.mxu1 %v1386_v5 }
  0x18   : > { %1320 = vmatprep.subr.bf16.mxu0 %v1387_v6  ;;  %1363 = vmatprep.subr.bf16.mxu1 %v1387_v6 }
  0x1b   : > { %1321 = vmatpush3.bf16.msra.mxu0 %v1387_v6  ;;  %1371 = vmatpush3.bf16.msra.mxu1 %v1387_v6 }
  0x1c   : > { %1322 = vmatprep.subr.bf16.mxu0 %v1388_v8  ;;  %1364 = vmatprep.subr.bf16.mxu1 %v1388_v8 }
  0x1f   : > { %1323 = vmatpush3.bf16.msra.mxu0 %v1388_v8  ;;  %1372 = vmatpush3.bf16.msra.mxu1 %v1388_v8 }
  0x20   : > { %1324 = vmatprep.subr.bf16.mxu0 %v1389_v9  ;;  %1365 = vmatprep.subr.bf16.mxu1 %v1389_v9 }
  0x23   : > { %1325 = vmatpush3.bf16.msra.mxu0 %v1389_v9  ;;  %1373 = vmatpush3.bf16.msra.mxu1 %v1389_v9 }
  0x26   : > { %1327 = vmatmul.mubr.bf16.vlgmr.msra.gmra.mrb[0].mxu0 %v1391_v10  ;;  %1343 = vmatmul.mubr.bf16.vlgmr.msra.gmra.mrb[0].mxu1 %v1399_v11 }
  0x27   : > { %1330 = vmatprep.mubr.bf16.mxu0 %v1392_v12  ;;  %1346 = vmatprep.mubr.bf16.mxu1 %v1400_v13 }
  0x2e   : > { %1331 = vmatmul.mubr.bf16.gmra.mrb[4].mxu0 %v1393_v14  ;;  %1347 = vmatmul.mubr.bf16.gmra.mrb[4].mxu1 %v1401_v15 }
  0x2f   : > { %1334 = vmatprep.mubr.bf16.mxu0 %v1394_v16  ;;  %1350 = vmatprep.mubr.bf16.mxu1 %v1402_v17 }
  0x36   : > { %1335 = vmatmul.mubr.bf16.gmra.mrb[8].mxu0 %v1395_v18  ;;  %1351 = vmatmul.mubr.bf16.gmra.mrb[8].mxu1 %v1403_v19 }
  0x37   : > { %1338 = vmatprep.mubr.bf16.mxu0 %v1396_v20  ;;  %1354 = vmatprep.mubr.bf16.mxu1 %v1404_v21 }
  0x3e   : > { %1339 = vmatmul.mubr.bf16.gmra.mrb[12].mxu0 %v1397_v22  ;;  %1355 = vmatmul.mubr.bf16.gmra.mrb[12].mxu1 %v1405_v23 }
  0xf9   : > { %v1328_v24 = vpop.f32.mrb[0].mxu0  ;;  %v1504_v25 = vpop.f32.mrb[0].mxu1 }
  0xfa   : > { %v454_v27 = vpop.f32.mrb[1].mxu0  ;;  %v518_v28 = vpop.f32.mrb[1].mxu1  ;;  %v1520_v35 = vadd.f32 %v1328_v24, %v1509_v26 }
  0xfb   : > { %v1329_v29 = vpop.f32.mrb[2].mxu0  ;;  %v1511_v30 = vpop.f32.mrb[2].mxu1  ;;  %v1514_v33 = vadd.f32 %v1509_v26, %v454_v27  ;;  %v604_v23 = vadd.f32 %v1509_v26, %v518_v28 }
  0xfc   : > { %v457_v31 = vpop.f32.mrb[3].mxu0  ;;  %v521_v32 = vpop.f32.mrb[3].mxu1  ;;  %v1525_v37 = vadd.f32 %v1329_v29, %v1509_v26 }
  0xfd   : > { %v1517_v34 = vadd.f32 %v1509_v26, %v457_v31  ;;  %v605_v29 = vadd.f32 %v1509_v26, %v521_v32  ;;  %v606_v31 = vadd.f32 %v1504_v25, %v1509_v26 }
  0xff   : > { %v620_v36 = vadd.f32 %v1517_v34, %v1514_v33 }
 0x101   : > { %v621_v38 = vadd.f32 %v620_v36, %v1520_v35  ;;  %v1332_v39 = vpop.f32.mrb[4].mxu0  ;;  %v1348_v40 = vpop.f32.mrb[4].mxu1 }
 0x102   : > { %v470_v41 = vpop.f32.mrb[5].mxu0  ;;  %v534_v42 = vpop.f32.mrb[5].mxu1  ;;  %v1537_v51 = vadd.f32 %v1332_v39, %v1509_v26  ;;  %v610_v28 = vadd.f32 %v1348_v40, %v1509_v26 }
 0x103   : > { %v1529_v43 = vadd.f32 %v1509_v26, %v470_v41  ;;  %v622_v44 = vadd.f32 %v621_v38, %v1525_v37  ;;  %v1333_v45 = vpop.f32.mrb[6].mxu0  ;;  %v1349_v46 = vpop.f32.mrb[6].mxu1  ;;  %v607_v38 = vadd.f32 %v1511_v30, %v1509_v26  ;;  %v608_v41 = vadd.f32 %v1509_v26, %v534_v42 }
 0x104   : > { %v473_v47 = vpop.f32.mrb[7].mxu0  ;;  %v537_v48 = vpop.f32.mrb[7].mxu1  ;;  %v1541_v53 = vadd.f32 %v1333_v45, %v1509_v26 }
 0x105   : > { %v623_v49 = vadd.f32 %v622_v44, %v1529_v43  ;;  %v1534_v50 = vadd.f32 %v1509_v26, %v473_v47  ;;  %v609_v47 = vadd.f32 %v1509_v26, %v537_v48 }
 0x107   : > { %v624_v52 = vadd.f32 %v623_v49, %v1534_v50 }
 0x109   : > { %v625_v54 = vadd.f32 %v624_v52, %v1537_v51  ;;  %v1336_v55 = vpop.f32.mrb[8].mxu0  ;;  %v1352_v56 = vpop.f32.mrb[8].mxu1  ;;  %v611_v52 = vadd.f32 %v1349_v46, %v1509_v26 }
 0x10a   : > { %v486_v57 = vpop.f32.mrb[9].mxu0  ;;  %v550_v58 = vpop.f32.mrb[9].mxu1  ;;  %v598_v3 = vadd.f32 %v1336_v55, %v1509_v26  ;;  %v614_v30 = vadd.f32 %v1352_v56, %v1509_v26 }
 0x10b   : > { %v1545_v59 = vadd.f32 %v1509_v26, %v486_v57  ;;  %v626_v60 = vadd.f32 %v625_v54, %v1541_v53  ;;  %v1337_v61 = vpop.f32.mrb[10].mxu0  ;;  %v1353_v62 = vpop.f32.mrb[10].mxu1  ;;  %v612_v54 = vadd.f32 %v1509_v26, %v550_v58 }
 0x10c   : > { %v489_v63 = vpop.f32.mrb[11].mxu0  ;;  %v553_v0 = vpop.f32.mrb[11].mxu1  ;;  %v599_v5 = vadd.f32 %v1337_v61, %v1509_v26  ;;  %v615_v42 = vadd.f32 %v1353_v62, %v1509_v26 }
 0x10d   : > { %v627_v1 = vadd.f32 %v626_v60, %v1545_v59  ;;  %v597_v2 = vadd.f32 %v1509_v26, %v489_v63  ;;  %v613_v57 = vadd.f32 %v1509_v26, %v553_v0 }
 0x10f   : > { %v628_v4 = vadd.f32 %v627_v1, %v597_v2 }
 0x111   : > { %v629_v6 = vadd.f32 %v628_v4, %v598_v3  ;;  %v1340_v7 = vpop.f32.mrb[12].mxu0  ;;  %v1356_v8 = vpop.f32.mrb[12].mxu1 }
 0x112   : > { %v502_v9 = vpop.f32.mrb[13].mxu0  ;;  %v566_v10 = vpop.f32.mrb[13].mxu1  ;;  %v602_v19 = vadd.f32 %v1340_v7, %v1509_v26  ;;  %v618_v46 = vadd.f32 %v1356_v8, %v1509_v26 }
 0x113   : > { %v600_v11 = vadd.f32 %v1509_v26, %v502_v9  ;;  %v630_v12 = vadd.f32 %v629_v6, %v599_v5  ;;  %v1341_v13 = vpop.f32.mrb[14].mxu0  ;;  %v1357_v14 = vpop.f32.mrb[14].mxu1  ;;  %v616_v48 = vadd.f32 %v1509_v26, %v566_v10 }
 0x114   : > { %v505_v15 = vpop.f32.mrb[15].mxu0  ;;  %v569_v16 = vpop.f32.mrb[15].mxu1  ;;  %v603_v21 = vadd.f32 %v1341_v13, %v1509_v26  ;;  %v619_v58 = vadd.f32 %v1357_v14, %v1509_v26 }
 0x115   : > { %v631_v17 = vadd.f32 %v630_v12, %v600_v11  ;;  %v601_v18 = vadd.f32 %v1509_v26, %v505_v15  ;;  %v617_v1 = vadd.f32 %v1509_v26, %v569_v16 }
 0x117   : > { %v632_v20 = vadd.f32 %v631_v17, %v601_v18 }
 0x119   : > { %v633_v22 = vadd.f32 %v632_v20, %v602_v19 }
 0x11b   : > { %v634_v24 = vadd.f32 %v633_v22, %v603_v21 }
 0x11d   : > { %v635_v27 = vadd.f32 %v634_v24, %v604_v23 }
 0x11f   : > { %v636_v36 = vadd.f32 %v635_v27, %v605_v29 }
 0x121   : > { %v637_v39 = vadd.f32 %v636_v36, %v606_v31 }
 0x123   : > { %v638_v44 = vadd.f32 %v637_v39, %v607_v38 }
 0x125   : > { %v639_v45 = vadd.f32 %v638_v44, %v608_v41 }
 0x127   : > { %v640_v49 = vadd.f32 %v639_v45, %v609_v47 }
 0x129   : > { %v641_v32 = vadd.f32 %v640_v49, %v610_v28 }
 0x12b   : > { %v642_v25 = vadd.f32 %v641_v32, %v611_v52 }
 0x12d   : > { %v643_v55 = vadd.f32 %v642_v25, %v612_v54 }
 0x12f   : > { %v644_v60 = vadd.f32 %v643_v55, %v613_v57 }
 0x131   : > { %v645_v61 = vadd.f32 %v644_v60, %v614_v30 }
 0x133   : > { %v646_v63 = vadd.f32 %v645_v61, %v615_v42 }
 0x135   : > { %v647_v40 = vadd.f32 %v646_v63, %v616_v48 }
 0x137   : > { %v648_v4 = vadd.f32 %v647_v40, %v617_v1 }
 0x139   : > { %v649_v6 = vadd.f32 %v648_v4, %v618_v46 }
 0x13b   : > { %v650_v7 = vadd.f32 %v649_v6, %v619_v58 }
 0x13d   : > { %v651_v0 = vrot.slane %v650_v7, 4 }
 0x13f   : > { %v652_v9 = vadd.f32 %v651_v0, %v650_v7 }
 0x141   : > { %v653_v56 = vrot.slane %v652_v9, 2 }
 0x143   : > { %v654_v12 = vadd.f32 %v653_v56, %v652_v9 }
 0x145   : > { %v655_v13 = vrot.slane %v654_v12, 1 }
 0x147   : > { %v656_v62 = vadd.f32 %v655_v13, %v654_v12 }
 0x149   : > { %v657_v15 = vmul.f32 0.00390625, %v656_v62 }
 0x14b   : > { %v1575_v10 = vsub.f32 %v1545_v59, %v657_v15  ;;  %v1577_v17 = vsub.f32 %v597_v2, %v657_v15  ;;  %v1579_v16 = vsub.f32 %v598_v3, %v657_v15  ;;  %v1581_v8 = vsub.f32 %v599_v5, %v657_v15 }
 0x14c   : > { %v1583_v20 = vsub.f32 %v600_v11, %v657_v15  ;;  %v1585_v26 = vsub.f32 %v601_v18, %v657_v15  ;;  %v1587_v14 = vsub.f32 %v602_v19, %v657_v15  ;;  %v1589_v22 = vsub.f32 %v603_v21, %v657_v15 }
 0x14d   : > { %v1591_v24 = vsub.f32 %v604_v23, %v657_v15  ;;  %v1593_v27 = vsub.f32 %v605_v29, %v657_v15  ;;  %v1595_v59 = vsub.f32 %v606_v31, %v657_v15  ;;  %v1597_v2 = vsub.f32 %v607_v38, %v657_v15 }
 0x14e   : > { %v1599_v3 = vsub.f32 %v608_v41, %v657_v15  ;;  %v1601_v5 = vsub.f32 %v609_v47, %v657_v15  ;;  %v1603_v11 = vsub.f32 %v610_v28, %v657_v15  ;;  %v1605_v18 = vsub.f32 %v611_v52, %v657_v15 }
 0x14f   : > { %v1607_v19 = vsub.f32 %v612_v54, %v657_v15  ;;  %v1609_v21 = vsub.f32 %v613_v57, %v657_v15  ;;  %v1611_v23 = vsub.f32 %v614_v30, %v657_v15  ;;  %v1613_v29 = vsub.f32 %v615_v42, %v657_v15 }
 0x150   : > { %v1615_v31 = vsub.f32 %v616_v48, %v657_v15  ;;  %v1617_v36 = vsub.f32 %v617_v1, %v657_v15  ;;  %v1619_v38 = vsub.f32 %v618_v46, %v657_v15  ;;  %v1621_v39 = vsub.f32 %v619_v58, %v657_v15 }
 0x151   : > { %v1624_v41 = vsub.f32 %v1514_v33, %v657_v15  ;;  %v1627_v44 = vsub.f32 %v1517_v34, %v657_v15  ;;  %v1630_v45 = vsub.f32 %v1520_v35, %v657_v15  ;;  %v1637_v49 = vsub.f32 %v1525_v37, %v657_v15 }
 0x152   : > { %v1640_v52 = vsub.f32 %v1529_v43, %v657_v15  ;;  %v1645_v32 = vsub.f32 %v1534_v50, %v657_v15  ;;  %v1650_v25 = vsub.f32 %v1537_v51, %v657_v15  ;;  %v1655_v43 = vsub.f32 %v1541_v53, %v657_v15 }
 0x153   : > { %v690_v47 = vmul.f32 %v1624_v41, %v1624_v41  ;;  %v691_v28 = vmul.f32 %v1627_v44, %v1627_v44  ;;  %v692_v33 = vmul.f32 %v1630_v45, %v1630_v45  ;;  %v693_v35 = vmul.f32 %v1637_v49, %v1637_v49 }
 0x154   : > { %v694_v37 = vmul.f32 %v1640_v52, %v1640_v52  ;;  %v695_v57 = vmul.f32 %v1645_v32, %v1645_v32  ;;  %v696_v50 = vmul.f32 %v1650_v25, %v1650_v25  ;;  %v697_v42 = vmul.f32 %v1655_v43, %v1655_v43 }
 0x155   : > { %v722_v34 = vadd.f32 %v691_v28, %v690_v47  ;;  %v698_v61 = vmul.f32 %v1575_v10, %v1575_v10  ;;  %v699_v53 = vmul.f32 %v1577_v17, %v1577_v17  ;;  %v700_v40 = vmul.f32 %v1579_v16, %v1579_v16 }
 0x156   : > { %v701_v46 = vmul.f32 %v1581_v8, %v1581_v8  ;;  %v702_v58 = vmul.f32 %v1583_v20, %v1583_v20  ;;  %v703_v7 = vmul.f32 %v1585_v26, %v1585_v26  ;;  %v704_v9 = vmul.f32 %v1587_v14, %v1587_v14 }
 0x157   : > { %v723_v54 = vadd.f32 %v722_v34, %v692_v33  ;;  %v705_v12 = vmul.f32 %v1589_v22, %v1589_v22  ;;  %v706_v62 = vmul.f32 %v1591_v24, %v1591_v24  ;;  %v707_v47 = vmul.f32 %v1593_v27, %v1593_v27 }
 0x158   : > { %v708_v33 = vmul.f32 %v1595_v59, %v1595_v59 }
 0x159   : > { %v724_v55 = vadd.f32 %v723_v54, %v693_v35  ;;  %v709_v35 = vmul.f32 %v1597_v2, %v1597_v2 }
 0x15b   : > { %v725_v30 = vadd.f32 %v724_v55, %v694_v37  ;;  %v710_v37 = vmul.f32 %v1599_v3, %v1599_v3 }
 0x15d   : > { %v726_v60 = vadd.f32 %v725_v30, %v695_v57  ;;  %v711_v57 = vmul.f32 %v1601_v5, %v1601_v5 }
 0x15f   : > { %v727_v51 = vadd.f32 %v726_v60, %v696_v50  ;;  %v712_v50 = vmul.f32 %v1603_v11, %v1603_v11 }
 0x161   : > { %v728_v48 = vadd.f32 %v727_v51, %v697_v42  ;;  %v713_v42 = vmul.f32 %v1605_v18, %v1605_v18 }
 0x163   : > { %v729_v63 = vadd.f32 %v728_v48, %v698_v61  ;;  %v714_v61 = vmul.f32 %v1607_v19, %v1607_v19 }
 0x165   : > { %v730_v1 = vadd.f32 %v729_v63, %v699_v53  ;;  %v715_v53 = vmul.f32 %v1609_v21, %v1609_v21 }
 0x167   : > { %v731_v4 = vadd.f32 %v730_v1, %v700_v40  ;;  %v716_v40 = vmul.f32 %v1611_v23, %v1611_v23 }
 0x169   : > { %v732_v6 = vadd.f32 %v731_v4, %v701_v46  ;;  %v717_v46 = vmul.f32 %v1613_v29, %v1613_v29 }
 0x16b   : > { %v733_v0 = vadd.f32 %v732_v6, %v702_v58  ;;  %v718_v58 = vmul.f32 %v1615_v31, %v1615_v31 }
 0x16d   : > { %v734_v56 = vadd.f32 %v733_v0, %v703_v7  ;;  %v719_v7 = vmul.f32 %v1617_v36, %v1617_v36 }
 0x16f   : > { %v735_v13 = vadd.f32 %v734_v56, %v704_v9  ;;  %v720_v9 = vmul.f32 %v1619_v38, %v1619_v38 }
 0x171   : > { %v736_v15 = vadd.f32 %v735_v13, %v705_v12  ;;  %v721_v12 = vmul.f32 %v1621_v39, %v1621_v39 }
 0x173   : > { %v737_v28 = vadd.f32 %v736_v15, %v706_v62 }
 0x175   : > { %v738_v34 = vadd.f32 %v737_v28, %v707_v47 }
 0x177   : > { %v739_v54 = vadd.f32 %v738_v34, %v708_v33 }
 0x179   : > { %v740_v55 = vadd.f32 %v739_v54, %v709_v35 }
 0x17b   : > { %v741_v30 = vadd.f32 %v740_v55, %v710_v37 }
 0x17d   : > { %v742_v60 = vadd.f32 %v741_v30, %v711_v57 }
 0x17f   : > { %v743_v51 = vadd.f32 %v742_v60, %v712_v50 }
 0x181   : > { %v744_v48 = vadd.f32 %v743_v51, %v713_v42 }
 0x183   : > { %v745_v63 = vadd.f32 %v744_v48, %v714_v61 }
 0x185   : > { %v746_v1 = vadd.f32 %v745_v63, %v715_v53 }
 0x187   : > { %v747_v4 = vadd.f32 %v746_v1, %v716_v40 }
 0x189   : > { %v748_v6 = vadd.f32 %v747_v4, %v717_v46 }
 0x18b   : > { %v749_v0 = vadd.f32 %v748_v6, %v718_v58 }
 0x18d   : > { %v750_v56 = vadd.f32 %v749_v0, %v719_v7 }
 0x18f   : > { %v751_v13 = vadd.f32 %v750_v56, %v720_v9 }
 0x191   : > { %v752_v62 = vadd.f32 %v751_v13, %v721_v12  ;;  %v1217_v13 = vld [vmem:[%s2123_s4] ss:$0 sm:$0xff] }
 0x193   : > { %v753_v15 = vrot.slane %v752_v62, 4 }
 0x195   : > { %v754_v47 = vadd.f32 %v753_v15, %v752_v62 }
 0x197   : > { %v755_v28 = vrot.slane %v754_v47, 2 }
 0x199   : > { %v756_v33 = vadd.f32 %v755_v28, %v754_v47 }
 0x19b   : > { %v757_v34 = vrot.slane %v756_v33, 1 }
 0x19d   : > { %v758_v35 = vadd.f32 %v757_v34, %v756_v33 }
 0x19f   : > { %v759_v54 = vmul.f32 0.00390625, %v758_v35 }
 0x1a1   : > { %v760_v37 = vadd.f32 1e-05, %v759_v54 }
 0x1a3   : > { %1406 = vrsqrt.f32 %v760_v37 }
 0x1ad   : > { %v1407_v55 = vpop.eup %1406 }
 0x1ae   : > { %v779_v57 = vmul.f32 %v1407_v55, %v1593_v27  ;;  %v780_v30 = vmul.f32 %v1407_v55, %v1595_v59  ;;  %v781_v50 = vmul.f32 %v1407_v55, %v1597_v2  ;;  %v782_v60 = vmul.f32 %v1407_v55, %v1599_v3 }
 0x1af   : > { %v783_v42 = vmul.f32 %v1407_v55, %v1601_v5  ;;  %v784_v51 = vmul.f32 %v1407_v55, %v1603_v11  ;;  %v785_v61 = vmul.f32 %v1407_v55, %v1605_v18  ;;  %v786_v48 = vmul.f32 %v1407_v55, %v1607_v19 }
 0x1b0   : > { %v787_v53 = vmul.f32 %v1407_v55, %v1609_v21  ;;  %v788_v63 = vmul.f32 %v1407_v55, %v1611_v23  ;;  %v789_v27 = vmul.f32 %v1407_v55, %v1613_v29  ;;  %v790_v59 = vmul.f32 %v1407_v55, %v1615_v31  ;;  %v1216_v29 = vld [vmem:[%s2122_s3] ss:$0 sm:$0xff] }
 0x1b1   : > { %v791_v2 = vmul.f32 %v1407_v55, %v1617_v36  ;;  %v792_v3 = vmul.f32 %v1407_v55, %v1619_v38  ;;  %v793_v5 = vmul.f32 %v1407_v55, %v1621_v39  ;;  %v762_v11 = vmul.f32 %v1407_v55, %v1624_v41 }
 0x1b2   : > { %v763_v18 = vmul.f32 %v1407_v55, %v1627_v44  ;;  %v764_v19 = vmul.f32 %v1407_v55, %v1630_v45  ;;  %v765_v21 = vmul.f32 %v1407_v55, %v1637_v49  ;;  %v766_v23 = vmul.f32 %v1407_v55, %v1640_v52 }
 0x1b3   : > { %v767_v31 = vmul.f32 %v1407_v55, %v1645_v32  ;;  %v768_v36 = vmul.f32 %v1407_v55, %v1650_v25  ;;  %v769_v38 = vmul.f32 %v1407_v55, %v1655_v43  ;;  %v770_v39 = vmul.f32 %v1407_v55, %v1575_v10 }
 0x1b4   : > { %v771_v41 = vmul.f32 %v1407_v55, %v1577_v17  ;;  %v772_v44 = vmul.f32 %v1407_v55, %v1579_v16  ;;  %v773_v45 = vmul.f32 %v1407_v55, %v1581_v8  ;;  %v774_v49 = vmul.f32 %v1407_v55, %v1583_v20 }
 0x1b5   : > { %v775_v52 = vmul.f32 %v1407_v55, %v1585_v26  ;;  %v776_v40 = vmul.f32 %v1407_v55, %v1587_v14  ;;  %v777_v32 = vmul.f32 %v1407_v55, %v1589_v22  ;;  %v778_v25 = vmul.f32 %v1407_v55, %v1591_v24 }
 0x1b6   : > { %v800_v1 = vmul.f32 %v1216_v29, %v762_v11  ;;  %v801_v43 = vmul.f32 %v1216_v29, %v763_v18  ;;  %v802_v46 = vmul.f32 %v1216_v29, %v764_v19  ;;  %v803_v10 = vmul.f32 %v1216_v29, %v765_v21 }
 0x1b7   : > { %v804_v4 = vmul.f32 %v1216_v29, %v766_v23  ;;  %v805_v17 = vmul.f32 %v1216_v29, %v767_v31  ;;  %v806_v58 = vmul.f32 %v1216_v29, %v768_v36  ;;  %v807_v16 = vmul.f32 %v1216_v29, %v769_v38 }
 0x1b8   : > { %v808_v6 = vmul.f32 %v1216_v29, %v770_v39  ;;  %v809_v8 = vmul.f32 %v1216_v29, %v771_v41  ;;  %v810_v7 = vmul.f32 %v1216_v29, %v772_v44  ;;  %v811_v20 = vmul.f32 %v1216_v29, %v773_v45 }
 0x1b9   : > { %v812_v0 = vmul.f32 %v1216_v29, %v774_v49  ;;  %v813_v26 = vmul.f32 %v1216_v29, %v775_v52  ;;  %v814_v9 = vmul.f32 %v1216_v29, %v776_v40  ;;  %v815_v14 = vmul.f32 %v1216_v29, %v777_v32 }
 0x1ba   : > { %v816_v56 = vmul.f32 %v1216_v29, %v778_v25  ;;  %v817_v22 = vmul.f32 %v1216_v29, %v779_v57  ;;  %v818_v12 = vmul.f32 %v1216_v29, %v780_v30  ;;  %v819_v24 = vmul.f32 %v1216_v29, %v781_v50 }
 0x1bb   : > { %v820_v62 = vmul.f32 %v1216_v29, %v782_v60  ;;  %v821_v15 = vmul.f32 %v1216_v29, %v783_v42  ;;  %v822_v47 = vmul.f32 %v1216_v29, %v784_v51  ;;  %v823_v28 = vmul.f32 %v1216_v29, %v785_v61 }
 0x1bc   : > { %v824_v33 = vmul.f32 %v1216_v29, %v786_v48  ;;  %v825_v34 = vmul.f32 %v1216_v29, %v787_v53  ;;  %v826_v35 = vmul.f32 %v1216_v29, %v788_v63  ;;  %v827_v54 = vmul.f32 %v1216_v29, %v789_v27 }
 0x1bd   : > { %v828_v37 = vmul.f32 %v1216_v29, %v790_v59  ;;  %v829_v55 = vmul.f32 %v1216_v29, %v791_v2  ;;  %v830_v11 = vmul.f32 %v1216_v29, %v792_v3  ;;  %v831_v18 = vmul.f32 %v1216_v29, %v793_v5 }
 0x1be   : > { %v1749_v19 = vadd.f32 %v1217_v13, %v800_v1  ;;  %v1751_v57 = vadd.f32 %v1217_v13, %v801_v43  ;;  %v1753_v30 = vadd.f32 %v1217_v13, %v802_v46  ;;  %v1755_v50 = vadd.f32 %v1217_v13, %v803_v10 }
 0x1bf   : > { %v1757_v60 = vadd.f32 %v1217_v13, %v804_v4  ;;  %v1759_v42 = vadd.f32 %v1217_v13, %v805_v17  ;;  %v1761_v51 = vadd.f32 %v1217_v13, %v806_v58  ;;  %v1763_v61 = vadd.f32 %v1217_v13, %v807_v16 }
 0x1c0   : > { %v1765_v48 = vadd.f32 %v1217_v13, %v808_v6  ;;  %v1767_v53 = vadd.f32 %v1217_v13, %v809_v8  ;;  %v1769_v63 = vadd.f32 %v1217_v13, %v810_v7  ;;  %v1771_v27 = vadd.f32 %v1217_v13, %v811_v20 }
 0x1c1   : > { %v1773_v59 = vadd.f32 %v1217_v13, %v812_v0  ;;  %v1775_v2 = vadd.f32 %v1217_v13, %v813_v26  ;;  %v1777_v3 = vadd.f32 %v1217_v13, %v814_v9  ;;  %v1779_v5 = vadd.f32 %v1217_v13, %v815_v14 }
 0x1c2   : > { %v1781_v21 = vadd.f32 %v1217_v13, %v816_v56  ;;  %v1783_v23 = vadd.f32 %v1217_v13, %v817_v22  ;;  %v1785_v29 = vadd.f32 %v1217_v13, %v818_v12  ;;  %v1787_v31 = vadd.f32 %v1217_v13, %v819_v24 }
 0x1c3   : > { %v1789_v36 = vadd.f32 %v1217_v13, %v820_v62  ;;  %v1791_v38 = vadd.f32 %v1217_v13, %v821_v15  ;;  %v1793_v39 = vadd.f32 %v1217_v13, %v822_v47  ;;  %v1795_v41 = vadd.f32 %v1217_v13, %v823_v28 }
 0x1c4   : > { %v1797_v44 = vadd.f32 %v1217_v13, %v824_v33  ;;  %v1799_v45 = vadd.f32 %v1217_v13, %v825_v34  ;;  %v1801_v49 = vadd.f32 %v1217_v13, %v826_v35  ;;  %v1803_v52 = vadd.f32 %v1217_v13, %v827_v54 }
 0x1c5   : > { %v1805_v40 = vadd.f32 %v1217_v13, %v828_v37  ;;  %v1807_v32 = vadd.f32 %v1217_v13, %v829_v55  ;;  %vm870_vm0 = vcmp.ge.f32.partialorder %v1749_v19, 0.0  ;;  %vm871_vm1 = vcmp.ge.f32.partialorder %v1751_v57, 0.0 }
 0x1c6   : > { %vm872_vm2 = vcmp.ge.f32.partialorder %v1753_v30, 0.0  ;;  %vm873_vm3 = vcmp.ge.f32.partialorder %v1755_v50, 0.0  ;;  %vm874_vm4 = vcmp.ge.f32.partialorder %v1757_v60, 0.0  ;;  %vm875_vm5 = vcmp.ge.f32.partialorder %v1759_v42, 0.0 }
 0x1c7   : > { %vm876_vm6 = vcmp.ge.f32.partialorder %v1761_v51, 0.0  ;;  %vm877_vm7 = vcmp.ge.f32.partialorder %v1763_v61, 0.0  ;;  %vm878_vm8 = vcmp.ge.f32.partialorder %v1765_v48, 0.0  ;;  %v1819_v25 = vadd.f32 %v1217_v13, %v830_v11 }
 0x1c8   : > { %v902_v1 = vmul.f32 0.2, %v1749_v19  ;;  %v903_v43 = vmul.f32 0.2, %v1751_v57  ;;  %v904_v46 = vmul.f32 0.2, %v1753_v30  ;;  %v1828_v10 = vadd.f32 %v1217_v13, %v831_v18 }
 0x1c9   : > { %vm885_vm15 = vcmp.ge.f32.partialorder %v1779_v5, 0.0  ;;  %vm886_vm10 = vcmp.ge.f32.partialorder %v1781_v21, 0.0  ;;  %v905_v4 = vmul.f32 0.2, %v1755_v50  ;;  %v906_v17 = vmul.f32 0.2, %v1757_v60 }
 0x1ca   : > { %v907_v58 = vmul.f32 0.2, %v1759_v42  ;;  %vm891_vm14 = vcmp.ge.f32.partialorder %v1791_v38, 0.0  ;;  %v908_v16 = vmul.f32 0.2, %v1761_v51  ;;  %v1847_v7 = vsel %vm870_vm0, %v1749_v19, %v902_v1 }
 0x1cb   : > { %v909_v6 = vmul.f32 0.2, %v1763_v61  ;;  %v910_v8 = vmul.f32 0.2, %v1765_v48  ;;  %vm895_vm9 = vcmp.ge.f32.partialorder %v1799_v45, 0.0  ;;  %v1859_v9 = vsel %vm871_vm1, %v1751_v57, %v903_v43 }
 0x1cc   : > { %v911_v20 = vmul.f32 0.2, %v1767_v53  ;;  %v912_v0 = vmul.f32 0.2, %v1769_v63  ;;  %v913_v26 = vmul.f32 0.2, %v1771_v27  ;;  %v1871_v12 = vsel %vm872_vm2, %v1753_v30, %v904_v46 }
 0x1cd   : > { %vm897_vm11 = vcmp.ge.f32.partialorder %v1803_v52, 0.0  ;;  %vm898_vm13 = vcmp.ge.f32.partialorder %v1805_v40, 0.0  ;;  %vm899_vm12 = vcmp.ge.f32.partialorder %v1807_v32, 0.0  ;;  %v914_v14 = vmul.f32 0.2, %v1773_v59 }
 0x1ce   : > { %v915_v56 = vmul.f32 0.2, %v1775_v2  ;;  %v916_v22 = vmul.f32 0.2, %v1777_v3  ;;  %vm900_vm1 = vcmp.ge.f32.partialorder %v1819_v25, 0.0  ;;  %vm901_vm0 = vcmp.ge.f32.partialorder %v1828_v10, 0.0 }
 0x1cf   : > { %v917_v24 = vmul.f32 0.2, %v1779_v5  ;;  %v918_v13 = vmul.f32 0.2, %v1781_v21  ;;  %v919_v62 = vmul.f32 0.2, %v1783_v23  ;;  %v1881_v15 = vsel %vm873_vm3, %v1755_v50, %v905_v4 }
 0x1d0   : > { %v920_v47 = vmul.f32 0.2, %v1785_v29  ;;  %v921_v28 = vmul.f32 0.2, %v1787_v31  ;;  %v922_v33 = vmul.f32 0.2, %v1789_v36  ;;  %v938_v34 = vsel %vm874_vm4, %v1757_v60, %v906_v17 }
 0x1d1   : > { %v923_v35 = vmul.f32 0.2, %v1791_v38  ;;  %v924_v54 = vmul.f32 0.2, %v1793_v39  ;;  %v925_v37 = vmul.f32 0.2, %v1795_v41  ;;  %v939_v55 = vsel %vm875_vm5, %v1759_v42, %v907_v58 }
 0x1d2   : > { %vm1094_vm2 = vcmask 125952   ;;  %v926_v11 = vmul.f32 0.2, %v1797_v44  ;;  %v927_v18 = vmul.f32 0.2, %v1799_v45  ;;  %v940_v57 = vsel %vm876_vm6, %v1761_v51, %v908_v16 }
 0x1d3   : > { %v928_v19 = vmul.f32 0.2, %v1801_v49  ;;  %v929_v30 = vmul.f32 0.2, %v1803_v52  ;;  %v930_v50 = vmul.f32 0.2, %v1805_v40  ;;  %v941_v42 = vsel %vm877_vm7, %v1763_v61, %v909_v6 }
 0x1d4   : > { %v931_v60 = vmul.f32 0.2, %v1807_v32  ;;  %v932_v1 = vmul.f32 0.2, %v1819_v25  ;;  %v933_v43 = vmul.f32 0.2, %v1828_v10  ;;  %v942_v46 = vsel %vm878_vm8, %v1765_v48, %v910_v8 }
 0x1d5   : > { %vm2125_vm3 = vcmp.ge.f32.partialorder %v1767_v53, 0.0  ;;  %vm2126_vm4 = vcmp.ge.f32.partialorder %v1769_v63, 0.0  ;;  %vm2127_vm5 = vcmp.ge.f32.partialorder %v1771_v27, 0.0  ;;  %vm2128_vm6 = vcmp.ge.f32.partialorder %v1773_v59, 0.0 }
 0x1d6   : > { %v943_v51 = vsel %vm2125_vm3, %v1767_v53, %v911_v20  ;;  %v944_v4 = vsel %vm2126_vm4, %v1769_v63, %v912_v0  ;;  %v945_v61 = vsel %vm2127_vm5, %v1771_v27, %v913_v26  ;;  %v946_v17 = vsel %vm2128_vm6, %v1773_v59, %v914_v14 }
 0x1d7   : > { %vm2129_vm7 = vcmp.ge.f32.partialorder %v1775_v2, 0.0  ;;  %vm2130_vm8 = vcmp.ge.f32.partialorder %v1777_v3, 0.0  ;;  %v949_v63 = vsel %vm885_vm15, %v1779_v5, %v917_v24  ;;  %v950_v27 = vsel %vm886_vm10, %v1781_v21, %v918_v13 }
 0x1d8   : > { %v947_v48 = vsel %vm2129_vm7, %v1775_v2, %v915_v56  ;;  %v948_v53 = vsel %vm2130_vm8, %v1777_v3, %v916_v22  ;;  %vm2131_vm3 = vcmp.ge.f32.partialorder %v1783_v23, 0.0  ;;  %vm2132_vm4 = vcmp.ge.f32.partialorder %v1785_v29, 0.0 }
 0x1d9   : > { %v951_v59 = vsel %vm2131_vm3, %v1783_v23, %v919_v62  ;;  %v1942_v2 = vsel %vm2132_vm4, %v1785_v29, %v920_v47  ;;  %vm2133_vm5 = vcmp.ge.f32.partialorder %v1787_v31, 0.0  ;;  %vm2134_vm15 = vcmp.ge.f32.partialorder %v1789_v36, 0.0 }
 0x1da   : > { %v1947_v3 = vsel %vm2133_vm5, %v1787_v31, %v921_v28  ;;  %v1952_v5 = vsel %vm2134_vm15, %v1789_v36, %v922_v33  ;;  %v1957_v21 = vsel %vm891_vm14, %v1791_v38, %v923_v35  ;;  %vm2135_vm10 = vcmp.ge.f32.partialorder %v1793_v39, 0.0 }
 0x1db   : > { %v1962_v23 = vsel %vm2135_vm10, %v1793_v39, %v924_v54  ;;  %vm2136_vm6 = vcmp.ge.f32.partialorder %v1795_v41, 0.0  ;;  %vm2137_vm7 = vcmp.ge.f32.partialorder %v1797_v44, 0.0  ;;  %v1977_v36 = vsel %vm895_vm9, %v1799_v45, %v927_v18 }
 0x1dc   : > { %v1967_v29 = vsel %vm2136_vm6, %v1795_v41, %v925_v37  ;;  %v1972_v31 = vsel %vm2137_vm7, %v1797_v44, %v926_v11  ;;  %vm2138_vm14 = vcmp.ge.f32.partialorder %v1801_v49, 0.0  ;;  %v1994_v39 = vsel %vm897_vm11, %v1803_v52, %v929_v30 }
 0x1dd   : > { %v1989_v38 = vsel %vm2138_vm14, %v1801_v49, %v928_v19  ;;  %v1999_v41 = vsel %vm898_vm13, %v1805_v40, %v930_v50  ;;  %v2004_v44 = vsel %vm899_vm12, %v1807_v32, %v931_v60  ;;  %v2009_v45 = vsel %vm900_vm1, %v1819_v25, %v932_v1 }
 0x1de   : > { %v2014_v49 = vsel %vm901_vm0, %v1828_v10, %v933_v43  ;;  %v1254_v52 = vpack.c.bf16 %v1847_v7, %v1847_v7  ;;  %v1255_v40 = vpack.c.bf16 %v1859_v9, %v1859_v9  ;;  %v1256_v32 = vpack.c.bf16 %v1871_v12, %v1871_v12 }
 0x1df   : > { %v1257_v25 = vpack.c.bf16 %v1881_v15, %v1881_v15  ;;  %v1258_v58 = vpack.c.bf16 %v938_v34, %v938_v34  ;;  %v1259_v16 = vpack.c.bf16 %v939_v55, %v939_v55  ;;  %v1260_v10 = vpack.c.bf16 %v940_v57, %v940_v57 }
 0x1e0   : > { %v1261_v6 = vpack.c.bf16 %v941_v42, %v941_v42  ;;  %v1262_v8 = vpack.c.bf16 %v942_v46, %v942_v46  ;;  %v1263_v7 = vpack.c.bf16 %v943_v51, %v943_v51  ;;  %1095 = vst.msk [vmem:[%s1984_s25] sm:$0xf] %vm1094_vm2, %v1254_v52  ;;  %1096 = vst.msk [vmem:[%s1984_s25 + $0x4] sm:$0xf] %vm1094_vm2, %v1255_v40 }
 0x1e1   : > { %v1264_v20 = vpack.c.bf16 %v944_v4, %v944_v4  ;;  %v1265_v0 = vpack.c.bf16 %v945_v61, %v945_v61  ;;  %v1266_v26 = vpack.c.bf16 %v946_v17, %v946_v17  ;;  %v1267_v9 = vpack.c.bf16 %v947_v48, %v947_v48  ;;  %1097 = vst.msk [vmem:[%s1984_s25 + $0x8] sm:$0xf] %vm1094_vm2, %v1256_v32 }
 0x1e2   : > { %1098 = vst.msk [vmem:[%s1984_s25 + $0xc] sm:$0xf] %vm1094_vm2, %v1257_v25  ;;  %1099 = vst.msk [vmem:[%s1984_s25 + $0x10] sm:$0xf] %vm1094_vm2, %v1258_v58  ;;  %v1268_v14 = vpack.c.bf16 %v948_v53, %v948_v53  ;;  %v1269_v56 = vpack.c.bf16 %v949_v63, %v949_v63  ;;  %v1270_v22 = vpack.c.bf16 %v950_v27, %v950_v27 }
 0x1e3   : > { %1100 = vst.msk [vmem:[%s1984_s25 + $0x14] sm:$0xf] %vm1094_vm2, %v1259_v16  ;;  %v1271_v12 = vpack.c.bf16 %v951_v59, %v951_v59  ;;  %1101 = vst.msk [vmem:[%s1984_s25 + $0x18] sm:$0xf] %vm1094_vm2, %v1260_v10  ;;  %v1272_v24 = vpack.c.bf16 %v1942_v2, %v1942_v2  ;;  %v1273_v13 = vpack.c.bf16 %v1947_v3, %v1947_v3 }
 0x1e4   : > { %1102 = vst.msk [vmem:[%s1984_s25 + $0x1c] sm:$0xf] %vm1094_vm2, %v1261_v6  ;;  %1103 = vst.msk [vmem:[%s1984_s25 + $0x20] sm:$0xf] %vm1094_vm2, %v1262_v8  ;;  %v1274_v62 = vpack.c.bf16 %v1952_v5, %v1952_v5  ;;  %v1275_v15 = vpack.c.bf16 %v1957_v21, %v1957_v21  ;;  %v1276_v47 = vpack.c.bf16 %v1962_v23, %v1962_v23 }
 0x1e5   : > { %1104 = vst.msk [vmem:[%s1984_s25 + $0x24] sm:$0xf] %vm1094_vm2, %v1263_v7  ;;  %1105 = vst.msk [vmem:[%s1984_s25 + $0x28] sm:$0xf] %vm1094_vm2, %v1264_v20  ;;  %v1277_v28 = vpack.c.bf16 %v1967_v29, %v1967_v29  ;;  %v1278_v33 = vpack.c.bf16 %v1972_v31, %v1972_v31  ;;  %v1279_v34 = vpack.c.bf16 %v1977_v36, %v1977_v36 }
 0x1e6   : > { %1106 = vst.msk [vmem:[%s1984_s25 + $0x2c] sm:$0xf] %vm1094_vm2, %v1265_v0  ;;  %1107 = vst.msk [vmem:[%s1984_s25 + $0x30] sm:$0xf] %vm1094_vm2, %v1266_v26  ;;  %v1280_v35 = vpack.c.bf16 %v1989_v38, %v1989_v38  ;;  %v1281_v54 = vpack.c.bf16 %v1994_v39, %v1994_v39  ;;  %v1282_v37 = vpack.c.bf16 %v1999_v41, %v1999_v41 }
 0x1e7   : > { %1108 = vst.msk [vmem:[%s1984_s25 + $0x34] sm:$0xf] %vm1094_vm2, %v1267_v9  ;;  %1109 = vst.msk [vmem:[%s1984_s25 + $0x38] sm:$0xf] %vm1094_vm2, %v1268_v14  ;;  %v1283_v55 = vpack.c.bf16 %v2004_v44, %v2004_v44  ;;  %v1284_v11 = vpack.c.bf16 %v2009_v45, %v2009_v45  ;;  %v1285_v18 = vpack.c.bf16 %v2014_v49, %v2014_v49 }
 0x1e8   : > { %1110 = vst.msk [vmem:[%s1984_s25 + $0x3c] sm:$0xf] %vm1094_vm2, %v1269_v56  ;;  %1111 = vst.msk [vmem:[%s1984_s25 + $0x40] sm:$0xf] %vm1094_vm2, %v1270_v22 }
 0x1e9   : > { %1112 = vst.msk [vmem:[%s1984_s25 + $0x44] sm:$0xf] %vm1094_vm2, %v1271_v12  ;;  %1113 = vst.msk [vmem:[%s1984_s25 + $0x48] sm:$0xf] %vm1094_vm2, %v1272_v24 }
 0x1ea   : > { %1114 = vst.msk [vmem:[%s1984_s25 + $0x4c] sm:$0xf] %vm1094_vm2, %v1273_v13  ;;  %1115 = vst.msk [vmem:[%s1984_s25 + $0x50] sm:$0xf] %vm1094_vm2, %v1274_v62 }
 0x1eb   : > { %1116 = vst.msk [vmem:[%s1984_s25 + $0x54] sm:$0xf] %vm1094_vm2, %v1275_v15  ;;  %1117 = vst.msk [vmem:[%s1984_s25 + $0x58] sm:$0xf] %vm1094_vm2, %v1276_v47 }
 0x1ec   : > { %1118 = vst.msk [vmem:[%s1984_s25 + $0x5c] sm:$0xf] %vm1094_vm2, %v1277_v28  ;;  %1119 = vst.msk [vmem:[%s1984_s25 + $0x60] sm:$0xf] %vm1094_vm2, %v1278_v33 }
 0x1ed   : > { %1120 = vst.msk [vmem:[%s1984_s25 + $0x64] sm:$0xf] %vm1094_vm2, %v1279_v34  ;;  %1121 = vst.msk [vmem:[%s1984_s25 + $0x68] sm:$0xf] %vm1094_vm2, %v1280_v35 }
 0x1ee   : > { %1122 = vst.msk [vmem:[%s1984_s25 + $0x6c] sm:$0xf] %vm1094_vm2, %v1281_v54  ;;  %1123 = vst.msk [vmem:[%s1984_s25 + $0x70] sm:$0xf] %vm1094_vm2, %v1282_v37 }
 0x1ef   : > { %1124 = vst.msk [vmem:[%s1984_s25 + $0x74] sm:$0xf] %vm1094_vm2, %v1283_v55  ;;  %1125 = vst.msk [vmem:[%s1984_s25 + $0x78] sm:$0xf] %vm1094_vm2, %v1284_v11 }
 0x1f0   : > { %1126 = vst.msk [vmem:[%s1984_s25 + $0x7c] sm:$0xf] %vm1094_vm2, %v1285_v18 }
 0x1f1 PF: > { %s15_s18 = sadd.s32 1, %s1414_s18  }
 0x1f2   : > { %p12_p4 = scmp.ge.s32.totalorder %s15_s18, 6  }
 0x1f4   :  { %14 = sbr.rel (!%p12_p4) target bundleno = 1 (0x1), region = 70 }

// kernel: discriminator_forward.6
= control target key start
LH: loop header
LB: loop body
LE: loop exit
PB: predicated region body
PF: predicated region fallthrough
CT: control target
= control target key end

     0   :  { %s1171_s18 = smov 0   ;;  %s1479_s0 = inlined_call_operand.vmem [shape: bf16[4,64,256], index: 0, kind: input, shape index: {}]   ;;  %s1480_s1 = inlined_call_operand.vmem [shape: bf16[256,128], index: 1, kind: input, shape index: {}]   ;;  %s1481_s2 = inlined_call_operand.vmem [shape: f32[1,128], index: 2, kind: input, shape index: {}]   ;;  %s1482_s3 = inlined_call_operand.vmem [shape: f32[1,128], index: 3, kind: input, shape index: {}]   ;;  %s1483_s4 = inlined_call_operand.vmem [shape: f32[1,128], index: 4, kind: input, shape index: {}]   ;;  %s1484_s5 = inlined_call_operand.vmem [shape: bf16[4,64,32], index: 5, kind: output, shape index: {}]  }
   0x1 LB: > { %s919_s19 = sadd.s32 4294967295, %s1139_s18   ;;  %p923_p0 = scmp.ge.s32.totalorder %s1139_s18, 1  ;;  %s1139_s18 = sphi %s1171_s18, %s15_s18  }
   0x2   : > { %p189_p1 = scmp.lt.s32.totalorder %s1139_s18, 3 }
   0x4   : > { %p190_p2 = pnand %p923_p0, %p189_p1 }
   0x5   : > { %v1089_v0 = vld [vmem:[%s1480_s1 + $0x40] sm:$0xff] (!%p190_p2)   ;;  %s924_s22 = sshll.u32 (!%p190_p2), %s919_s19, 1  ;;  %v1091_v2 = vld [vmem:[%s1480_s1 + $0x48] sm:$0xff] (!%p190_p2)   ;;  %v1093_v4 = vld [vmem:[%s1480_s1 + $0x50] sm:$0xff] (!%p190_p2)   ;;  %vm844_vm0 = vcmask (!%p190_p2), 257024  }
   0x6   : > { %193 = sbr.rel (%p190_p2) target bundleno = 375 (0x177), region = 40  ;;  %v1090_v1 = vld [vmem:[%s1480_s1] sm:$0xff] (!%p190_p2)   ;;  %1001 = vmatprep.subr.bf16.mxu0 (!%p190_p2), %v1089_v0  ;;  %1065 = vmatprep.subr.bf16.mxu1 (!%p190_p2), %v1089_v0  ;;  %v1092_v3 = vld [vmem:[%s1480_s1 + $0x8] sm:$0xff] (!%p190_p2)   ;;  %p220_p3 = scmp.lt.s32.totalorder (!%p190_p2), %s924_s22, 3  ;;  %v1094_v5 = vld [vmem:[%s1480_s1 + $0x10] sm:$0xff] (!%p190_p2)  }
   0x7   : > { %1002 = vmatpush3.bf16.msra.mxu0 (!%p190_p2), %v1090_v1  ;;  %1073 = vmatpush3.bf16.msra.mxu1 (!%p190_p2), %v1090_v1  ;;  %v1095_v6 = vld [vmem:[%s1480_s1 + $0x58] sm:$0xff] (!%p190_p2)   ;;  %v1097_v8 = vld [vmem:[%s1480_s1 + $0x60] sm:$0xff] (!%p190_p2)   ;;  %v1099_v10 = vld [vmem:[%s1480_s1 + $0x68] sm:$0xff] (!%p190_p2)  }
   0x8   : > { %1003 = vmatprep.subr.bf16.mxu0 (!%p190_p2), %v1091_v2  ;;  %1066 = vmatprep.subr.bf16.mxu1 (!%p190_p2), %v1091_v2  ;;  %v1096_v7 = vld [vmem:[%s1480_s1 + $0x18] sm:$0xff] (!%p190_p2)   ;;  %v1098_v9 = vld [vmem:[%s1480_s1 + $0x20] sm:$0xff] (!%p190_p2)   ;;  %v1100_v13 = vld [vmem:[%s1480_s1 + $0x28] sm:$0xff] (!%p190_p2)  }
   0x9   : > { %v1101_v14 = vld [vmem:[%s1480_s1 + $0x70] sm:$0xff] (!%p190_p2)   ;;  %v1103_v16 = vld [vmem:[%s1480_s1 + $0x78] sm:$0xff] (!%p190_p2)   ;;  %v1254_v40 = vld [vmem:[%s1481_s2] ss:$0 sm:$0xff] (!%p190_p2) }
   0xa   : > { %v1102_v15 = vld [vmem:[%s1480_s1 + $0x30] sm:$0xff] (!%p190_p2)   ;;  %v1104_v17 = vld [vmem:[%s1480_s1 + $0x38] sm:$0xff] (!%p190_p2)  }
   0xb   : > { %1004 = vmatpush3.bf16.msra.mxu0 (!%p190_p2), %v1092_v3  ;;  %1074 = vmatpush3.bf16.msra.mxu1 (!%p190_p2), %v1092_v3 }
   0xc   : > { %1005 = vmatprep.subr.bf16.mxu0 (!%p190_p2), %v1093_v4  ;;  %1067 = vmatprep.subr.bf16.mxu1 (!%p190_p2), %v1093_v4 }
   0xd   : > { %s1486_s22 = smov (!%p220_p3, %s924_s22), 3 }
   0xe   : > { %s983_s12 = sshll.u32 %s1486_s22, 6  ;;  %s984_s15 = sshll.u32 %s1486_s22, 5 }
   0xf   : > { %1006 = vmatpush3.bf16.msra.mxu0 %v1094_v5  ;;  %1075 = vmatpush3.bf16.msra.mxu1 %v1094_v5  ;;  %s1212_s17 = scalar_lea.vmem %s1479_s0, %s983_s12 }
  0x10   : > { %1007 = vmatprep.subr.bf16.mxu0 %v1095_v6  ;;  %1068 = vmatprep.subr.bf16.mxu1 %v1095_v6  ;;  %v1107_v11 = vld [vmem:[%s1212_s17 + $0x4] ss:$8 sps:$4 sm:$0xff]   ;;  %v1105_v18 = vld [vmem:[%s1212_s17] ss:$8 sps:$4 sm:$0xff]   ;;  %v1111_v20 = vld [vmem:[%s1212_s17 + $0x14] ss:$8 sps:$4 sm:$0xff]  }
  0x11   : > { %v1110_v12 = vld [vmem:[%s1212_s17 + $0x44] ss:$8 sps:$4 sm:$0xff]   ;;  %492 = vmatprep.mubr.bf16.mxu0 %v1107_v11  ;;  %v1108_v19 = vld [vmem:[%s1212_s17 + $0x40] ss:$8 sps:$4 sm:$0xff]   ;;  %v1113_v21 = vld [vmem:[%s1212_s17 + $0x54] ss:$8 sps:$4 sm:$0xff]  }
  0x12   : > { %524 = vmatprep.mubr.bf16.mxu1 %v1110_v12  ;;  %v1115_v22 = vld [vmem:[%s1212_s17 + $0x10] ss:$8 sps:$4 sm:$0xff]   ;;  %v1117_v24 = vld [vmem:[%s1212_s17 + $0x24] ss:$8 sps:$4 sm:$0xff]   ;;  %v1121_v26 = vld [vmem:[%s1212_s17 + $0x20] ss:$8 sps:$4 sm:$0xff]  }
  0x13   : > { %1008 = vmatpush3.bf16.msra.mxu0 %v1096_v7  ;;  %1076 = vmatpush3.bf16.msra.mxu1 %v1096_v7  ;;  %v1116_v23 = vld [vmem:[%s1212_s17 + $0x50] ss:$8 sps:$4 sm:$0xff]   ;;  %v1119_v25 = vld [vmem:[%s1212_s17 + $0x64] ss:$8 sps:$4 sm:$0xff]   ;;  %v1122_v27 = vld [vmem:[%s1212_s17 + $0x60] ss:$8 sps:$4 sm:$0xff]  }
  0x14   : > { %1009 = vmatprep.subr.bf16.mxu0 %v1097_v8  ;;  %1069 = vmatprep.subr.bf16.mxu1 %v1097_v8  ;;  %v1123_v28 = vld [vmem:[%s1212_s17 + $0x34] ss:$8 sps:$4 sm:$0xff]   ;;  %v1127_v30 = vld [vmem:[%s1212_s17 + $0x30] ss:$8 sps:$4 sm:$0xff]  }
  0x15   : > { %v1125_v29 = vld [vmem:[%s1212_s17 + $0x74] ss:$8 sps:$4 sm:$0xff]   ;;  %v1128_v31 = vld [vmem:[%s1212_s17 + $0x70] ss:$8 sps:$4 sm:$0xff]   ;;  %s1406_s17 = scalar_lea.vmem %s1484_s5, %s984_s15 }
  0x17   : > { %1010 = vmatpush3.bf16.msra.mxu0 %v1098_v9  ;;  %1077 = vmatpush3.bf16.msra.mxu1 %v1098_v9 }
  0x18   : > { %1011 = vmatprep.subr.bf16.mxu0 %v1099_v10  ;;  %1070 = vmatprep.subr.bf16.mxu1 %v1099_v10 }
  0x1b   : > { %1012 = vmatpush3.bf16.msra.mxu0 %v1100_v13  ;;  %1078 = vmatpush3.bf16.msra.mxu1 %v1100_v13 }
  0x1c   : > { %1013 = vmatprep.subr.bf16.mxu0 %v1101_v14  ;;  %1071 = vmatprep.subr.bf16.mxu1 %v1101_v14 }
  0x1f   : > { %1014 = vmatpush3.bf16.msra.mxu0 %v1102_v15  ;;  %1079 = vmatpush3.bf16.msra.mxu1 %v1102_v15 }
  0x20   : > { %1015 = vmatprep.subr.bf16.mxu0 %v1103_v16  ;;  %1072 = vmatprep.subr.bf16.mxu1 %v1103_v16 }
  0x23   : > { %1016 = vmatpush3.bf16.msra.mxu0 %v1104_v17  ;;  %1080 = vmatpush3.bf16.msra.mxu1 %v1104_v17 }
  0x26   : > { %493 = vmatmul.mubr.bf16.vlgmr.msra.gmra.mrb[0].mxu0 %v1105_v18  ;;  %525 = vmatmul.mubr.bf16.vlgmr.msra.gmra.mrb[0].mxu1 %v1108_v19 }
  0x27   : > { %500 = vmatprep.mubr.bf16.mxu0 %v1111_v20  ;;  %532 = vmatprep.mubr.bf16.mxu1 %v1113_v21 }
  0x2e   : > { %501 = vmatmul.mubr.bf16.gmra.mrb[4].mxu0 %v1115_v22  ;;  %533 = vmatmul.mubr.bf16.gmra.mrb[4].mxu1 %v1116_v23 }
  0x2f   : > { %508 = vmatprep.mubr.bf16.mxu0 %v1117_v24  ;;  %540 = vmatprep.mubr.bf16.mxu1 %v1119_v25 }
  0x36   : > { %509 = vmatmul.mubr.bf16.gmra.mrb[8].mxu0 %v1121_v26  ;;  %541 = vmatmul.mubr.bf16.gmra.mrb[8].mxu1 %v1122_v27 }
  0x37   : > { %516 = vmatprep.mubr.bf16.mxu0 %v1123_v28  ;;  %548 = vmatprep.mubr.bf16.mxu1 %v1125_v29 }
  0x3e   : > { %517 = vmatmul.mubr.bf16.gmra.mrb[12].mxu0 %v1127_v30  ;;  %549 = vmatmul.mubr.bf16.gmra.mrb[12].mxu1 %v1128_v31 }
  0xf9   : > { %v1017_v32 = vpop.f32.mrb[0].mxu0  ;;  %v1041_v33 = vpop.f32.mrb[0].mxu1 }
  0xfa   : > { %v1018_v34 = vpop.f32.mrb[1].mxu0  ;;  %v1042_v35 = vpop.f32.mrb[1].mxu1 }
  0xfb   : > { %v1019_v36 = vadd.f32 %v1018_v34, %v1017_v32  ;;  %v1043_v37 = vadd.f32 %v1042_v35, %v1041_v33  ;;  %v1020_v38 = vpop.f32.mrb[2].mxu0  ;;  %v1044_v39 = vpop.f32.mrb[2].mxu1 }
  0xfc   : > { %v1021_v41 = vpop.f32.mrb[3].mxu0  ;;  %v1045_v42 = vpop.f32.mrb[3].mxu1 }
  0xfd   : > { %v1022_v43 = vadd.f32 %v1021_v41, %v1020_v38  ;;  %v1046_v44 = vadd.f32 %v1045_v42, %v1044_v39  ;;  %v1257_v45 = vadd.f32 %v1019_v36, %v1254_v40  ;;  %v1260_v46 = vadd.f32 %v1043_v37, %v1254_v40 }
  0xff   : > { %v1263_v47 = vadd.f32 %v1022_v43, %v1254_v40  ;;  %v1266_v48 = vadd.f32 %v1046_v44, %v1254_v40 }
 0x101   : > { %v580_v49 = vadd.f32 %v1263_v47, %v1257_v45  ;;  %v593_v50 = vadd.f32 %v1266_v48, %v1260_v46  ;;  %v1023_v51 = vpop.f32.mrb[4].mxu0  ;;  %v1047_v52 = vpop.f32.mrb[4].mxu1 }
 0x102   : > { %v1024_v53 = vpop.f32.mrb[5].mxu0  ;;  %v1048_v54 = vpop.f32.mrb[5].mxu1 }
 0x103   : > { %v1025_v55 = vadd.f32 %v1024_v53, %v1023_v51  ;;  %v1049_v56 = vadd.f32 %v1048_v54, %v1047_v52  ;;  %v1026_v57 = vpop.f32.mrb[6].mxu0  ;;  %v1050_v58 = vpop.f32.mrb[6].mxu1 }
 0x104   : > { %v1027_v59 = vpop.f32.mrb[7].mxu0  ;;  %v1051_v60 = vpop.f32.mrb[7].mxu1 }
 0x105   : > { %v1273_v61 = vadd.f32 %v1025_v55, %v1254_v40  ;;  %v1276_v62 = vadd.f32 %v1049_v56, %v1254_v40  ;;  %v1028_v63 = vadd.f32 %v1027_v59, %v1026_v57  ;;  %v1052_v0 = vadd.f32 %v1051_v60, %v1050_v58 }
 0x107   : > { %v581_v1 = vadd.f32 %v580_v49, %v1273_v61  ;;  %v594_v2 = vadd.f32 %v593_v50, %v1276_v62  ;;  %v567_v3 = vadd.f32 %v1028_v63, %v1254_v40  ;;  %v1282_v4 = vadd.f32 %v1052_v0, %v1254_v40 }
 0x109   : > { %v582_v5 = vadd.f32 %v581_v1, %v567_v3  ;;  %v595_v6 = vadd.f32 %v594_v2, %v1282_v4  ;;  %v1029_v7 = vpop.f32.mrb[8].mxu0  ;;  %v1053_v8 = vpop.f32.mrb[8].mxu1 }
 0x10a   : > { %v1030_v9 = vpop.f32.mrb[9].mxu0  ;;  %v1054_v10 = vpop.f32.mrb[9].mxu1 }
 0x10b   : > { %v1031_v11 = vadd.f32 %v1030_v9, %v1029_v7  ;;  %v1055_v12 = vadd.f32 %v1054_v10, %v1053_v8  ;;  %v1032_v13 = vpop.f32.mrb[10].mxu0  ;;  %v1056_v14 = vpop.f32.mrb[10].mxu1 }
 0x10c   : > { %v1033_v15 = vpop.f32.mrb[11].mxu0  ;;  %v1057_v16 = vpop.f32.mrb[11].mxu1 }
 0x10d   : > { %v568_v17 = vadd.f32 %v1031_v11, %v1254_v40  ;;  %v576_v18 = vadd.f32 %v1055_v12, %v1254_v40  ;;  %v1034_v19 = vadd.f32 %v1033_v15, %v1032_v13  ;;  %v1058_v20 = vadd.f32 %v1057_v16, %v1056_v14 }
 0x10f   : > { %v583_v21 = vadd.f32 %v582_v5, %v568_v17  ;;  %v596_v22 = vadd.f32 %v595_v6, %v576_v18  ;;  %v569_v23 = vadd.f32 %v1034_v19, %v1254_v40  ;;  %v577_v24 = vadd.f32 %v1058_v20, %v1254_v40 }
 0x111   : > { %v584_v25 = vadd.f32 %v583_v21, %v569_v23  ;;  %v597_v26 = vadd.f32 %v596_v22, %v577_v24  ;;  %v1035_v27 = vpop.f32.mrb[12].mxu0  ;;  %v1059_v28 = vpop.f32.mrb[12].mxu1 }
 0x112   : > { %v1036_v29 = vpop.f32.mrb[13].mxu0  ;;  %v1060_v30 = vpop.f32.mrb[13].mxu1 }
 0x113   : > { %v1037_v31 = vadd.f32 %v1036_v29, %v1035_v27  ;;  %v1061_v32 = vadd.f32 %v1060_v30, %v1059_v28  ;;  %v1038_v33 = vpop.f32.mrb[14].mxu0  ;;  %v1062_v34 = vpop.f32.mrb[14].mxu1 }
 0x114   : > { %v1039_v35 = vpop.f32.mrb[15].mxu0  ;;  %v1063_v36 = vpop.f32.mrb[15].mxu1 }
 0x115   : > { %v570_v37 = vadd.f32 %v1037_v31, %v1254_v40  ;;  %v578_v38 = vadd.f32 %v1061_v32, %v1254_v40  ;;  %v1040_v39 = vadd.f32 %v1039_v35, %v1038_v33  ;;  %v1064_v41 = vadd.f32 %v1063_v36, %v1062_v34 }
 0x117   : > { %v585_v42 = vadd.f32 %v584_v25, %v570_v37  ;;  %v598_v43 = vadd.f32 %v597_v26, %v578_v38  ;;  %v571_v44 = vadd.f32 %v1040_v39, %v1254_v40  ;;  %v579_v49 = vadd.f32 %v1064_v41, %v1254_v40 }
 0x119   : > { %v586_v50 = vadd.f32 %v585_v42, %v571_v44  ;;  %v599_v51 = vadd.f32 %v598_v43, %v579_v49 }
 0x11b   : > { %v587_v52 = vrot.slane %v586_v50, 4  ;;  %v600_v53 = vrot.slane %v599_v51, 4 }
 0x11d   : > { %v588_v54 = vadd.f32 %v587_v52, %v586_v50  ;;  %v601_v55 = vadd.f32 %v600_v53, %v599_v51 }
 0x11f   : > { %v589_v56 = vrot.slane %v588_v54, 2  ;;  %v602_v57 = vrot.slane %v601_v55, 2 }
 0x121   : > { %v590_v58 = vadd.f32 %v589_v56, %v588_v54  ;;  %v603_v59 = vadd.f32 %v602_v57, %v601_v55 }
 0x123   : > { %v591_v60 = vrot.slane %v590_v58, 1  ;;  %v604_v63 = vrot.slane %v603_v59, 1 }
 0x125   : > { %v592_v0 = vadd.f32 %v591_v60, %v590_v58  ;;  %v605_v1 = vadd.f32 %v604_v63, %v603_v59 }
 0x127   : > { %v606_v2 = vmul.f32 0.015625, %v592_v0  ;;  %v607_v5 = vmul.f32 0.015625, %v605_v1 }
 0x129   : > { %v1294_v6 = vsub.f32 %v1257_v45, %v606_v2  ;;  %v1297_v40 = vsub.f32 %v1263_v47, %v606_v2  ;;  %v1300_v7 = vsub.f32 %v1273_v61, %v606_v2  ;;  %v1302_v8 = vsub.f32 %v567_v3, %v606_v2 }
 0x12a   : > { %v1304_v9 = vsub.f32 %v568_v17, %v606_v2  ;;  %v1306_v10 = vsub.f32 %v569_v23, %v606_v2  ;;  %v1308_v11 = vsub.f32 %v570_v37, %v606_v2  ;;  %v1310_v12 = vsub.f32 %v571_v44, %v606_v2 }
 0x12b   : > { %v624_v45 = vmul.f32 %v1294_v6, %v1294_v6  ;;  %v625_v47 = vmul.f32 %v1297_v40, %v1297_v40  ;;  %v626_v61 = vmul.f32 %v1300_v7, %v1300_v7  ;;  %v627_v3 = vmul.f32 %v1302_v8, %v1302_v8 }
 0x12c   : > { %v1321_v14 = vsub.f32 %v1260_v46, %v607_v5  ;;  %v1324_v15 = vsub.f32 %v1266_v48, %v607_v5  ;;  %v1327_v16 = vsub.f32 %v1276_v62, %v607_v5  ;;  %v1330_v17 = vsub.f32 %v1282_v4, %v607_v5 }
 0x12d   : > { %v640_v13 = vadd.f32 %v625_v47, %v624_v45  ;;  %v1332_v19 = vsub.f32 %v576_v18, %v607_v5  ;;  %v1334_v20 = vsub.f32 %v577_v24, %v607_v5  ;;  %v1336_v21 = vsub.f32 %v578_v38, %v607_v5 }
 0x12e   : > { %v1338_v23 = vsub.f32 %v579_v49, %v607_v5  ;;  %v632_v46 = vmul.f32 %v1321_v14, %v1321_v14  ;;  %v633_v48 = vmul.f32 %v1324_v15, %v1324_v15  ;;  %v628_v62 = vmul.f32 %v1304_v9, %v1304_v9  ;;  %v1367_v5 = vld [vmem:[%s1482_s3] ss:$0 sm:$0xff] }
 0x12f   : > { %v641_v22 = vadd.f32 %v640_v13, %v626_v61  ;;  %v634_v18 = vmul.f32 %v1327_v16, %v1327_v16  ;;  %v629_v25 = vmul.f32 %v1306_v10, %v1306_v10  ;;  %v635_v27 = vmul.f32 %v1330_v17, %v1330_v17  ;;  %v1376_v13 = vld [vmem:[%s1483_s4] ss:$0 sm:$0xff] }
 0x130   : > { %v653_v24 = vadd.f32 %v633_v48, %v632_v46  ;;  %v630_v29 = vmul.f32 %v1308_v11, %v1308_v11  ;;  %v636_v31 = vmul.f32 %v1332_v19, %v1332_v19  ;;  %v631_v33 = vmul.f32 %v1310_v12, %v1310_v12 }
 0x131   : > { %v642_v4 = vadd.f32 %v641_v22, %v627_v3  ;;  %v637_v35 = vmul.f32 %v1334_v20, %v1334_v20  ;;  %v638_v38 = vmul.f32 %v1336_v21, %v1336_v21  ;;  %v639_v42 = vmul.f32 %v1338_v23, %v1338_v23 }
 0x132   : > { %v654_v28 = vadd.f32 %v653_v24, %v634_v18 }
 0x133   : > { %v643_v26 = vadd.f32 %v642_v4, %v628_v62 }
 0x134   : > { %v655_v32 = vadd.f32 %v654_v28, %v635_v27 }
 0x135   : > { %v644_v30 = vadd.f32 %v643_v26, %v629_v25 }
 0x136   : > { %v656_v36 = vadd.f32 %v655_v32, %v636_v31 }
 0x137   : > { %v645_v34 = vadd.f32 %v644_v30, %v630_v29 }
 0x138   : > { %v657_v39 = vadd.f32 %v656_v36, %v637_v35 }
 0x139   : > { %v646_v37 = vadd.f32 %v645_v34, %v631_v33 }
 0x13a   : > { %v658_v43 = vadd.f32 %v657_v39, %v638_v38 }
 0x13b   : > { %v647_v41 = vrot.slane %v646_v37, 4 }
 0x13c   : > { %v659_v49 = vadd.f32 %v658_v43, %v639_v42 }
 0x13d   : > { %v648_v44 = vadd.f32 %v647_v41, %v646_v37 }
 0x13e   : > { %v660_v51 = vrot.slane %v659_v49, 4 }
 0x13f   : > { %v649_v50 = vrot.slane %v648_v44, 2 }
 0x140   : > { %v661_v53 = vadd.f32 %v660_v51, %v659_v49 }
 0x141   : > { %v650_v52 = vadd.f32 %v649_v50, %v648_v44 }
 0x142   : > { %v662_v55 = vrot.slane %v661_v53, 2 }
 0x143   : > { %v651_v54 = vrot.slane %v650_v52, 1 }
 0x144   : > { %v663_v57 = vadd.f32 %v662_v55, %v661_v53 }
 0x145   : > { %v652_v56 = vadd.f32 %v651_v54, %v650_v52 }
 0x146   : > { %v664_v59 = vrot.slane %v663_v57, 1 }
 0x147   : > { %v666_v58 = vmul.f32 0.015625, %v652_v56 }
 0x148   : > { %v665_v63 = vadd.f32 %v664_v59, %v663_v57 }
 0x149   : > { %v668_v60 = vadd.f32 1e-05, %v666_v58 }
 0x14a   : > { %v667_v0 = vmul.f32 0.015625, %v665_v63 }
 0x14b   : > { %1129 = vrsqrt.f32 %v668_v60 }
 0x14c   : > { %v669_v1 = vadd.f32 1e-05, %v667_v0 }
 0x14e   : > { %1131 = vrsqrt.f32 %v669_v1 }
 0x155   : > { %v1130_v2 = vpop.eup %1129 }
 0x156   : > { %v672_v45 = vmul.f32 %v1130_v2, %v1294_v6  ;;  %v673_v47 = vmul.f32 %v1130_v2, %v1297_v40  ;;  %v674_v61 = vmul.f32 %v1130_v2, %v1300_v7  ;;  %v675_v3 = vmul.f32 %v1130_v2, %v1302_v8 }
 0x157   : > { %v676_v22 = vmul.f32 %v1130_v2, %v1304_v9  ;;  %v677_v46 = vmul.f32 %v1130_v2, %v1306_v10  ;;  %v678_v48 = vmul.f32 %v1130_v2, %v1308_v11  ;;  %v679_v62 = vmul.f32 %v1130_v2, %v1310_v12 }
 0x158   : > { %v694_v6 = vmul.f32 %v1367_v5, %v672_v45  ;;  %v695_v40 = vmul.f32 %v1367_v5, %v673_v47  ;;  %v696_v7 = vmul.f32 %v1367_v5, %v674_v61  ;;  %v697_v8 = vmul.f32 %v1367_v5, %v675_v3  ;;  %v1132_v26 = vpop.eup %1131 }
 0x159   : > { %v698_v4 = vmul.f32 %v1367_v5, %v676_v22  ;;  %v699_v18 = vmul.f32 %v1367_v5, %v677_v46  ;;  %v700_v9 = vmul.f32 %v1367_v5, %v678_v48  ;;  %v701_v10 = vmul.f32 %v1367_v5, %v679_v62 }
 0x15a   : > { %v716_v11 = vadd.f32 %v1376_v13, %v694_v6  ;;  %v717_v12 = vadd.f32 %v1376_v13, %v695_v40  ;;  %v718_v24 = vadd.f32 %v1376_v13, %v696_v7  ;;  %v719_v25 = vadd.f32 %v1376_v13, %v697_v8 }
 0x15b   : > { %v720_v27 = vadd.f32 %v1376_v13, %v698_v4  ;;  %v721_v28 = vadd.f32 %v1376_v13, %v699_v18  ;;  %v722_v29 = vadd.f32 %v1376_v13, %v700_v9  ;;  %v723_v30 = vadd.f32 %v1376_v13, %v701_v10 }
 0x15c   : > { %vm732_vm1 = vcmp.ge.f32.partialorder %v716_v11, 0.0  ;;  %vm733_vm2 = vcmp.ge.f32.partialorder %v717_v12, 0.0  ;;  %vm734_vm3 = vcmp.ge.f32.partialorder %v718_v24, 0.0  ;;  %vm735_vm4 = vcmp.ge.f32.partialorder %v719_v25, 0.0 }
 0x15d   : > { %vm736_vm5 = vcmp.ge.f32.partialorder %v720_v27, 0.0  ;;  %vm737_vm6 = vcmp.ge.f32.partialorder %v721_v28, 0.0  ;;  %vm738_vm7 = vcmp.ge.f32.partialorder %v722_v29, 0.0  ;;  %vm739_vm8 = vcmp.ge.f32.partialorder %v723_v30, 0.0 }
 0x15e   : > { %v748_v31 = vmul.f32 0.2, %v716_v11  ;;  %v749_v32 = vmul.f32 0.2, %v717_v12  ;;  %v750_v33 = vmul.f32 0.2, %v718_v24  ;;  %v680_v34 = vmul.f32 %v1132_v26, %v1321_v14 }
 0x15f   : > { %v751_v35 = vmul.f32 0.2, %v719_v25  ;;  %v752_v36 = vmul.f32 0.2, %v720_v27  ;;  %v753_v37 = vmul.f32 0.2, %v721_v28  ;;  %v681_v38 = vmul.f32 %v1132_v26, %v1324_v15 }
 0x160   : > { %v754_v39 = vmul.f32 0.2, %v722_v29  ;;  %v755_v41 = vmul.f32 0.2, %v723_v30  ;;  %v764_v42 = vsel %vm732_vm1, %v716_v11, %v748_v31  ;;  %v765_v43 = vsel %vm733_vm2, %v717_v12, %v749_v32 }
 0x161   : > { %v766_v14 = vsel %vm734_vm3, %v718_v24, %v750_v33  ;;  %v767_v44 = vsel %vm735_vm4, %v719_v25, %v751_v35  ;;  %v768_v49 = vsel %vm736_vm5, %v720_v27, %v752_v36  ;;  %v769_v15 = vsel %vm737_vm6, %v721_v28, %v753_v37 }
 0x162   : > { %v770_v50 = vsel %vm738_vm7, %v722_v29, %v754_v39  ;;  %v771_v51 = vsel %vm739_vm8, %v723_v30, %v755_v41  ;;  %v985_v52 = vpack.c.bf16 %v764_v42, %v764_v42  ;;  %v986_v53 = vpack.c.bf16 %v765_v43, %v765_v43 }
 0x163   : > { %v987_v54 = vpack.c.bf16 %v766_v14, %v766_v14  ;;  %v988_v55 = vpack.c.bf16 %v767_v44, %v767_v44  ;;  %v989_v56 = vpack.c.bf16 %v768_v49, %v768_v49  ;;  %v990_v57 = vpack.c.bf16 %v769_v15, %v769_v15 }
 0x164   : > { %v991_v58 = vpack.c.bf16 %v770_v50, %v770_v50  ;;  %v992_v59 = vpack.c.bf16 %v771_v51, %v771_v51  ;;  %845 = vst.msk [vmem:[%s1406_s17] sm:$0xf] %vm844_vm0, %v985_v52  ;;  %846 = vst.msk [vmem:[%s1406_s17 + $0x4] sm:$0xf] %vm844_vm0, %v986_v53  ;;  %v682_v60 = vmul.f32 %v1132_v26, %v1327_v16 }
 0x165   : > { %v683_v63 = vmul.f32 %v1132_v26, %v1330_v17  ;;  %847 = vst.msk [vmem:[%s1406_s17 + $0x8] sm:$0xf] %vm844_vm0, %v987_v54  ;;  %848 = vst.msk [vmem:[%s1406_s17 + $0xc] sm:$0xf] %vm844_vm0, %v988_v55  ;;  %v684_v0 = vmul.f32 %v1132_v26, %v1332_v19  ;;  %v685_v1 = vmul.f32 %v1132_v26, %v1334_v20 }
 0x166   : > { %849 = vst.msk [vmem:[%s1406_s17 + $0x10] sm:$0xf] %vm844_vm0, %v989_v56  ;;  %850 = vst.msk [vmem:[%s1406_s17 + $0x14] sm:$0xf] %vm844_vm0, %v990_v57  ;;  %v686_v2 = vmul.f32 %v1132_v26, %v1336_v21  ;;  %v687_v45 = vmul.f32 %v1132_v26, %v1338_v23  ;;  %v702_v16 = vmul.f32 %v1367_v5, %v680_v34 }
 0x167   : > { %851 = vst.msk [vmem:[%s1406_s17 + $0x18] sm:$0xf] %vm844_vm0, %v991_v58  ;;  %852 = vst.msk [vmem:[%s1406_s17 + $0x1c] sm:$0xf] %vm844_vm0, %v992_v59  ;;  %v703_v17 = vmul.f32 %v1367_v5, %v681_v38  ;;  %v704_v47 = vmul.f32 %v1367_v5, %v682_v60  ;;  %v705_v61 = vmul.f32 %v1367_v5, %v683_v63 }
 0x168   : > { %v706_v19 = vmul.f32 %v1367_v5, %v684_v0  ;;  %v707_v20 = vmul.f32 %v1367_v5, %v685_v1  ;;  %v708_v21 = vmul.f32 %v1367_v5, %v686_v2  ;;  %v709_v23 = vmul.f32 %v1367_v5, %v687_v45 }
 0x169   : > { %v724_v3 = vadd.f32 %v1376_v13, %v702_v16  ;;  %v725_v22 = vadd.f32 %v1376_v13, %v703_v17  ;;  %v726_v46 = vadd.f32 %v1376_v13, %v704_v47  ;;  %v727_v48 = vadd.f32 %v1376_v13, %v705_v61 }
 0x16a   : > { %v728_v62 = vadd.f32 %v1376_v13, %v706_v19  ;;  %v729_v6 = vadd.f32 %v1376_v13, %v707_v20  ;;  %v730_v40 = vadd.f32 %v1376_v13, %v708_v21  ;;  %v731_v7 = vadd.f32 %v1376_v13, %v709_v23 }
 0x16b   : > { %vm740_vm9 = vcmp.ge.f32.partialorder %v724_v3, 0.0  ;;  %vm741_vm10 = vcmp.ge.f32.partialorder %v725_v22, 0.0  ;;  %vm742_vm11 = vcmp.ge.f32.partialorder %v726_v46, 0.0  ;;  %vm743_vm12 = vcmp.ge.f32.partialorder %v727_v48, 0.0 }
 0x16c   : > { %vm744_vm13 = vcmp.ge.f32.partialorder %v728_v62, 0.0  ;;  %vm745_vm14 = vcmp.ge.f32.partialorder %v729_v6, 0.0  ;;  %vm746_vm15 = vcmp.ge.f32.partialorder %v730_v40, 0.0  ;;  %vm747_vm1 = vcmp.ge.f32.partialorder %v731_v7, 0.0 }
 0x16d   : > { %v756_v5 = vmul.f32 0.2, %v724_v3  ;;  %v757_v8 = vmul.f32 0.2, %v725_v22  ;;  %v758_v4 = vmul.f32 0.2, %v726_v46 }
 0x16e   : > { %v759_v18 = vmul.f32 0.2, %v727_v48  ;;  %v760_v9 = vmul.f32 0.2, %v728_v62  ;;  %v761_v10 = vmul.f32 0.2, %v729_v6 }
 0x16f   : > { %v762_v11 = vmul.f32 0.2, %v730_v40  ;;  %v763_v12 = vmul.f32 0.2, %v731_v7  ;;  %v772_v24 = vsel %vm740_vm9, %v724_v3, %v756_v5  ;;  %v773_v13 = vsel %vm741_vm10, %v725_v22, %v757_v8 }
 0x170   : > { %v774_v25 = vsel %vm742_vm11, %v726_v46, %v758_v4  ;;  %v775_v26 = vsel %vm743_vm12, %v727_v48, %v759_v18  ;;  %v776_v27 = vsel %vm744_vm13, %v728_v62, %v760_v9  ;;  %v777_v28 = vsel %vm745_vm14, %v729_v6, %v761_v10 }
 0x171   : > { %v778_v29 = vsel %vm746_vm15, %v730_v40, %v762_v11  ;;  %v779_v30 = vsel %vm747_vm1, %v731_v7, %v763_v12  ;;  %v993_v31 = vpack.c.bf16 %v772_v24, %v772_v24  ;;  %v994_v32 = vpack.c.bf16 %v773_v13, %v773_v13 }
 0x172   : > { %v995_v33 = vpack.c.bf16 %v774_v25, %v774_v25  ;;  %v996_v34 = vpack.c.bf16 %v775_v26, %v775_v26  ;;  %v997_v35 = vpack.c.bf16 %v776_v27, %v776_v27  ;;  %v998_v36 = vpack.c.bf16 %v777_v28, %v777_v28 }
 0x173   : > { %v999_v37 = vpack.c.bf16 %v778_v29, %v778_v29  ;;  %v1000_v38 = vpack.c.bf16 %v779_v30, %v779_v30  ;;  %853 = vst.msk [vmem:[%s1406_s17 + $0x20] sm:$0xf] %vm844_vm0, %v993_v31  ;;  %854 = vst.msk [vmem:[%s1406_s17 + $0x24] sm:$0xf] %vm844_vm0, %v994_v32 }
 0x174   : > { %855 = vst.msk [vmem:[%s1406_s17 + $0x28] sm:$0xf] %vm844_vm0, %v995_v33  ;;  %856 = vst.msk [vmem:[%s1406_s17 + $0x2c] sm:$0xf] %vm844_vm0, %v996_v34 }
 0x175   : > { %857 = vst.msk [vmem:[%s1406_s17 + $0x30] sm:$0xf] %vm844_vm0, %v997_v35  ;;  %858 = vst.msk [vmem:[%s1406_s17 + $0x34] sm:$0xf] %vm844_vm0, %v998_v36 }
 0x176   : > { %859 = vst.msk [vmem:[%s1406_s17 + $0x38] sm:$0xf] %vm844_vm0, %v999_v37  ;;  %860 = vst.msk [vmem:[%s1406_s17 + $0x3c] sm:$0xf] %vm844_vm0, %v1000_v38 }
 0x177 PF: > { %s15_s18 = sadd.s32 1, %s1139_s18  }
 0x178   : > { %p12_p4 = scmp.ge.s32.totalorder %s15_s18, 4  }
 0x17a   :  { %14 = sbr.rel (!%p12_p4) target bundleno = 1 (0x1), region = 70 }

// kernel: squeeze.5
= control target key start
LH: loop header
LB: loop body
LE: loop exit
PB: predicated region body
PF: predicated region fallthrough
CT: control target
= control target key end

     0   :  { %s85_s0 = inlined_call_operand.vmem [shape: f32[2,2], index: 0, kind: input, shape index: {}]   ;;  %s86_s1 = inlined_call_operand.hbm [shape: f32[4], index: 1, kind: output, shape index: {}]  }
   0x1   :  { %v5_v0 = vld [vmem:[%s85_s0] sm:$0x3] }
   0x2   :  { %6 = vst [vmem:[#allocation3] sm:$0x3] %v5_v0 }
   0x3   :  { %2 = vsyncpa [#allocation1], 0  ;;  %vm8_vm0 = vcmask 15360   ;;  %s58_s0 = smov 2   ;;  %vm14_vm1 = vcmask 31760   ;;  %s59_s8 = smov [#allocation0]  }
   0x4   :  { %s26_s9 = sshll.u32 %s59_s8, 4  ;;  %s27_s9 = int_to_ptr.vmem [resolvable:$true] %s26_s9 }
   0x5   :  { %s34_s10 = scalar_lea.vmem %s27_s9, 16  ;;  %s38_s11 = scalar_lea.vmem %s27_s9, 32 }
   0x6   :  { %p35_p0 = scmp.ne.s32.totalorder %s27_s9, %s34_s10  ;;  %p39_p1 = scmp.lt.s32.totalorder %s27_s9, %s27_s9 }
   0x7   :  { %p40_p2 = scmp.lt.s32.totalorder %s38_s11, %s34_s10 }
   0x9   :  { %v11_v1 = vld [vmem:[#allocation3 + $0x1] sm:$0x1]   ;;  %v7_v2 = vld [vmem:[#allocation3] sm:$0x1]   ;;  %p41_p3 = por %p40_p2, %p39_p1 }
   0xa   :  { %12 = vrot.lane.b32.xlu0 %v11_v1, %s58_s0  ;;  %9 = vst.msk [vmem:[#allocation2] sm:$0x1] %vm8_vm0, %v7_v2  }
   0xb   :  { %p42_p4 = pnand %p41_p3, %p35_p0 }
  0x7c   :  { %v13_v3 = vpop.permute.xlu0 %12  }
  0x7d   :  { %15 = vst.msk [vmem:[#allocation2] sm:$0x1] %vm14_vm1, %v13_v3  }
  0x84   :  { %v19_v4 = vld [vmem:[#allocation2] sm:$0x1] }
  0x85   :  { %21 = vst [vmem:[#allocation0] sm:$0x1] %v19_v4 }
  0x86   :  { %45 = shalt.err (!%p42_p4)
}
  0x87   :  { %s46_s14 = scalar_lea.hbm %s86_s1, 16 }
  0x88   :  { %p47_p5 = scmp.ne.s32.totalorder %s86_s1, %s46_s14  ;;  %p50_p6 = scmp.lt.u32.totalorder %s46_s14, %s86_s1 }
  0x8a   :  { %p52_p7 = pnand %p50_p6, %p47_p5 }
  0x8c   :  { %55 = shalt.err (!%p52_p7)
}
  0x8d   :  { %29 = dma.vmem_to_hbm [thread:$0]  %s27_s9, 16, %s86_s1, [#allocation1]  }
  0x8e   :  { %56 = dma.done.wait [#allocation1], 16  }
  0x8f   :  { %57 = vsyncadd [#allocation1], 4294967280 }
  0x90   :  { %31 = vsyncpa [#allocation1], 1 }

// kernel: discriminator_forward.7
= control target key start
LH: loop header
LB: loop body
LE: loop exit
PB: predicated region body
PF: predicated region fallthrough
CT: control target
= control target key end

     0   :  { %s1085_s24 = smov 0   ;;  %s1221_s0 = inlined_call_operand.vmem [shape: bf16[4,16,512], index: 0, kind: input, shape index: {}]   ;;  %s1222_s1 = inlined_call_operand.vmem [shape: bf16[512,128], index: 1, kind: input, shape index: {}]   ;;  %s1223_s2 = inlined_call_operand.vmem [shape: f32[1,128], index: 2, kind: input, shape index: {}]   ;;  %s1224_s3 = inlined_call_operand.vmem [shape: f32[1,128], index: 3, kind: input, shape index: {}]   ;;  %s1225_s4 = inlined_call_operand.vmem [shape: f32[1,128], index: 4, kind: input, shape index: {}]   ;;  %s1226_s5 = inlined_call_operand.vmem [shape: f32[16,128], index: 5, kind: input, shape index: {}]   ;;  %s1227_s6 = inlined_call_operand.vmem [shape: f32[1,128], index: 6, kind: input, shape index: {}]   ;;  %s1228_s7 = inlined_call_operand.vmem [shape: f32[2,2,128], index: 7, kind: output, shape index: {}]  }
   0x1 LB: > { %s1091_s25 = sadd.s32 4294967295, %s1043_s24   ;;  %p873_p0 = scmp.ge.s32.totalorder %s1043_s24, 1  ;;  %s1043_s24 = sphi %s1085_s24, %s17_s24  }
   0x2   : > { %p239_p1 = scmp.lt.s32.totalorder %s1043_s24, 3 }
   0x4   : > { %p240_p2 = pnand %p873_p0, %p239_p1 }
   0x5   : > { %v989_v0 = vld [vmem:[%s1222_s1 + $0x40] sm:$0xff] (!%p240_p2)   ;;  %v993_v4 = vld [vmem:[%s1222_s1 + $0x48] sm:$0xff] (!%p240_p2)   ;;  %v997_v8 = vld [vmem:[%s1222_s1 + $0x50] sm:$0xff] (!%p240_p2)   ;;  %s874_s14 = sshll.u32 (!%p240_p2), %s1091_s25, 1  ;;  %vm800_vm4 = vcmask (!%p240_p2), 1041409   ;;  %vm803_vm5 = vcmask (!%p240_p2), 1041408  }
   0x6   : > { %243 = sbr.rel (%p240_p2) target bundleno = 490 (0x1ea), region = 48  ;;  %v990_v1 = vld [vmem:[%s1222_s1 + $0xc0] sm:$0xff] (!%p240_p2)   ;;  %925 = vmatprep.subr.bf16.mxu0 (!%p240_p2), %v989_v0  ;;  %v994_v5 = vld [vmem:[%s1222_s1 + $0xc8] sm:$0xff] (!%p240_p2)   ;;  %v998_v9 = vld [vmem:[%s1222_s1 + $0xd0] sm:$0xff] (!%p240_p2)   ;;  %p272_p3 = scmp.lt.s32.totalorder (!%p240_p2), %s874_s14, 3 }
   0x7   : > { %v991_v2 = vld [vmem:[%s1222_s1] sm:$0xff] (!%p240_p2)   ;;  %953 = vmatprep.subr.bf16.mxu1 (!%p240_p2), %v990_v1  ;;  %v995_v6 = vld [vmem:[%s1222_s1 + $0x8] sm:$0xff] (!%p240_p2)   ;;  %v999_v10 = vld [vmem:[%s1222_s1 + $0x10] sm:$0xff] (!%p240_p2)   ;;  %p278_p4 = scmp.lt.s32.totalorder (!%p240_p2), %s1091_s25, 1 }
   0x8   : > { %v992_v3 = vld [vmem:[%s1222_s1 + $0x80] sm:$0xff] (!%p240_p2)   ;;  %926 = vmatpush3.bf16.msra.mxu0 (!%p240_p2), %v991_v2  ;;  %v996_v7 = vld [vmem:[%s1222_s1 + $0x88] sm:$0xff] (!%p240_p2)   ;;  %v1000_v11 = vld [vmem:[%s1222_s1 + $0x90] sm:$0xff] (!%p240_p2)  }
   0x9   : > { %954 = vmatpush3.bf16.msra.mxu1 (!%p240_p2), %v992_v3  ;;  %927 = vmatprep.subr.bf16.mxu0 (!%p240_p2), %v993_v4  ;;  %v1001_v12 = vld [vmem:[%s1222_s1 + $0x58] sm:$0xff] (!%p240_p2)   ;;  %v1005_v16 = vld [vmem:[%s1222_s1 + $0x60] sm:$0xff] (!%p240_p2)   ;;  %v1009_v20 = vld [vmem:[%s1222_s1 + $0x68] sm:$0xff] (!%p240_p2)  }
   0xa   : > { %955 = vmatprep.subr.bf16.mxu1 (!%p240_p2), %v994_v5  ;;  %v1002_v13 = vld [vmem:[%s1222_s1 + $0xd8] sm:$0xff] (!%p240_p2)   ;;  %v1006_v17 = vld [vmem:[%s1222_s1 + $0xe0] sm:$0xff] (!%p240_p2)   ;;  %v1010_v21 = vld [vmem:[%s1222_s1 + $0xe8] sm:$0xff] (!%p240_p2)  }
   0xb   : > { %v1003_v14 = vld [vmem:[%s1222_s1 + $0x18] sm:$0xff] (!%p240_p2)   ;;  %v1007_v18 = vld [vmem:[%s1222_s1 + $0x20] sm:$0xff] (!%p240_p2)   ;;  %v1011_v22 = vld [vmem:[%s1222_s1 + $0x28] sm:$0xff] (!%p240_p2)  }
   0xc   : > { %928 = vmatpush3.bf16.msra.mxu0 (!%p240_p2), %v995_v6  ;;  %v1004_v15 = vld [vmem:[%s1222_s1 + $0x98] sm:$0xff] (!%p240_p2)   ;;  %v1008_v19 = vld [vmem:[%s1222_s1 + $0xa0] sm:$0xff] (!%p240_p2)   ;;  %v1012_v23 = vld [vmem:[%s1222_s1 + $0xa8] sm:$0xff] (!%p240_p2)  }
   0xd   : > { %956 = vmatpush3.bf16.msra.mxu1 %v996_v7  ;;  %929 = vmatprep.subr.bf16.mxu0 %v997_v8  ;;  %s1230_s14 = smov (!%p272_p3, %s874_s14), 3  ;;  %v1013_v24 = vld [vmem:[%s1222_s1 + $0x70] sm:$0xff]   ;;  %v1017_v28 = vld [vmem:[%s1222_s1 + $0x78] sm:$0xff]   ;;  %v918_v53 = vld [vmem:[%s1223_s2] ss:$0 sm:$0xff]  ;;  %s1232_s25 = smov (!%p278_p4, %s1091_s25), 1 }
   0xe   : > { %957 = vmatprep.subr.bf16.mxu1 %v998_v9  ;;  %v1014_v25 = vld [vmem:[%s1222_s1 + $0xf0] sm:$0xff]   ;;  %s924_s17 = sshll.u32 %s1230_s14, 5  ;;  %v1018_v29 = vld [vmem:[%s1222_s1 + $0xf8] sm:$0xff]   ;;  %s877_s20 = sshll.u32 %s1232_s25, 1 }
   0xf   : > { %v1015_v26 = vld [vmem:[%s1222_s1 + $0x30] sm:$0xff]   ;;  %s276_s28 = scalar_lea.vmem %s1221_s0, %s924_s17  ;;  %v1019_v30 = vld [vmem:[%s1222_s1 + $0x38] sm:$0xff]   ;;  %s281_s27 = scalar_lea.vmem %s1228_s7, %s877_s20 }
  0x10   : > { %930 = vmatpush3.bf16.msra.mxu0 %v999_v10  ;;  %v1016_v27 = vld [vmem:[%s1222_s1 + $0xb0] sm:$0xff]   ;;  %v1020_v31 = vld [vmem:[%s1222_s1 + $0xb8] sm:$0xff]  }
  0x11   : > { %958 = vmatpush3.bf16.msra.mxu1 %v1000_v11  ;;  %931 = vmatprep.subr.bf16.mxu0 %v1001_v12  ;;  %v1021_v32 = vld [vmem:[%s276_s28] ss:$16 sps:$4 sm:$0xff]   ;;  %v1023_v33 = vld [vmem:[%s276_s28 + $0x4] ss:$16 sps:$4 sm:$0xff]   ;;  %v1024_v34 = vld [vmem:[%s276_s28 + $0x8] ss:$16 sps:$4 sm:$0xff]  }
  0x12   : > { %959 = vmatprep.subr.bf16.mxu1 %v1002_v13  ;;  %v1026_v35 = vld [vmem:[%s276_s28 + $0xc] ss:$16 sps:$4 sm:$0xff]   ;;  %621 = vmatprep.mubr.bf16.mxu0 %v1023_v33  ;;  %v1027_v36 = vld [vmem:[%s276_s28 + $0x24] ss:$16 sps:$4 sm:$0xff]   ;;  %v1031_v38 = vld [vmem:[%s276_s28 + $0x20] ss:$16 sps:$4 sm:$0xff]  }
  0x13   : > { %670 = vmatprep.mubr.bf16.mxu1 %v1026_v35  ;;  %v1029_v37 = vld [vmem:[%s276_s28 + $0x2c] ss:$16 sps:$4 sm:$0xff]   ;;  %v1032_v39 = vld [vmem:[%s276_s28 + $0x28] ss:$16 sps:$4 sm:$0xff]  }
  0x14   : > { %932 = vmatpush3.bf16.msra.mxu0 %v1003_v14 }
  0x15   : > { %960 = vmatpush3.bf16.msra.mxu1 %v1004_v15  ;;  %933 = vmatprep.subr.bf16.mxu0 %v1005_v16 }
  0x16   : > { %961 = vmatprep.subr.bf16.mxu1 %v1006_v17 }
  0x18   : > { %934 = vmatpush3.bf16.msra.mxu0 %v1007_v18 }
  0x19   : > { %962 = vmatpush3.bf16.msra.mxu1 %v1008_v19  ;;  %935 = vmatprep.subr.bf16.mxu0 %v1009_v20 }
  0x1a   : > { %963 = vmatprep.subr.bf16.mxu1 %v1010_v21 }
  0x1c   : > { %936 = vmatpush3.bf16.msra.mxu0 %v1011_v22 }
  0x1d   : > { %964 = vmatpush3.bf16.msra.mxu1 %v1012_v23  ;;  %937 = vmatprep.subr.bf16.mxu0 %v1013_v24 }
  0x1e   : > { %965 = vmatprep.subr.bf16.mxu1 %v1014_v25 }
  0x20   : > { %938 = vmatpush3.bf16.msra.mxu0 %v1015_v26 }
  0x21   : > { %966 = vmatpush3.bf16.msra.mxu1 %v1016_v27  ;;  %939 = vmatprep.subr.bf16.mxu0 %v1017_v28 }
  0x22   : > { %967 = vmatprep.subr.bf16.mxu1 %v1018_v29 }
  0x24   : > { %940 = vmatpush3.bf16.msra.mxu0 %v1019_v30 }
  0x25   : > { %968 = vmatpush3.bf16.msra.mxu1 %v1020_v31 }
  0x27   : > { %622 = vmatmul.mubr.bf16.vlgmr.msra.gmra.mrb[0].mxu0 %v1021_v32 }
  0x28   : > { %671 = vmatmul.mubr.bf16.vlgmr.msra.gmra.mrb[0].mxu1 %v1024_v34  ;;  %629 = vmatprep.mubr.bf16.mxu0 %v1027_v36 }
  0x29   : > { %678 = vmatprep.mubr.bf16.mxu1 %v1029_v37 }
  0x2f   : > { %630 = vmatmul.mubr.bf16.gmra.mrb[4].mxu0 %v1031_v38 }
  0x30   : > { %679 = vmatmul.mubr.bf16.gmra.mrb[4].mxu1 %v1032_v39 }
  0xfa   : > { %v941_v40 = vpop.f32.mrb[0].mxu0 }
  0xfb   : > { %v969_v41 = vpop.f32.mrb[0].mxu1  ;;  %v942_v42 = vpop.f32.mrb[1].mxu0 }
  0xfc   : > { %v943_v43 = vadd.f32 %v942_v42, %v941_v40  ;;  %v970_v44 = vpop.f32.mrb[1].mxu1  ;;  %v944_v45 = vpop.f32.mrb[2].mxu0 }
  0xfd   : > { %v971_v46 = vadd.f32 %v970_v44, %v969_v41  ;;  %v972_v47 = vpop.f32.mrb[2].mxu1  ;;  %v945_v48 = vpop.f32.mrb[3].mxu0 }
  0xfe   : > { %v946_v49 = vadd.f32 %v945_v48, %v944_v45  ;;  %v973_v50 = vpop.f32.mrb[3].mxu1 }
  0xff   : > { %v673_v51 = vadd.f32 %v971_v46, %v943_v43  ;;  %v974_v52 = vadd.f32 %v973_v50, %v972_v47 }
 0x101   : > { %v676_v54 = vadd.f32 %v974_v52, %v946_v49  ;;  %v694_v56 = vadd.f32 %v918_v53, %v673_v51  ;;  %v919_v52 = vld [vmem:[%s1224_s3] ss:$0 sm:$0xff] }
 0x102   : > { %v947_v55 = vpop.f32.mrb[4].mxu0 }
 0x103   : > { %v695_v57 = vadd.f32 %v918_v53, %v676_v54  ;;  %v975_v58 = vpop.f32.mrb[4].mxu1  ;;  %v948_v59 = vpop.f32.mrb[5].mxu0 }
 0x104   : > { %v949_v60 = vadd.f32 %v948_v59, %v947_v55  ;;  %v976_v61 = vpop.f32.mrb[5].mxu1  ;;  %v950_v62 = vpop.f32.mrb[6].mxu0  ;;  %v920_v55 = vld [vmem:[%s1225_s4] ss:$0 sm:$0xff] }
 0x105   : > { %v698_v63 = vadd.f32 %v695_v57, %v694_v56  ;;  %v977_v0 = vadd.f32 %v976_v61, %v975_v58  ;;  %v978_v1 = vpop.f32.mrb[6].mxu1  ;;  %v951_v2 = vpop.f32.mrb[7].mxu0  ;;  %v779_v61 = vld [vmem:[%s1226_s5 + $0x8] sm:$0xff] }
 0x106   : > { %v952_v3 = vadd.f32 %v951_v2, %v950_v62  ;;  %v979_v4 = vpop.f32.mrb[7].mxu1 }
 0x107   : > { %v699_v5 = vrot.slane %v698_v63, 4  ;;  %v681_v6 = vadd.f32 %v977_v0, %v949_v60  ;;  %v980_v7 = vadd.f32 %v979_v4, %v978_v1  ;;  %v778_v60 = vld [vmem:[%s1226_s5] sm:$0xff] }
 0x109   : > { %v700_v8 = vadd.f32 %v699_v5, %v698_v63  ;;  %v684_v9 = vadd.f32 %v980_v7, %v952_v3  ;;  %v696_v11 = vadd.f32 %v918_v53, %v681_v6 }
 0x10b   : > { %v701_v10 = vrot.slane %v700_v8, 2  ;;  %v697_v12 = vadd.f32 %v918_v53, %v684_v9 }
 0x10d   : > { %v702_v13 = vadd.f32 %v701_v10, %v700_v8  ;;  %v705_v14 = vadd.f32 %v697_v12, %v696_v11 }
 0x10f   : > { %v703_v15 = vrot.slane %v702_v13, 1  ;;  %v706_v16 = vrot.slane %v705_v14, 4 }
 0x111   : > { %v704_v17 = vadd.f32 %v703_v15, %v702_v13  ;;  %v707_v18 = vadd.f32 %v706_v16, %v705_v14 }
 0x113   : > { %v712_v19 = vmul.f32 0.0625, %v704_v17  ;;  %v708_v20 = vrot.slane %v707_v18, 2 }
 0x115   : > { %v714_v21 = vsub.f32 %v694_v56, %v712_v19  ;;  %v715_v22 = vsub.f32 %v695_v57, %v712_v19  ;;  %v709_v23 = vadd.f32 %v708_v20, %v707_v18 }
 0x117   : > { %v718_v24 = vmul.f32 %v714_v21, %v714_v21  ;;  %v719_v25 = vmul.f32 %v715_v22, %v715_v22  ;;  %v710_v26 = vrot.slane %v709_v23, 1 }
 0x119   : > { %v722_v27 = vadd.f32 %v719_v25, %v718_v24  ;;  %v711_v28 = vadd.f32 %v710_v26, %v709_v23 }
 0x11b   : > { %v723_v29 = vrot.slane %v722_v27, 4  ;;  %v713_v30 = vmul.f32 0.0625, %v711_v28 }
 0x11d   : > { %v724_v31 = vadd.f32 %v723_v29, %v722_v27  ;;  %v716_v32 = vsub.f32 %v696_v11, %v713_v30  ;;  %v717_v33 = vsub.f32 %v697_v12, %v713_v30 }
 0x11f   : > { %v725_v34 = vrot.slane %v724_v31, 2  ;;  %v720_v35 = vmul.f32 %v716_v32, %v716_v32  ;;  %v721_v36 = vmul.f32 %v717_v33, %v717_v33 }
 0x121   : > { %v726_v37 = vadd.f32 %v725_v34, %v724_v31  ;;  %v729_v38 = vadd.f32 %v721_v36, %v720_v35 }
 0x123   : > { %v727_v39 = vrot.slane %v726_v37, 1  ;;  %v730_v40 = vrot.slane %v729_v38, 4 }
 0x125   : > { %v728_v41 = vadd.f32 %v727_v39, %v726_v37  ;;  %v731_v42 = vadd.f32 %v730_v40, %v729_v38 }
 0x127   : > { %v736_v43 = vmul.f32 0.0625, %v728_v41  ;;  %v732_v44 = vrot.slane %v731_v42, 2 }
 0x129   : > { %v738_v45 = vadd.f32 1e-05, %v736_v43  ;;  %v733_v46 = vadd.f32 %v732_v44, %v731_v42 }
 0x12b   : > { %1033 = vrsqrt.f32 %v738_v45  ;;  %v734_v47 = vrot.slane %v733_v46, 1 }
 0x12d   : > { %v735_v48 = vadd.f32 %v734_v47, %v733_v46 }
 0x12f   : > { %v737_v49 = vmul.f32 0.0625, %v735_v48 }
 0x131   : > { %v739_v50 = vadd.f32 1e-05, %v737_v49 }
 0x133   : > { %1035 = vrsqrt.f32 %v739_v50 }
 0x135   : > { %v1034_v51 = vpop.eup %1033 }
 0x136   : > { %v742_v53 = vmul.f32 %v1034_v51, %v714_v21  ;;  %v743_v54 = vmul.f32 %v1034_v51, %v715_v22 }
 0x138   : > { %v752_v56 = vmul.f32 %v919_v52, %v742_v53  ;;  %v753_v57 = vmul.f32 %v919_v52, %v743_v54 }
 0x13a   : > { %v762_v58 = vadd.f32 %v920_v55, %v752_v56  ;;  %v763_v59 = vadd.f32 %v920_v55, %v753_v57 }
 0x13c   : > { %v771_v62 = vmul.f32 0.2, %v763_v59  ;;  %vm766_vm0 = vcmp.ge.f32.partialorder %v762_v58, 0.0  ;;  %vm767_vm1 = vcmp.ge.f32.partialorder %v763_v59, 0.0  ;;  %v770_v63 = vmul.f32 0.2, %v762_v58 }
 0x13d   : > { %v1036_v0 = vpop.eup %1035 }
 0x13e   : > { %v744_v1 = vmul.f32 %v1036_v0, %v716_v32  ;;  %v745_v2 = vmul.f32 %v1036_v0, %v717_v33  ;;  %v774_v3 = vsel %vm766_vm0, %v762_v58, %v770_v63  ;;  %v775_v4 = vsel %vm767_vm1, %v763_v59, %v771_v62  ;;  %v921_v33 = vld [vmem:[%s1227_s6] ss:$0 sm:$0xff] }
 0x13f   : > { %v780_v5 = vmul.f32 %v778_v60, %v774_v3  ;;  %v781_v6 = vmul.f32 %v779_v61, %v775_v4 }
 0x140   : > { %v754_v7 = vmul.f32 %v919_v52, %v744_v1  ;;  %v755_v8 = vmul.f32 %v919_v52, %v745_v2 }
 0x141   : > { %v784_v9 = vadd.f32 %v781_v6, %v780_v5 }
 0x142   : > { %v764_v10 = vadd.f32 %v920_v55, %v754_v7  ;;  %v765_v11 = vadd.f32 %v920_v55, %v755_v8 }
 0x143   : > { %v785_v12 = vrot.slane %v784_v9, 4 }
 0x144   : > { %v773_v13 = vmul.f32 0.2, %v765_v11  ;;  %vm768_vm2 = vcmp.ge.f32.partialorder %v764_v10, 0.0  ;;  %vm769_vm3 = vcmp.ge.f32.partialorder %v765_v11, 0.0  ;;  %v772_v14 = vmul.f32 0.2, %v764_v10 }
 0x145   : > { %v786_v15 = vadd.f32 %v785_v12, %v784_v9 }
 0x146   : > { %v776_v16 = vsel %vm768_vm2, %v764_v10, %v772_v14  ;;  %v777_v17 = vsel %vm769_vm3, %v765_v11, %v773_v13 }
 0x147   : > { %v782_v18 = vmul.f32 %v778_v60, %v776_v16  ;;  %v783_v19 = vmul.f32 %v779_v61, %v777_v17  ;;  %v787_v20 = vrot.slane %v786_v15, 2 }
 0x149   : > { %v791_v21 = vadd.f32 %v783_v19, %v782_v18  ;;  %v788_v23 = vadd.f32 %v787_v20, %v786_v15 }
 0x14b   : > { %v792_v22 = vrot.slane %v791_v21, 4  ;;  %v789_v26 = vrot.slane %v788_v23, 1 }
 0x14d   : > { %v793_v24 = vadd.f32 %v792_v22, %v791_v21  ;;  %v790_v29 = vadd.f32 %v789_v26, %v788_v23 }
 0x14f   : > { %v794_v25 = vrot.slane %v793_v24, 2 }
 0x151   : > { %v795_v27 = vadd.f32 %v794_v25, %v793_v24 }
 0x153   : > { %v796_v28 = vrot.slane %v795_v27, 1 }
 0x155   : > { %v797_v30 = vadd.f32 %v796_v28, %v795_v27 }
 0x157   : > { %v801_v31 = vsel %vm800_vm4, %v797_v30, %v790_v29 }
 0x158   : > { %v804_v32 = vsel %vm803_vm5, %v801_v31, 0.0 }
 0x159   : > { %805 = vadd.xlane.f32.xlu0 %v804_v32 }
 0x1e6   : > { %v806_v34 = vpop.xlane.xlu0 %805 }
 0x1e7   : > { %v814_v35 = vadd.f32 %v921_v33, %v806_v34 }
 0x1e9   : > { %815 = vst [vmem:[%s281_s27] sm:$0x3] %v814_v35 }
 0x1ea PF: > { %s17_s24 = sadd.s32 1, %s1043_s24  }
 0x1eb   : > { %p14_p5 = scmp.ge.s32.totalorder %s17_s24, 4  }
 0x1ed   :  { %16 = sbr.rel (!%p14_p5) target bundleno = 1 (0x1), region = 78 }

</bundles_post_ra>
